<compile_context>
chip_gen: v7x
topology: tpu7x:2x2x1
jax: 0.10.0
libtpu: 0.0.40
codegen_flags: <defaults>
</compile_context>

<pallas_src>
import functools

import jax
import jax.numpy as jnp
from jax import lax
from jax.experimental import pallas as pl
from jax.experimental.pallas import tpu as pltpu

LN_EPS = 1e-5  # PyTorch nn.LayerNorm default


def _layernorm(x, gamma, beta):
    mean = jnp.mean(x, axis=-1, keepdims=True)
    var = jnp.mean((x - mean) ** 2, axis=-1, keepdims=True)
    return (x - mean) * lax.rsqrt(var + LN_EPS) * gamma + beta


# ---------------------------------------------------------------------------
# Hardware-aware policy (VMEM budget / tiling / weight buffering)
# ---------------------------------------------------------------------------
@functools.lru_cache(maxsize=None)
def _hw_policy():
    """Generation-aware tiling policy keyed off physical VMEM capacity."""
    vmem_bytes = None
    try:
        vmem_bytes = int(pltpu.get_tpu_info().vmem_capacity_bytes)
    except Exception:
        vmem_bytes = None
    if vmem_bytes is not None and vmem_bytes >= 100 * 1024 * 1024:
        # v5e / v6e class: single TensorCore, 128 MiB VMEM -> one big slab and
        # a generous scoped-VMEM budget (large M amortizes MXU fill/drain and
        # per-grid-step overhead; splitting buys no parallelism here).
        return {
            "min_tiles": 1,
            "max_rows": 2048,
            "vmem_limit": min(vmem_bytes * 3 // 4, 100 * 1024 * 1024),
        }
    # v7x class (or unknown hardware): 2 TensorCores share the chip and VMEM
    # is 64 MiB per core -> want >=2 "parallel" grid steps and a tighter
    # budget with headroom for compiler scratch.
    return {
        "min_tiles": 2,
        "max_rows": 256,
        "vmem_limit": 44 * 1024 * 1024,
    }


@functools.lru_cache(maxsize=None)
def _single_buffer_supported():
    """Probe whether pl.Buffered(1) (single-buffered constant-index inputs)
    lowers on this Pallas/Mosaic build; fall back to defaults if not."""
    def _copy(w_ref, o_ref):
        o_ref[...] = w_ref[...]

    try:
        fn = pl.pallas_call(
            _copy,
            out_shape=jax.ShapeDtypeStruct((16, 128), jnp.float32),
            grid=(2,),
            in_specs=[pl.BlockSpec((8, 128), lambda i: (0, 0),
                                   pipeline_mode=pl.Buffered(1))],
            out_specs=pl.BlockSpec((8, 128), lambda i: (i, 0)),
        )
        jax.jit(fn).lower(jax.ShapeDtypeStruct((8, 128), jnp.float32)).compile()
        return True
    except Exception:
        return False


def _weight_spec(shape):
    """BlockSpec for a whole-array, constant-index weight input."""
    n = len(shape)
    index_map = lambda b: (0,) * n
    if _single_buffer_supported():
        # Constant index_map -> never refetched across grid steps; single
        # buffering halves its VMEM footprint vs. default double buffering.
        return pl.BlockSpec(shape, index_map, pipeline_mode=pl.Buffered(1))
    return pl.BlockSpec(shape, index_map)


# ---------------------------------------------------------------------------
# Pallas kernels
# ---------------------------------------------------------------------------
def block_kernel(x_ref, wqkv_ref, wproj_ref, bproj_ref,
                 w1_ref, b1_ref, w2_ref, b2_ref,
                 ln1g_ref, ln1b_ref, ln2g_ref, ln2b_ref,
                 lnfg_ref, lnfb_ref, out_ref, *, n_head, apply_final_ln):
    """One SelfAttentionBlock (MHA + FFN + 2x LayerNorm) for a batch tile.

    When `apply_final_ln` is set (last block), the model's ln_f is fused in so
    the LM head never recomputes it per vocab tile.
    """
    bblk, T, C = x_ref.shape
    H = C // n_head
    R = bblk * T
    NB = bblk * n_head

    x2d = x_ref[...].astype(jnp.float32).reshape(R, C)   # residual stream, f32

    # --- fused QKV projection: one wide bf16 MXU matmul, f32 accumulate -----
    # (1/sqrt(head_size) is folded into the Q columns of wqkv.)
    qkv = jnp.dot(x2d.astype(jnp.bfloat16), wqkv_ref[...],
                  preferred_element_type=jnp.float32)                 # (R, 3C)

    def split_heads(t2d):          # (R, C) bf16 -> (n_head*bblk, T, H)
        t3 = t2d.reshape(R, n_head, H)                 # free lane split
        t3 = pltpu.einshape("rhd->hrd", t3)            # (n_head, R, H) relayout
        return t3.reshape(NB, T, H)

    q = split_heads(qkv[:, :C].astype(jnp.bfloat16))
    k = split_heads(qkv[:, C:2 * C].astype(jnp.bfloat16))
    v = split_heads(qkv[:, 2 * C:].astype(jnp.bfloat16))

    # --- batched attention over all (head, batch) pairs in one MXU stream ---
    row = lax.broadcasted_iota(jnp.int32, (T, T), 0)
    col = lax.broadcasted_iota(jnp.int32, (T, T), 1)
    causal_bias = jnp.where(col <= row, 0.0, -1e30).astype(jnp.float32)  # (T,T)

    s = jnp.einsum('btd,bsd->bts', q, k,
                   preferred_element_type=jnp.float32) + causal_bias  # (NB,T,T)
    m = jnp.max(s, axis=-1, keepdims=True)
    e = jnp.exp(s - m)
    p = e * pl.reciprocal(jnp.sum(e, axis=-1, keepdims=True), approx=True)
    # attention dropout: identity in eval mode
    o = jnp.einsum('bts,bsd->btd', p.astype(jnp.bfloat16), v,
                   preferred_element_type=jnp.float32)                # (NB,T,H)

    # merge heads back to (R, C): inverse of split_heads
    o3 = pltpu.einshape("hrd->rhd", o.astype(jnp.bfloat16).reshape(n_head, R, H))
    sa = o3.reshape(R, C)                                             # (R,C) bf16

    sa = jnp.dot(sa, wproj_ref[...],
                 preferred_element_type=jnp.float32) + bproj_ref[...]
    # projection dropout: identity in eval mode

    x1 = _layernorm(x2d + sa, ln1g_ref[...], ln1b_ref[...])           # (R,C) f32

    # --- feed-forward: fuse bias+ReLU, cast to bf16 immediately (one f32
    #     (R, 4C) temporary ever live) -------------------------------------
    hdn = jnp.dot(x1.astype(jnp.bfloat16), w1_ref[...],
                  preferred_element_type=jnp.float32)
    hdn = jnp.maximum(hdn + b1_ref[...], 0.0).astype(jnp.bfloat16)    # (R, 4C)
    ff = jnp.dot(hdn, w2_ref[...],
                 preferred_element_type=jnp.float32) + b2_ref[...]
    # feed-forward dropout: identity in eval mode

    x2 = _layernorm(x1 + ff, ln2g_ref[...], ln2b_ref[...])
    if apply_final_ln:
        x2 = _layernorm(x2, lnfg_ref[...], lnfb_ref[...])             # fused ln_f
    out_ref[...] = x2.reshape(bblk, T, C).astype(out_ref.dtype)


def lm_head_kernel(x_ref, wlm_ref, blm_ref, out_ref):
    """lm_head Linear for a (row tile, vocab tile) block (ln_f already applied)."""
    logits = jnp.dot(x_ref[...].astype(jnp.bfloat16), wlm_ref[...],
                     preferred_element_type=jnp.float32) + blm_ref[...]
    out_ref[...] = logits.astype(out_ref.dtype)


# ---------------------------------------------------------------------------
# Tiling helpers
# ---------------------------------------------------------------------------
def _choose_batch_tile(B, T, min_tiles, max_rows):
    bblk = B
    # Ensure at least `min_tiles` parallel grid steps (both v7x TensorCores busy).
    while (B // bblk) < min_tiles and bblk > 1 and bblk % 2 == 0:
        bblk //= 2
    # Keep the (bblk*T, C) slab within the VMEM-friendly row budget.
    while bblk > 1 and bblk * T > max_rows and bblk % 2 == 0:
        bblk //= 2
    # TODO(synk): when B is 1 or odd on 2-TensorCore chips, pad B (or split the
    # sequence) so both cores get work; currently one core may sit idle.
    return bblk


def _choose_row_tile(R):
    for t in (512, 256, 128, 64, 32, 16, 8):
        if t <= R and R % t == 0:
            return t
    return R


def _choose_vocab_tile(V):
    for t in (2048, 1024, 512, 256, 128):
        if t <= V and V % t == 0:
            return t
    return V


# ---------------------------------------------------------------------------
# pallas_call wrappers
# ---------------------------------------------------------------------------
def transformer_block(x, p, lnf, n_head, *, apply_final_ln, policy):
    B, T, C = x.shape
    bblk = _choose_batch_tile(B, T, policy["min_tiles"], policy["max_rows"])
    kern = functools.partial(block_kernel, n_head=n_head,
                             apply_final_ln=apply_final_ln)
    weights = (p["wqkv"], p["wproj"], p["bproj"],
               p["w1"], p["b1"], p["w2"], p["b2"],
               p["ln1g"], p["ln1b"], p["ln2g"], p["ln2b"],
               lnf[0], lnf[1])
    in_specs = [pl.BlockSpec((bblk, T, C), lambda b: (b, 0, 0))]
    in_specs += [_weight_spec(w.shape) for w in weights]
    # TODO(synk): cross-pallas_call DMA futures to prefetch the next layer's
    # weights while this layer computes are not implemented; the weight DMA
    # prologue is exposed once per layer.
    return pl.pallas_call(
        kern,
        out_shape=jax.ShapeDtypeStruct((B, T, C), x.dtype),
        grid=(B // bblk,),
        in_specs=in_specs,
        out_specs=pl.BlockSpec((bblk, T, C), lambda b: (b, 0, 0)),
        compiler_params=pltpu.CompilerParams(
            dimension_semantics=("parallel",),
            vmem_limit_bytes=policy["vmem_limit"]),
    )(x, *weights)


def lm_head(x, params, policy, out_dtype=jnp.float32):
    # out_dtype=jnp.bfloat16 halves the dominant (R, V) HBM writeback on
    # v5e/v6e when the caller can tolerate bf16 logits (loss path wants f32).
    B, T, C = x.shape
    V = params["wlm"].shape[-1]
    R = B * T
    x2 = x.reshape(R, C)                      # fold (B, T) rows -> lane/sublane dense
    TR = _choose_row_tile(R)
    TV = _choose_vocab_tile(V)
    out = pl.pallas_call(
        lm_head_kernel,
        out_shape=jax.ShapeDtypeStruct((R, V), out_dtype),
        grid=(R // TR, V // TV),
        in_specs=[
            pl.BlockSpec((TR, C), lambda i, j: (i, 0)),
            pl.BlockSpec((C, TV), lambda i, j: (0, j)),
            pl.BlockSpec((1, TV), lambda i, j: (0, j)),
        ],
        out_specs=pl.BlockSpec((TR, TV), lambda i, j: (i, j)),
        compiler_params=pltpu.CompilerParams(
            dimension_semantics=("parallel", "parallel"),
            vmem_limit_bytes=policy["vmem_limit"]),
    )(x2, params["wlm"], params["blm"])
    return out.reshape(B, T, V)


# ---------------------------------------------------------------------------
# Parameters (deterministic synthetic init, mirroring _int_weights)
# ---------------------------------------------------------------------------
def init_params(key, vocab_size, n_decoder, n_embed, n_head, block_size):
    std = 0.02
    C = n_embed
    H = C // n_head
    keys = jax.random.split(key, 3 + n_decoder)

    def norm(k, shape):
        return jax.random.normal(k, shape, jnp.float32) * std

    params = {
        "tok_emb": norm(keys[0], (vocab_size, C)),
        "pos_emb": norm(keys[1], (block_size, C)),
        "lnfg": jnp.ones((1, C), jnp.float32),
        "lnfb": jnp.zeros((1, C), jnp.float32),
        "wlm": norm(keys[2], (C, vocab_size)).astype(jnp.bfloat16),
        "blm": jnp.zeros((1, vocab_size), jnp.float32),
        "blocks": [],
    }
    # NOTE: head_size = C/n_head; attention MXU efficiency improves if the
    # model config keeps head_size >= 128 (contraction dim of QK^T / PV).
    attn_scale = H ** (-0.5)
    for d in range(n_decoder):
        ks = jax.random.split(keys[3 + d], 6)
        # Per-head (C, H) weights contiguous along the output axis; the
        # 1/sqrt(head_size) scale is folded into Wq before the bf16 cast.
        wq = norm(ks[0], (C, C)) * attn_scale
        wk = norm(ks[1], (C, C))
        wv = norm(ks[2], (C, C))
        params["blocks"].append(dict(
            wqkv=jnp.concatenate([wq, wk, wv], axis=1).astype(jnp.bfloat16),  # (C, 3C)
            wproj=norm(ks[3], (C, C)).astype(jnp.bfloat16),
            bproj=jnp.zeros((1, C), jnp.float32),
            w1=norm(ks[4], (C, 4 * C)).astype(jnp.bfloat16),
            b1=jnp.zeros((1, 4 * C), jnp.float32),
            w2=norm(ks[5], (4 * C, C)).astype(jnp.bfloat16),
            b2=jnp.zeros((1, C), jnp.float32),
            ln1g=jnp.ones((1, C), jnp.float32),
            ln1b=jnp.zeros((1, C), jnp.float32),
            ln2g=jnp.ones((1, C), jnp.float32),
            ln2b=jnp.zeros((1, C), jnp.float32),
        ))
    return params


# ---------------------------------------------------------------------------
# Model forward (GPTLangModel.forward with target=None)
# ---------------------------------------------------------------------------
def gpt_forward(index, params, n_head):
    policy = _hw_policy()
    B, T = index.shape
    tok = jnp.take(params["tok_emb"], index, axis=0)         # (B, T, C) gather (glue)
    pos = params["pos_emb"][:T][None, :, :]                  # (1, T, C)
    x = (tok + pos).astype(jnp.float32)
    n_blocks = len(params["blocks"])                         # assumed >= 1 (ln_f fused into last block)
    lnf = (params["lnfg"], params["lnfb"])
    for i, bp in enumerate(params["blocks"]):
        x = transformer_block(x, bp, lnf, n_head,
                              apply_final_ln=(i == n_blocks - 1),
                              policy=policy)
    logits = lm_head(x, params, policy)
    # TODO(synk): training-mode dropout and the target / cross-entropy loss
    # path are not implemented (eval-mode forward only).
    return logits, None


if __name__ == "__main__":
    # Small but lane-friendly shapes (C and V multiples of 128, T multiple of 8).
    vocab_size = 128
    n_decoder = 2
    n_embed = 128
    n_head = 4
    block_size = 16
    B, T = 4, 16

    key = jax.random.PRNGKey(0)
    pkey, ikey = jax.random.split(key)
    params = init_params(pkey, vocab_size, n_decoder, n_embed, n_head, block_size)
    index = jax.random.randint(ikey, (B, T), 0, vocab_size, dtype=jnp.int32)

    # Warm the hardware probes eagerly (outside any jit trace).
    _hw_policy()
    _single_buffer_supported()

    fwd = jax.jit(functools.partial(gpt_forward, n_head=n_head))
    logits, loss = fwd(index, params)
    logits = jax.block_until_ready(logits)
    assert logits.shape == (B, T, vocab_size)
    assert loss is None
    assert bool(jnp.all(jnp.isfinite(logits)))
    print("KERNEL_OK")
</pallas_src>

<mosaic_0001>
module attributes {stable_mosaic.version = 11 : i64} {
  func.func @block_kernel(%arg0: i32, %arg1: memref<2x16x128xf32, #tpu.memory_space<vmem>>, %arg2: memref<128x384xbf16, #tpu.memory_space<vmem>>, %arg3: memref<128x128xbf16, #tpu.memory_space<vmem>>, %arg4: memref<1x128xf32, #tpu.memory_space<vmem>>, %arg5: memref<128x512xbf16, #tpu.memory_space<vmem>>, %arg6: memref<1x512xf32, #tpu.memory_space<vmem>>, %arg7: memref<512x128xbf16, #tpu.memory_space<vmem>>, %arg8: memref<1x128xf32, #tpu.memory_space<vmem>>, %arg9: memref<1x128xf32, #tpu.memory_space<vmem>>, %arg10: memref<1x128xf32, #tpu.memory_space<vmem>>, %arg11: memref<1x128xf32, #tpu.memory_space<vmem>>, %arg12: memref<1x128xf32, #tpu.memory_space<vmem>>, %arg13: memref<1x128xf32, #tpu.memory_space<vmem>>, %arg14: memref<1x128xf32, #tpu.memory_space<vmem>>, %arg15: memref<2x16x128xf32, #tpu.memory_space<vmem>>) attributes {dimension_semantics = [#tpu.dimension_semantics<parallel>], iteration_bounds = array<i64: 2>, scalar_prefetch = 0 : i64, scratch_operands = 0 : i64, tpu.core_type = #tpu.core_type<tc>, window_params = [{transform_indices = @transform_0, window_bounds = array<i64: 2, 16, 128>}, {pipeline_mode = #tpu.pipeline_mode<synchronous>, transform_indices = @transform_1, window_bounds = array<i64: 128, 384>}, {pipeline_mode = #tpu.pipeline_mode<synchronous>, transform_indices = @transform_2, window_bounds = array<i64: 128, 128>}, {pipeline_mode = #tpu.pipeline_mode<synchronous>, transform_indices = @transform_3, window_bounds = array<i64: 1, 128>}, {pipeline_mode = #tpu.pipeline_mode<synchronous>, transform_indices = @transform_4, window_bounds = array<i64: 128, 512>}, {pipeline_mode = #tpu.pipeline_mode<synchronous>, transform_indices = @transform_5, window_bounds = array<i64: 1, 512>}, {pipeline_mode = #tpu.pipeline_mode<synchronous>, transform_indices = @transform_6, window_bounds = array<i64: 512, 128>}, {pipeline_mode = #tpu.pipeline_mode<synchronous>, transform_indices = @transform_7, window_bounds = array<i64: 1, 128>}, {pipeline_mode = #tpu.pipeline_mode<synchronous>, transform_indices = @transform_8, window_bounds = array<i64: 1, 128>}, {pipeline_mode = #tpu.pipeline_mode<synchronous>, transform_indices = @transform_9, window_bounds = array<i64: 1, 128>}, {pipeline_mode = #tpu.pipeline_mode<synchronous>, transform_indices = @transform_10, window_bounds = array<i64: 1, 128>}, {pipeline_mode = #tpu.pipeline_mode<synchronous>, transform_indices = @transform_11, window_bounds = array<i64: 1, 128>}, {pipeline_mode = #tpu.pipeline_mode<synchronous>, transform_indices = @transform_12, window_bounds = array<i64: 1, 128>}, {pipeline_mode = #tpu.pipeline_mode<synchronous>, transform_indices = @transform_13, window_bounds = array<i64: 1, 128>}, {transform_indices = @transform_14, window_bounds = array<i64: 2, 16, 128>}]} {
    %c0 = arith.constant 0 : index
    %c0_0 = arith.constant 0 : index
    %c0_1 = arith.constant 0 : index
    %0 = vector.load %arg1[%c0, %c0_0, %c0_1] : memref<2x16x128xf32, #tpu.memory_space<vmem>>, vector<2x16x128xf32>
    %1 = vector.shape_cast %0 : vector<2x16x128xf32> to vector<32x128xf32>
    %2 = arith.truncf %1 : vector<32x128xf32> to vector<32x128xbf16>
    %c0_2 = arith.constant 0 : index
    %c0_3 = arith.constant 0 : index
    %3 = vector.load %arg2[%c0_2, %c0_3] : memref<128x384xbf16, #tpu.memory_space<vmem>>, vector<128x384xbf16>
    %cst = arith.constant dense<0.000000e+00> : vector<32x384xf32>
    %4 = tpu.matmul %2, %3, %cst {dimension_numbers = #tpu.dot_dimension_numbers<[1], [0], [0], [1], [0, 0, 1, 1], [], []>} : vector<32x128xbf16>, vector<128x384xbf16>, vector<32x384xf32> -> vector<32x384xf32>
    %5 = vector.extract_strided_slice %4 {offsets = [0, 0], sizes = [32, 128], strides = [1, 1]} : vector<32x384xf32> to vector<32x128xf32>
    %6 = arith.truncf %5 : vector<32x128xf32> to vector<32x128xbf16>
    %7 = vector.shape_cast %6 : vector<32x128xbf16> to vector<32x4x32xbf16>
    %8 = tpu.transpose %7, [1, 0, 2] : vector<32x4x32xbf16> -> vector<4x32x32xbf16>
    %9 = vector.shape_cast %8 : vector<4x32x32xbf16> to vector<8x16x32xbf16>
    %10 = vector.extract_strided_slice %4 {offsets = [0, 128], sizes = [32, 128], strides = [1, 1]} : vector<32x384xf32> to vector<32x128xf32>
    %11 = arith.truncf %10 : vector<32x128xf32> to vector<32x128xbf16>
    %12 = vector.shape_cast %11 : vector<32x128xbf16> to vector<32x4x32xbf16>
    %13 = tpu.transpose %12, [1, 0, 2] : vector<32x4x32xbf16> -> vector<4x32x32xbf16>
    %14 = vector.shape_cast %13 : vector<4x32x32xbf16> to vector<8x16x32xbf16>
    %15 = vector.extract_strided_slice %4 {offsets = [0, 256], sizes = [32, 128], strides = [1, 1]} : vector<32x384xf32> to vector<32x128xf32>
    %16 = arith.truncf %15 : vector<32x128xf32> to vector<32x128xbf16>
    %17 = vector.shape_cast %16 : vector<32x128xbf16> to vector<32x4x32xbf16>
    %18 = tpu.transpose %17, [1, 0, 2] : vector<32x4x32xbf16> -> vector<4x32x32xbf16>
    %19 = vector.shape_cast %18 : vector<4x32x32xbf16> to vector<8x16x32xbf16>
    %20 = tpu.iota {dimensions = array<i32: 0>} : vector<16x16xi32>
    %21 = tpu.iota {dimensions = array<i32: 1>} : vector<16x16xi32>
    %22 = arith.cmpi sle, %21, %20 : vector<16x16xi32>
    %cst_4 = arith.constant 0.000000e+00 : f32
    %cst_5 = arith.constant -1.000000e+30 : f32
    %23 = vector.broadcast %cst_4 : f32 to vector<16x16xf32>
    %24 = vector.broadcast %cst_5 : f32 to vector<16x16xf32>
    %25 = arith.select %22, %23, %24 : vector<16x16xi1>, vector<16x16xf32>
    "tpu.trace_start"() <{level = 10 : i32, message = "btd,bsd->bts"}> : () -> ()
    %cst_6 = arith.constant dense<0.000000e+00> : vector<8x16x16xf32>
    %26 = tpu.matmul %9, %14, %cst_6 {dimension_numbers = #tpu.dot_dimension_numbers<[2], [2], [1], [1], [0, 0, 0, 1, 1, 1], [0], [0]>} : vector<8x16x32xbf16>, vector<8x16x32xbf16>, vector<8x16x16xf32> -> vector<8x16x16xf32>
    "tpu.trace_stop"() : () -> ()
    %27 = vector.shape_cast %25 : vector<16x16xf32> to vector<1x16x16xf32>
    %28 = vector.broadcast %27 : vector<1x16x16xf32> to vector<8x16x16xf32>
    %29 = arith.addf %26, %28 : vector<8x16x16xf32>
    %cst_7 = arith.constant dense<0xFF800000> : vector<8x16xf32>
    %30 = vector.multi_reduction <maximumf>, %29, %cst_7 [2] : vector<8x16x16xf32> to vector<8x16xf32>
    %31 = vector.shape_cast %30 : vector<8x16xf32> to vector<8x16x1xf32>
    %32 = vector.broadcast %31 : vector<8x16x1xf32> to vector<8x16x16xf32>
    %33 = arith.subf %29, %32 : vector<8x16x16xf32>
    %34 = math.exp %33 : vector<8x16x16xf32>
    %cst_8 = arith.constant dense<0.000000e+00> : vector<8x16xf32>
    %35 = vector.multi_reduction <add>, %34, %cst_8 [2] : vector<8x16x16xf32> to vector<8x16xf32>
    %36 = vector.shape_cast %35 : vector<8x16xf32> to vector<8x16x1xf32>
    %37 = tpu.reciprocal %36 {approx = true} : vector<8x16x1xf32> -> vector<8x16x1xf32>
    %38 = vector.broadcast %37 : vector<8x16x1xf32> to vector<8x16x16xf32>
    %39 = arith.mulf %34, %38 : vector<8x16x16xf32>
    %40 = arith.truncf %39 : vector<8x16x16xf32> to vector<8x16x16xbf16>
    "tpu.trace_start"() <{level = 10 : i32, message = "bts,bsd->btd"}> : () -> ()
    %cst_9 = arith.constant dense<0.000000e+00> : vector<8x16x32xf32>
    %41 = tpu.matmul %40, %19, %cst_9 {dimension_numbers = #tpu.dot_dimension_numbers<[2], [1], [1], [2], [0, 0, 0, 1, 1, 2], [0], [0]>} : vector<8x16x16xbf16>, vector<8x16x32xbf16>, vector<8x16x32xf32> -> vector<8x16x32xf32>
    "tpu.trace_stop"() : () -> ()
    %42 = arith.truncf %41 : vector<8x16x32xf32> to vector<8x16x32xbf16>
    %43 = vector.shape_cast %42 : vector<8x16x32xbf16> to vector<4x32x32xbf16>
    %44 = tpu.transpose %43, [1, 0, 2] : vector<4x32x32xbf16> -> vector<32x4x32xbf16>
    %45 = vector.shape_cast %44 : vector<32x4x32xbf16> to vector<32x128xbf16>
    %c0_10 = arith.constant 0 : index
    %c0_11 = arith.constant 0 : index
    %46 = vector.load %arg3[%c0_10, %c0_11] : memref<128x128xbf16, #tpu.memory_space<vmem>>, vector<128x128xbf16>
    %cst_12 = arith.constant dense<0.000000e+00> : vector<32x128xf32>
    %47 = tpu.matmul %45, %46, %cst_12 {dimension_numbers = #tpu.dot_dimension_numbers<[1], [0], [0], [1], [0, 0, 1, 1], [], []>} : vector<32x128xbf16>, vector<128x128xbf16>, vector<32x128xf32> -> vector<32x128xf32>
    %c0_13 = arith.constant 0 : index
    %c0_14 = arith.constant 0 : index
    %48 = vector.load %arg4[%c0_13, %c0_14] : memref<1x128xf32, #tpu.memory_space<vmem>>, vector<1x128xf32>
    %49 = vector.broadcast %48 : vector<1x128xf32> to vector<32x128xf32>
    %50 = arith.addf %47, %49 : vector<32x128xf32>
    %51 = arith.addf %1, %50 : vector<32x128xf32>
    %c0_15 = arith.constant 0 : index
    %c0_16 = arith.constant 0 : index
    %52 = vector.load %arg9[%c0_15, %c0_16] : memref<1x128xf32, #tpu.memory_space<vmem>>, vector<1x128xf32>
    %c0_17 = arith.constant 0 : index
    %c0_18 = arith.constant 0 : index
    %53 = vector.load %arg10[%c0_17, %c0_18] : memref<1x128xf32, #tpu.memory_space<vmem>>, vector<1x128xf32>
    %cst_19 = arith.constant dense<0.000000e+00> : vector<32xf32>
    %54 = vector.multi_reduction <add>, %51, %cst_19 [1] : vector<32x128xf32> to vector<32xf32>
    %55 = vector.shape_cast %54 : vector<32xf32> to vector<32x1xf32>
    %cst_20 = arith.constant 1.280000e+02 : f32
    %56 = vector.broadcast %cst_20 : f32 to vector<32x1xf32>
    %57 = arith.divf %55, %56 : vector<32x1xf32>
    %58 = vector.broadcast %57 : vector<32x1xf32> to vector<32x128xf32>
    %59 = arith.subf %51, %58 : vector<32x128xf32>
    %60 = arith.mulf %59, %59 : vector<32x128xf32>
    %cst_21 = arith.constant dense<0.000000e+00> : vector<32xf32>
    %61 = vector.multi_reduction <add>, %60, %cst_21 [1] : vector<32x128xf32> to vector<32xf32>
    %62 = vector.shape_cast %61 : vector<32xf32> to vector<32x1xf32>
    %cst_22 = arith.constant 1.280000e+02 : f32
    %63 = vector.broadcast %cst_22 : f32 to vector<32x1xf32>
    %64 = arith.divf %62, %63 : vector<32x1xf32>
    %65 = vector.broadcast %57 : vector<32x1xf32> to vector<32x128xf32>
    %66 = arith.subf %51, %65 : vector<32x128xf32>
    %cst_23 = arith.constant 9.99999974E-6 : f32
    %67 = vector.broadcast %cst_23 : f32 to vector<32x1xf32>
    %68 = arith.addf %64, %67 : vector<32x1xf32>
    %69 = math.rsqrt %68 : vector<32x1xf32>
    %70 = vector.broadcast %69 : vector<32x1xf32> to vector<32x128xf32>
    %71 = arith.mulf %66, %70 : vector<32x128xf32>
    %72 = vector.broadcast %52 : vector<1x128xf32> to vector<32x128xf32>
    %73 = arith.mulf %71, %72 : vector<32x128xf32>
    %74 = vector.broadcast %53 : vector<1x128xf32> to vector<32x128xf32>
    %75 = arith.addf %73, %74 : vector<32x128xf32>
    %76 = arith.truncf %75 : vector<32x128xf32> to vector<32x128xbf16>
    %c0_24 = arith.constant 0 : index
    %c0_25 = arith.constant 0 : index
    %77 = vector.load %arg5[%c0_24, %c0_25] : memref<128x512xbf16, #tpu.memory_space<vmem>>, vector<128x512xbf16>
    %cst_26 = arith.constant dense<0.000000e+00> : vector<32x512xf32>
    %78 = tpu.matmul %76, %77, %cst_26 {dimension_numbers = #tpu.dot_dimension_numbers<[1], [0], [0], [1], [0, 0, 1, 1], [], []>} : vector<32x128xbf16>, vector<128x512xbf16>, vector<32x512xf32> -> vector<32x512xf32>
    %c0_27 = arith.constant 0 : index
    %c0_28 = arith.constant 0 : index
    %79 = vector.load %arg6[%c0_27, %c0_28] : memref<1x512xf32, #tpu.memory_space<vmem>>, vector<1x512xf32>
    %80 = vector.broadcast %79 : vector<1x512xf32> to vector<32x512xf32>
    %81 = arith.addf %78, %80 : vector<32x512xf32>
    %cst_29 = arith.constant 0.000000e+00 : f32
    %82 = vector.broadcast %cst_29 : f32 to vector<32x512xf32>
    %83 = arith.maximumf %81, %82 : vector<32x512xf32>
    %84 = arith.truncf %83 : vector<32x512xf32> to vector<32x512xbf16>
    %c0_30 = arith.constant 0 : index
    %c0_31 = arith.constant 0 : index
    %85 = vector.load %arg7[%c0_30, %c0_31] : memref<512x128xbf16, #tpu.memory_space<vmem>>, vector<512x128xbf16>
    %cst_32 = arith.constant dense<0.000000e+00> : vector<32x128xf32>
    %86 = tpu.matmul %84, %85, %cst_32 {dimension_numbers = #tpu.dot_dimension_numbers<[1], [0], [0], [1], [0, 0, 1, 1], [], []>} : vector<32x512xbf16>, vector<512x128xbf16>, vector<32x128xf32> -> vector<32x128xf32>
    %c0_33 = arith.constant 0 : index
    %c0_34 = arith.constant 0 : index
    %87 = vector.load %arg8[%c0_33, %c0_34] : memref<1x128xf32, #tpu.memory_space<vmem>>, vector<1x128xf32>
    %88 = vector.broadcast %87 : vector<1x128xf32> to vector<32x128xf32>
    %89 = arith.addf %86, %88 : vector<32x128xf32>
    %90 = arith.addf %75, %89 : vector<32x128xf32>
    %c0_35 = arith.constant 0 : index
    %c0_36 = arith.constant 0 : index
    %91 = vector.load %arg11[%c0_35, %c0_36] : memref<1x128xf32, #tpu.memory_space<vmem>>, vector<1x128xf32>
    %c0_37 = arith.constant 0 : index
    %c0_38 = arith.constant 0 : index
    %92 = vector.load %arg12[%c0_37, %c0_38] : memref<1x128xf32, #tpu.memory_space<vmem>>, vector<1x128xf32>
    %cst_39 = arith.constant dense<0.000000e+00> : vector<32xf32>
    %93 = vector.multi_reduction <add>, %90, %cst_39 [1] : vector<32x128xf32> to vector<32xf32>
    %94 = vector.shape_cast %93 : vector<32xf32> to vector<32x1xf32>
    %cst_40 = arith.constant 1.280000e+02 : f32
    %95 = vector.broadcast %cst_40 : f32 to vector<32x1xf32>
    %96 = arith.divf %94, %95 : vector<32x1xf32>
    %97 = vector.broadcast %96 : vector<32x1xf32> to vector<32x128xf32>
    %98 = arith.subf %90, %97 : vector<32x128xf32>
    %99 = arith.mulf %98, %98 : vector<32x128xf32>
    %cst_41 = arith.constant dense<0.000000e+00> : vector<32xf32>
    %100 = vector.multi_reduction <add>, %99, %cst_41 [1] : vector<32x128xf32> to vector<32xf32>
    %101 = vector.shape_cast %100 : vector<32xf32> to vector<32x1xf32>
    %cst_42 = arith.constant 1.280000e+02 : f32
    %102 = vector.broadcast %cst_42 : f32 to vector<32x1xf32>
    %103 = arith.divf %101, %102 : vector<32x1xf32>
    %104 = vector.broadcast %96 : vector<32x1xf32> to vector<32x128xf32>
    %105 = arith.subf %90, %104 : vector<32x128xf32>
    %cst_43 = arith.constant 9.99999974E-6 : f32
    %106 = vector.broadcast %cst_43 : f32 to vector<32x1xf32>
    %107 = arith.addf %103, %106 : vector<32x1xf32>
    %108 = math.rsqrt %107 : vector<32x1xf32>
    %109 = vector.broadcast %108 : vector<32x1xf32> to vector<32x128xf32>
    %110 = arith.mulf %105, %109 : vector<32x128xf32>
    %111 = vector.broadcast %91 : vector<1x128xf32> to vector<32x128xf32>
    %112 = arith.mulf %110, %111 : vector<32x128xf32>
    %113 = vector.broadcast %92 : vector<1x128xf32> to vector<32x128xf32>
    %114 = arith.addf %112, %113 : vector<32x128xf32>
    %115 = vector.shape_cast %114 : vector<32x128xf32> to vector<2x16x128xf32>
    %c0_44 = arith.constant 0 : index
    %c0_45 = arith.constant 0 : index
    %c0_46 = arith.constant 0 : index
    %116 = vector.load %arg15[%c0_44, %c0_45, %c0_46] : memref<2x16x128xf32, #tpu.memory_space<vmem>>, vector<2x16x128xf32>
    tpu.vector_store %arg15[%c0_44, %c0_45, %c0_46], %115 {strides = array<i32>} : memref<2x16x128xf32, #tpu.memory_space<vmem>>, vector<2x16x128xf32>,
    return
  }
  func.func @transform_0(%arg0: i32) -> (i32, i32, i32) {
    %c0_i32 = arith.constant 0 : i32
    %c0_i32_0 = arith.constant 0 : i32
    %c0_i32_1 = arith.constant 0 : i32
    return %arg0, %c0_i32, %c0_i32_0 : i32, i32, i32
  }
  func.func @transform_1(%arg0: i32) -> (i32, i32) {
    %c0_i32 = arith.constant 0 : i32
    %c0_i32_0 = arith.constant 0 : i32
    %c0_i32_1 = arith.constant 0 : i32
    return %c0_i32, %c0_i32_0 : i32, i32
  }
  func.func @transform_2(%arg0: i32) -> (i32, i32) {
    %c0_i32 = arith.constant 0 : i32
    %c0_i32_0 = arith.constant 0 : i32
    %c0_i32_1 = arith.constant 0 : i32
    return %c0_i32, %c0_i32_0 : i32, i32
  }
  func.func @transform_3(%arg0: i32) -> (i32, i32) {
    %c0_i32 = arith.constant 0 : i32
    %c0_i32_0 = arith.constant 0 : i32
    %c0_i32_1 = arith.constant 0 : i32
    return %c0_i32, %c0_i32_0 : i32, i32
  }
  func.func @transform_4(%arg0: i32) -> (i32, i32) {
    %c0_i32 = arith.constant 0 : i32
    %c0_i32_0 = arith.constant 0 : i32
    %c0_i32_1 = arith.constant 0 : i32
    return %c0_i32, %c0_i32_0 : i32, i32
  }
  func.func @transform_5(%arg0: i32) -> (i32, i32) {
    %c0_i32 = arith.constant 0 : i32
    %c0_i32_0 = arith.constant 0 : i32
    %c0_i32_1 = arith.constant 0 : i32
    return %c0_i32, %c0_i32_0 : i32, i32
  }
  func.func @transform_6(%arg0: i32) -> (i32, i32) {
    %c0_i32 = arith.constant 0 : i32
    %c0_i32_0 = arith.constant 0 : i32
    %c0_i32_1 = arith.constant 0 : i32
    return %c0_i32, %c0_i32_0 : i32, i32
  }
  func.func @transform_7(%arg0: i32) -> (i32, i32) {
    %c0_i32 = arith.constant 0 : i32
    %c0_i32_0 = arith.constant 0 : i32
    %c0_i32_1 = arith.constant 0 : i32
    return %c0_i32, %c0_i32_0 : i32, i32
  }
  func.func @transform_8(%arg0: i32) -> (i32, i32) {
    %c0_i32 = arith.constant 0 : i32
    %c0_i32_0 = arith.constant 0 : i32
    %c0_i32_1 = arith.constant 0 : i32
    return %c0_i32, %c0_i32_0 : i32, i32
  }
  func.func @transform_9(%arg0: i32) -> (i32, i32) {
    %c0_i32 = arith.constant 0 : i32
    %c0_i32_0 = arith.constant 0 : i32
    %c0_i32_1 = arith.constant 0 : i32
    return %c0_i32, %c0_i32_0 : i32, i32
  }
  func.func @transform_10(%arg0: i32) -> (i32, i32) {
    %c0_i32 = arith.constant 0 : i32
    %c0_i32_0 = arith.constant 0 : i32
    %c0_i32_1 = arith.constant 0 : i32
    return %c0_i32, %c0_i32_0 : i32, i32
  }
  func.func @transform_11(%arg0: i32) -> (i32, i32) {
    %c0_i32 = arith.constant 0 : i32
    %c0_i32_0 = arith.constant 0 : i32
    %c0_i32_1 = arith.constant 0 : i32
    return %c0_i32, %c0_i32_0 : i32, i32
  }
  func.func @transform_12(%arg0: i32) -> (i32, i32) {
    %c0_i32 = arith.constant 0 : i32
    %c0_i32_0 = arith.constant 0 : i32
    %c0_i32_1 = arith.constant 0 : i32
    return %c0_i32, %c0_i32_0 : i32, i32
  }
  func.func @transform_13(%arg0: i32) -> (i32, i32) {
    %c0_i32 = arith.constant 0 : i32
    %c0_i32_0 = arith.constant 0 : i32
    %c0_i32_1 = arith.constant 0 : i32
    return %c0_i32, %c0_i32_0 : i32, i32
  }
  func.func @transform_14(%arg0: i32) -> (i32, i32, i32) {
    %c0_i32 = arith.constant 0 : i32
    %c0_i32_0 = arith.constant 0 : i32
    %c0_i32_1 = arith.constant 0 : i32
    return %arg0, %c0_i32, %c0_i32_0 : i32, i32, i32
  }
}

module attributes {stable_mosaic.version = 11 : i64} {
  func.func @lm_head_kernel(%arg0: i32, %arg1: i32, %arg2: memref<64x128xf32, #tpu.memory_space<vmem>>, %arg3: memref<128x128xbf16, #tpu.memory_space<vmem>>, %arg4: memref<1x128xf32, #tpu.memory_space<vmem>>, %arg5: memref<64x128xf32, #tpu.memory_space<vmem>>) attributes {dimension_semantics = [#tpu.dimension_semantics<parallel>, #tpu.dimension_semantics<parallel>], iteration_bounds = array<i64: 1, 1>, scalar_prefetch = 0 : i64, scratch_operands = 0 : i64, tpu.core_type = #tpu.core_type<tc>, window_params = [{transform_indices = @transform_0, window_bounds = array<i64: 64, 128>}, {transform_indices = @transform_1, window_bounds = array<i64: 128, 128>}, {transform_indices = @transform_2, window_bounds = array<i64: 1, 128>}, {transform_indices = @transform_3, window_bounds = array<i64: 64, 128>}]} {
    %c0 = arith.constant 0 : index
    %c0_0 = arith.constant 0 : index
    %0 = vector.load %arg2[%c0, %c0_0] : memref<64x128xf32, #tpu.memory_space<vmem>>, vector<64x128xf32>
    %1 = arith.truncf %0 : vector<64x128xf32> to vector<64x128xbf16>
    %c0_1 = arith.constant 0 : index
    %c0_2 = arith.constant 0 : index
    %2 = vector.load %arg3[%c0_1, %c0_2] : memref<128x128xbf16, #tpu.memory_space<vmem>>, vector<128x128xbf16>
    %cst = arith.constant dense<0.000000e+00> : vector<64x128xf32>
    %3 = tpu.matmul %1, %2, %cst {dimension_numbers = #tpu.dot_dimension_numbers<[1], [0], [0], [1], [0, 0, 1, 1], [], []>} : vector<64x128xbf16>, vector<128x128xbf16>, vector<64x128xf32> -> vector<64x128xf32>
    %c0_3 = arith.constant 0 : index
    %c0_4 = arith.constant 0 : index
    %4 = vector.load %arg4[%c0_3, %c0_4] : memref<1x128xf32, #tpu.memory_space<vmem>>, vector<1x128xf32>
    %5 = vector.broadcast %4 : vector<1x128xf32> to vector<64x128xf32>
    %6 = arith.addf %3, %5 : vector<64x128xf32>
    %c0_5 = arith.constant 0 : index
    %c0_6 = arith.constant 0 : index
    %7 = vector.load %arg5[%c0_5, %c0_6] : memref<64x128xf32, #tpu.memory_space<vmem>>, vector<64x128xf32>
    tpu.vector_store %arg5[%c0_5, %c0_6], %6 {strides = array<i32>} : memref<64x128xf32, #tpu.memory_space<vmem>>, vector<64x128xf32>,
    return
  }
  func.func @transform_0(%arg0: i32, %arg1: i32) -> (i32, i32) {
    %c0_i32 = arith.constant 0 : i32
    %c0_i32_0 = arith.constant 0 : i32
    return %arg0, %c0_i32 : i32, i32
  }
  func.func @transform_1(%arg0: i32, %arg1: i32) -> (i32, i32) {
    %c0_i32 = arith.constant 0 : i32
    %c0_i32_0 = arith.constant 0 : i32
    return %c0_i32, %arg1 : i32, i32
  }
  func.func @transform_2(%arg0: i32, %arg1: i32) -> (i32, i32) {
    %c0_i32 = arith.constant 0 : i32
    %c0_i32_0 = arith.constant 0 : i32
    return %c0_i32, %arg1 : i32, i32
  }
  func.func @transform_3(%arg0: i32, %arg1: i32) -> (i32, i32) {
    %c0_i32 = arith.constant 0 : i32
    return %arg0, %arg1 : i32, i32
  }
}

module attributes {stable_mosaic.version = 11 : i64} {
  func.func @block_kernel(%arg0: i32, %arg1: memref<2x16x128xf32, #tpu.memory_space<vmem>>, %arg2: memref<128x384xbf16, #tpu.memory_space<vmem>>, %arg3: memref<128x128xbf16, #tpu.memory_space<vmem>>, %arg4: memref<1x128xf32, #tpu.memory_space<vmem>>, %arg5: memref<128x512xbf16, #tpu.memory_space<vmem>>, %arg6: memref<1x512xf32, #tpu.memory_space<vmem>>, %arg7: memref<512x128xbf16, #tpu.memory_space<vmem>>, %arg8: memref<1x128xf32, #tpu.memory_space<vmem>>, %arg9: memref<1x128xf32, #tpu.memory_space<vmem>>, %arg10: memref<1x128xf32, #tpu.memory_space<vmem>>, %arg11: memref<1x128xf32, #tpu.memory_space<vmem>>, %arg12: memref<1x128xf32, #tpu.memory_space<vmem>>, %arg13: memref<1x128xf32, #tpu.memory_space<vmem>>, %arg14: memref<1x128xf32, #tpu.memory_space<vmem>>, %arg15: memref<2x16x128xf32, #tpu.memory_space<vmem>>) attributes {dimension_semantics = [#tpu.dimension_semantics<parallel>], iteration_bounds = array<i64: 2>, scalar_prefetch = 0 : i64, scratch_operands = 0 : i64, tpu.core_type = #tpu.core_type<tc>, window_params = [{transform_indices = @transform_0, window_bounds = array<i64: 2, 16, 128>}, {pipeline_mode = #tpu.pipeline_mode<synchronous>, transform_indices = @transform_1, window_bounds = array<i64: 128, 384>}, {pipeline_mode = #tpu.pipeline_mode<synchronous>, transform_indices = @transform_2, window_bounds = array<i64: 128, 128>}, {pipeline_mode = #tpu.pipeline_mode<synchronous>, transform_indices = @transform_3, window_bounds = array<i64: 1, 128>}, {pipeline_mode = #tpu.pipeline_mode<synchronous>, transform_indices = @transform_4, window_bounds = array<i64: 128, 512>}, {pipeline_mode = #tpu.pipeline_mode<synchronous>, transform_indices = @transform_5, window_bounds = array<i64: 1, 512>}, {pipeline_mode = #tpu.pipeline_mode<synchronous>, transform_indices = @transform_6, window_bounds = array<i64: 512, 128>}, {pipeline_mode = #tpu.pipeline_mode<synchronous>, transform_indices = @transform_7, window_bounds = array<i64: 1, 128>}, {pipeline_mode = #tpu.pipeline_mode<synchronous>, transform_indices = @transform_8, window_bounds = array<i64: 1, 128>}, {pipeline_mode = #tpu.pipeline_mode<synchronous>, transform_indices = @transform_9, window_bounds = array<i64: 1, 128>}, {pipeline_mode = #tpu.pipeline_mode<synchronous>, transform_indices = @transform_10, window_bounds = array<i64: 1, 128>}, {pipeline_mode = #tpu.pipeline_mode<synchronous>, transform_indices = @transform_11, window_bounds = array<i64: 1, 128>}, {pipeline_mode = #tpu.pipeline_mode<synchronous>, transform_indices = @transform_12, window_bounds = array<i64: 1, 128>}, {pipeline_mode = #tpu.pipeline_mode<synchronous>, transform_indices = @transform_13, window_bounds = array<i64: 1, 128>}, {transform_indices = @transform_14, window_bounds = array<i64: 2, 16, 128>}]} {
    %c0 = arith.constant 0 : index
    %c0_0 = arith.constant 0 : index
    %c0_1 = arith.constant 0 : index
    %0 = vector.load %arg1[%c0, %c0_0, %c0_1] : memref<2x16x128xf32, #tpu.memory_space<vmem>>, vector<2x16x128xf32>
    %1 = vector.shape_cast %0 : vector<2x16x128xf32> to vector<32x128xf32>
    %2 = arith.truncf %1 : vector<32x128xf32> to vector<32x128xbf16>
    %c0_2 = arith.constant 0 : index
    %c0_3 = arith.constant 0 : index
    %3 = vector.load %arg2[%c0_2, %c0_3] : memref<128x384xbf16, #tpu.memory_space<vmem>>, vector<128x384xbf16>
    %cst = arith.constant dense<0.000000e+00> : vector<32x384xf32>
    %4 = tpu.matmul %2, %3, %cst {dimension_numbers = #tpu.dot_dimension_numbers<[1], [0], [0], [1], [0, 0, 1, 1], [], []>} : vector<32x128xbf16>, vector<128x384xbf16>, vector<32x384xf32> -> vector<32x384xf32>
    %5 = vector.extract_strided_slice %4 {offsets = [0, 0], sizes = [32, 128], strides = [1, 1]} : vector<32x384xf32> to vector<32x128xf32>
    %6 = arith.truncf %5 : vector<32x128xf32> to vector<32x128xbf16>
    %7 = vector.shape_cast %6 : vector<32x128xbf16> to vector<32x4x32xbf16>
    %8 = tpu.transpose %7, [1, 0, 2] : vector<32x4x32xbf16> -> vector<4x32x32xbf16>
    %9 = vector.shape_cast %8 : vector<4x32x32xbf16> to vector<8x16x32xbf16>
    %10 = vector.extract_strided_slice %4 {offsets = [0, 128], sizes = [32, 128], strides = [1, 1]} : vector<32x384xf32> to vector<32x128xf32>
    %11 = arith.truncf %10 : vector<32x128xf32> to vector<32x128xbf16>
    %12 = vector.shape_cast %11 : vector<32x128xbf16> to vector<32x4x32xbf16>
    %13 = tpu.transpose %12, [1, 0, 2] : vector<32x4x32xbf16> -> vector<4x32x32xbf16>
    %14 = vector.shape_cast %13 : vector<4x32x32xbf16> to vector<8x16x32xbf16>
    %15 = vector.extract_strided_slice %4 {offsets = [0, 256], sizes = [32, 128], strides = [1, 1]} : vector<32x384xf32> to vector<32x128xf32>
    %16 = arith.truncf %15 : vector<32x128xf32> to vector<32x128xbf16>
    %17 = vector.shape_cast %16 : vector<32x128xbf16> to vector<32x4x32xbf16>
    %18 = tpu.transpose %17, [1, 0, 2] : vector<32x4x32xbf16> -> vector<4x32x32xbf16>
    %19 = vector.shape_cast %18 : vector<4x32x32xbf16> to vector<8x16x32xbf16>
    %20 = tpu.iota {dimensions = array<i32: 0>} : vector<16x16xi32>
    %21 = tpu.iota {dimensions = array<i32: 1>} : vector<16x16xi32>
    %22 = arith.cmpi sle, %21, %20 : vector<16x16xi32>
    %cst_4 = arith.constant 0.000000e+00 : f32
    %cst_5 = arith.constant -1.000000e+30 : f32
    %23 = vector.broadcast %cst_4 : f32 to vector<16x16xf32>
    %24 = vector.broadcast %cst_5 : f32 to vector<16x16xf32>
    %25 = arith.select %22, %23, %24 : vector<16x16xi1>, vector<16x16xf32>
    "tpu.trace_start"() <{level = 10 : i32, message = "btd,bsd->bts"}> : () -> ()
    %cst_6 = arith.constant dense<0.000000e+00> : vector<8x16x16xf32>
    %26 = tpu.matmul %9, %14, %cst_6 {dimension_numbers = #tpu.dot_dimension_numbers<[2], [2], [1], [1], [0, 0, 0, 1, 1, 1], [0], [0]>} : vector<8x16x32xbf16>, vector<8x16x32xbf16>, vector<8x16x16xf32> -> vector<8x16x16xf32>
    "tpu.trace_stop"() : () -> ()
    %27 = vector.shape_cast %25 : vector<16x16xf32> to vector<1x16x16xf32>
    %28 = vector.broadcast %27 : vector<1x16x16xf32> to vector<8x16x16xf32>
    %29 = arith.addf %26, %28 : vector<8x16x16xf32>
    %cst_7 = arith.constant dense<0xFF800000> : vector<8x16xf32>
    %30 = vector.multi_reduction <maximumf>, %29, %cst_7 [2] : vector<8x16x16xf32> to vector<8x16xf32>
    %31 = vector.shape_cast %30 : vector<8x16xf32> to vector<8x16x1xf32>
    %32 = vector.broadcast %31 : vector<8x16x1xf32> to vector<8x16x16xf32>
    %33 = arith.subf %29, %32 : vector<8x16x16xf32>
    %34 = math.exp %33 : vector<8x16x16xf32>
    %cst_8 = arith.constant dense<0.000000e+00> : vector<8x16xf32>
    %35 = vector.multi_reduction <add>, %34, %cst_8 [2] : vector<8x16x16xf32> to vector<8x16xf32>
    %36 = vector.shape_cast %35 : vector<8x16xf32> to vector<8x16x1xf32>
    %37 = tpu.reciprocal %36 {approx = true} : vector<8x16x1xf32> -> vector<8x16x1xf32>
    %38 = vector.broadcast %37 : vector<8x16x1xf32> to vector<8x16x16xf32>
    %39 = arith.mulf %34, %38 : vector<8x16x16xf32>
    %40 = arith.truncf %39 : vector<8x16x16xf32> to vector<8x16x16xbf16>
    "tpu.trace_start"() <{level = 10 : i32, message = "bts,bsd->btd"}> : () -> ()
    %cst_9 = arith.constant dense<0.000000e+00> : vector<8x16x32xf32>
    %41 = tpu.matmul %40, %19, %cst_9 {dimension_numbers = #tpu.dot_dimension_numbers<[2], [1], [1], [2], [0, 0, 0, 1, 1, 2], [0], [0]>} : vector<8x16x16xbf16>, vector<8x16x32xbf16>, vector<8x16x32xf32> -> vector<8x16x32xf32>
    "tpu.trace_stop"() : () -> ()
    %42 = arith.truncf %41 : vector<8x16x32xf32> to vector<8x16x32xbf16>
    %43 = vector.shape_cast %42 : vector<8x16x32xbf16> to vector<4x32x32xbf16>
    %44 = tpu.transpose %43, [1, 0, 2] : vector<4x32x32xbf16> -> vector<32x4x32xbf16>
    %45 = vector.shape_cast %44 : vector<32x4x32xbf16> to vector<32x128xbf16>
    %c0_10 = arith.constant 0 : index
    %c0_11 = arith.constant 0 : index
    %46 = vector.load %arg3[%c0_10, %c0_11] : memref<128x128xbf16, #tpu.memory_space<vmem>>, vector<128x128xbf16>
    %cst_12 = arith.constant dense<0.000000e+00> : vector<32x128xf32>
    %47 = tpu.matmul %45, %46, %cst_12 {dimension_numbers = #tpu.dot_dimension_numbers<[1], [0], [0], [1], [0, 0, 1, 1], [], []>} : vector<32x128xbf16>, vector<128x128xbf16>, vector<32x128xf32> -> vector<32x128xf32>
    %c0_13 = arith.constant 0 : index
    %c0_14 = arith.constant 0 : index
    %48 = vector.load %arg4[%c0_13, %c0_14] : memref<1x128xf32, #tpu.memory_space<vmem>>, vector<1x128xf32>
    %49 = vector.broadcast %48 : vector<1x128xf32> to vector<32x128xf32>
    %50 = arith.addf %47, %49 : vector<32x128xf32>
    %51 = arith.addf %1, %50 : vector<32x128xf32>
    %c0_15 = arith.constant 0 : index
    %c0_16 = arith.constant 0 : index
    %52 = vector.load %arg9[%c0_15, %c0_16] : memref<1x128xf32, #tpu.memory_space<vmem>>, vector<1x128xf32>
    %c0_17 = arith.constant 0 : index
    %c0_18 = arith.constant 0 : index
    %53 = vector.load %arg10[%c0_17, %c0_18] : memref<1x128xf32, #tpu.memory_space<vmem>>, vector<1x128xf32>
    %cst_19 = arith.constant dense<0.000000e+00> : vector<32xf32>
    %54 = vector.multi_reduction <add>, %51, %cst_19 [1] : vector<32x128xf32> to vector<32xf32>
    %55 = vector.shape_cast %54 : vector<32xf32> to vector<32x1xf32>
    %cst_20 = arith.constant 1.280000e+02 : f32
    %56 = vector.broadcast %cst_20 : f32 to vector<32x1xf32>
    %57 = arith.divf %55, %56 : vector<32x1xf32>
    %58 = vector.broadcast %57 : vector<32x1xf32> to vector<32x128xf32>
    %59 = arith.subf %51, %58 : vector<32x128xf32>
    %60 = arith.mulf %59, %59 : vector<32x128xf32>
    %cst_21 = arith.constant dense<0.000000e+00> : vector<32xf32>
    %61 = vector.multi_reduction <add>, %60, %cst_21 [1] : vector<32x128xf32> to vector<32xf32>
    %62 = vector.shape_cast %61 : vector<32xf32> to vector<32x1xf32>
    %cst_22 = arith.constant 1.280000e+02 : f32
    %63 = vector.broadcast %cst_22 : f32 to vector<32x1xf32>
    %64 = arith.divf %62, %63 : vector<32x1xf32>
    %65 = vector.broadcast %57 : vector<32x1xf32> to vector<32x128xf32>
    %66 = arith.subf %51, %65 : vector<32x128xf32>
    %cst_23 = arith.constant 9.99999974E-6 : f32
    %67 = vector.broadcast %cst_23 : f32 to vector<32x1xf32>
    %68 = arith.addf %64, %67 : vector<32x1xf32>
    %69 = math.rsqrt %68 : vector<32x1xf32>
    %70 = vector.broadcast %69 : vector<32x1xf32> to vector<32x128xf32>
    %71 = arith.mulf %66, %70 : vector<32x128xf32>
    %72 = vector.broadcast %52 : vector<1x128xf32> to vector<32x128xf32>
    %73 = arith.mulf %71, %72 : vector<32x128xf32>
    %74 = vector.broadcast %53 : vector<1x128xf32> to vector<32x128xf32>
    %75 = arith.addf %73, %74 : vector<32x128xf32>
    %76 = arith.truncf %75 : vector<32x128xf32> to vector<32x128xbf16>
    %c0_24 = arith.constant 0 : index
    %c0_25 = arith.constant 0 : index
    %77 = vector.load %arg5[%c0_24, %c0_25] : memref<128x512xbf16, #tpu.memory_space<vmem>>, vector<128x512xbf16>
    %cst_26 = arith.constant dense<0.000000e+00> : vector<32x512xf32>
    %78 = tpu.matmul %76, %77, %cst_26 {dimension_numbers = #tpu.dot_dimension_numbers<[1], [0], [0], [1], [0, 0, 1, 1], [], []>} : vector<32x128xbf16>, vector<128x512xbf16>, vector<32x512xf32> -> vector<32x512xf32>
    %c0_27 = arith.constant 0 : index
    %c0_28 = arith.constant 0 : index
    %79 = vector.load %arg6[%c0_27, %c0_28] : memref<1x512xf32, #tpu.memory_space<vmem>>, vector<1x512xf32>
    %80 = vector.broadcast %79 : vector<1x512xf32> to vector<32x512xf32>
    %81 = arith.addf %78, %80 : vector<32x512xf32>
    %cst_29 = arith.constant 0.000000e+00 : f32
    %82 = vector.broadcast %cst_29 : f32 to vector<32x512xf32>
    %83 = arith.maximumf %81, %82 : vector<32x512xf32>
    %84 = arith.truncf %83 : vector<32x512xf32> to vector<32x512xbf16>
    %c0_30 = arith.constant 0 : index
    %c0_31 = arith.constant 0 : index
    %85 = vector.load %arg7[%c0_30, %c0_31] : memref<512x128xbf16, #tpu.memory_space<vmem>>, vector<512x128xbf16>
    %cst_32 = arith.constant dense<0.000000e+00> : vector<32x128xf32>
    %86 = tpu.matmul %84, %85, %cst_32 {dimension_numbers = #tpu.dot_dimension_numbers<[1], [0], [0], [1], [0, 0, 1, 1], [], []>} : vector<32x512xbf16>, vector<512x128xbf16>, vector<32x128xf32> -> vector<32x128xf32>
    %c0_33 = arith.constant 0 : index
    %c0_34 = arith.constant 0 : index
    %87 = vector.load %arg8[%c0_33, %c0_34] : memref<1x128xf32, #tpu.memory_space<vmem>>, vector<1x128xf32>
    %88 = vector.broadcast %87 : vector<1x128xf32> to vector<32x128xf32>
    %89 = arith.addf %86, %88 : vector<32x128xf32>
    %90 = arith.addf %75, %89 : vector<32x128xf32>
    %c0_35 = arith.constant 0 : index
    %c0_36 = arith.constant 0 : index
    %91 = vector.load %arg11[%c0_35, %c0_36] : memref<1x128xf32, #tpu.memory_space<vmem>>, vector<1x128xf32>
    %c0_37 = arith.constant 0 : index
    %c0_38 = arith.constant 0 : index
    %92 = vector.load %arg12[%c0_37, %c0_38] : memref<1x128xf32, #tpu.memory_space<vmem>>, vector<1x128xf32>
    %cst_39 = arith.constant dense<0.000000e+00> : vector<32xf32>
    %93 = vector.multi_reduction <add>, %90, %cst_39 [1] : vector<32x128xf32> to vector<32xf32>
    %94 = vector.shape_cast %93 : vector<32xf32> to vector<32x1xf32>
    %cst_40 = arith.constant 1.280000e+02 : f32
    %95 = vector.broadcast %cst_40 : f32 to vector<32x1xf32>
    %96 = arith.divf %94, %95 : vector<32x1xf32>
    %97 = vector.broadcast %96 : vector<32x1xf32> to vector<32x128xf32>
    %98 = arith.subf %90, %97 : vector<32x128xf32>
    %99 = arith.mulf %98, %98 : vector<32x128xf32>
    %cst_41 = arith.constant dense<0.000000e+00> : vector<32xf32>
    %100 = vector.multi_reduction <add>, %99, %cst_41 [1] : vector<32x128xf32> to vector<32xf32>
    %101 = vector.shape_cast %100 : vector<32xf32> to vector<32x1xf32>
    %cst_42 = arith.constant 1.280000e+02 : f32
    %102 = vector.broadcast %cst_42 : f32 to vector<32x1xf32>
    %103 = arith.divf %101, %102 : vector<32x1xf32>
    %104 = vector.broadcast %96 : vector<32x1xf32> to vector<32x128xf32>
    %105 = arith.subf %90, %104 : vector<32x128xf32>
    %cst_43 = arith.constant 9.99999974E-6 : f32
    %106 = vector.broadcast %cst_43 : f32 to vector<32x1xf32>
    %107 = arith.addf %103, %106 : vector<32x1xf32>
    %108 = math.rsqrt %107 : vector<32x1xf32>
    %109 = vector.broadcast %108 : vector<32x1xf32> to vector<32x128xf32>
    %110 = arith.mulf %105, %109 : vector<32x128xf32>
    %111 = vector.broadcast %91 : vector<1x128xf32> to vector<32x128xf32>
    %112 = arith.mulf %110, %111 : vector<32x128xf32>
    %113 = vector.broadcast %92 : vector<1x128xf32> to vector<32x128xf32>
    %114 = arith.addf %112, %113 : vector<32x128xf32>
    %c0_44 = arith.constant 0 : index
    %c0_45 = arith.constant 0 : index
    %115 = vector.load %arg13[%c0_44, %c0_45] : memref<1x128xf32, #tpu.memory_space<vmem>>, vector<1x128xf32>
    %c0_46 = arith.constant 0 : index
    %c0_47 = arith.constant 0 : index
    %116 = vector.load %arg14[%c0_46, %c0_47] : memref<1x128xf32, #tpu.memory_space<vmem>>, vector<1x128xf32>
    %cst_48 = arith.constant dense<0.000000e+00> : vector<32xf32>
    %117 = vector.multi_reduction <add>, %114, %cst_48 [1] : vector<32x128xf32> to vector<32xf32>
    %118 = vector.shape_cast %117 : vector<32xf32> to vector<32x1xf32>
    %cst_49 = arith.constant 1.280000e+02 : f32
    %119 = vector.broadcast %cst_49 : f32 to vector<32x1xf32>
    %120 = arith.divf %118, %119 : vector<32x1xf32>
    %121 = vector.broadcast %120 : vector<32x1xf32> to vector<32x128xf32>
    %122 = arith.subf %114, %121 : vector<32x128xf32>
    %123 = arith.mulf %122, %122 : vector<32x128xf32>
    %cst_50 = arith.constant dense<0.000000e+00> : vector<32xf32>
    %124 = vector.multi_reduction <add>, %123, %cst_50 [1] : vector<32x128xf32> to vector<32xf32>
    %125 = vector.shape_cast %124 : vector<32xf32> to vector<32x1xf32>
    %cst_51 = arith.constant 1.280000e+02 : f32
    %126 = vector.broadcast %cst_51 : f32 to vector<32x1xf32>
    %127 = arith.divf %125, %126 : vector<32x1xf32>
    %128 = vector.broadcast %120 : vector<32x1xf32> to vector<32x128xf32>
    %129 = arith.subf %114, %128 : vector<32x128xf32>
    %cst_52 = arith.constant 9.99999974E-6 : f32
    %130 = vector.broadcast %cst_52 : f32 to vector<32x1xf32>
    %131 = arith.addf %127, %130 : vector<32x1xf32>
    %132 = math.rsqrt %131 : vector<32x1xf32>
    %133 = vector.broadcast %132 : vector<32x1xf32> to vector<32x128xf32>
    %134 = arith.mulf %129, %133 : vector<32x128xf32>
    %135 = vector.broadcast %115 : vector<1x128xf32> to vector<32x128xf32>
    %136 = arith.mulf %134, %135 : vector<32x128xf32>
    %137 = vector.broadcast %116 : vector<1x128xf32> to vector<32x128xf32>
    %138 = arith.addf %136, %137 : vector<32x128xf32>
    %139 = vector.shape_cast %138 : vector<32x128xf32> to vector<2x16x128xf32>
    %c0_53 = arith.constant 0 : index
    %c0_54 = arith.constant 0 : index
    %c0_55 = arith.constant 0 : index
    %140 = vector.load %arg15[%c0_53, %c0_54, %c0_55] : memref<2x16x128xf32, #tpu.memory_space<vmem>>, vector<2x16x128xf32>
    tpu.vector_store %arg15[%c0_53, %c0_54, %c0_55], %139 {strides = array<i32>} : memref<2x16x128xf32, #tpu.memory_space<vmem>>, vector<2x16x128xf32>,
    return
  }
  func.func @transform_0(%arg0: i32) -> (i32, i32, i32) {
    %c0_i32 = arith.constant 0 : i32
    %c0_i32_0 = arith.constant 0 : i32
    %c0_i32_1 = arith.constant 0 : i32
    return %arg0, %c0_i32, %c0_i32_0 : i32, i32, i32
  }
  func.func @transform_1(%arg0: i32) -> (i32, i32) {
    %c0_i32 = arith.constant 0 : i32
    %c0_i32_0 = arith.constant 0 : i32
    %c0_i32_1 = arith.constant 0 : i32
    return %c0_i32, %c0_i32_0 : i32, i32
  }
  func.func @transform_2(%arg0: i32) -> (i32, i32) {
    %c0_i32 = arith.constant 0 : i32
    %c0_i32_0 = arith.constant 0 : i32
    %c0_i32_1 = arith.constant 0 : i32
    return %c0_i32, %c0_i32_0 : i32, i32
  }
  func.func @transform_3(%arg0: i32) -> (i32, i32) {
    %c0_i32 = arith.constant 0 : i32
    %c0_i32_0 = arith.constant 0 : i32
    %c0_i32_1 = arith.constant 0 : i32
    return %c0_i32, %c0_i32_0 : i32, i32
  }
  func.func @transform_4(%arg0: i32) -> (i32, i32) {
    %c0_i32 = arith.constant 0 : i32
    %c0_i32_0 = arith.constant 0 : i32
    %c0_i32_1 = arith.constant 0 : i32
    return %c0_i32, %c0_i32_0 : i32, i32
  }
  func.func @transform_5(%arg0: i32) -> (i32, i32) {
    %c0_i32 = arith.constant 0 : i32
    %c0_i32_0 = arith.constant 0 : i32
    %c0_i32_1 = arith.constant 0 : i32
    return %c0_i32, %c0_i32_0 : i32, i32
  }
  func.func @transform_6(%arg0: i32) -> (i32, i32) {
    %c0_i32 = arith.constant 0 : i32
    %c0_i32_0 = arith.constant 0 : i32
    %c0_i32_1 = arith.constant 0 : i32
    return %c0_i32, %c0_i32_0 : i32, i32
  }
  func.func @transform_7(%arg0: i32) -> (i32, i32) {
    %c0_i32 = arith.constant 0 : i32
    %c0_i32_0 = arith.constant 0 : i32
    %c0_i32_1 = arith.constant 0 : i32
    return %c0_i32, %c0_i32_0 : i32, i32
  }
  func.func @transform_8(%arg0: i32) -> (i32, i32) {
    %c0_i32 = arith.constant 0 : i32
    %c0_i32_0 = arith.constant 0 : i32
    %c0_i32_1 = arith.constant 0 : i32
    return %c0_i32, %c0_i32_0 : i32, i32
  }
  func.func @transform_9(%arg0: i32) -> (i32, i32) {
    %c0_i32 = arith.constant 0 : i32
    %c0_i32_0 = arith.constant 0 : i32
    %c0_i32_1 = arith.constant 0 : i32
    return %c0_i32, %c0_i32_0 : i32, i32
  }
  func.func @transform_10(%arg0: i32) -> (i32, i32) {
    %c0_i32 = arith.constant 0 : i32
    %c0_i32_0 = arith.constant 0 : i32
    %c0_i32_1 = arith.constant 0 : i32
    return %c0_i32, %c0_i32_0 : i32, i32
  }
  func.func @transform_11(%arg0: i32) -> (i32, i32) {
    %c0_i32 = arith.constant 0 : i32
    %c0_i32_0 = arith.constant 0 : i32
    %c0_i32_1 = arith.constant 0 : i32
    return %c0_i32, %c0_i32_0 : i32, i32
  }
  func.func @transform_12(%arg0: i32) -> (i32, i32) {
    %c0_i32 = arith.constant 0 : i32
    %c0_i32_0 = arith.constant 0 : i32
    %c0_i32_1 = arith.constant 0 : i32
    return %c0_i32, %c0_i32_0 : i32, i32
  }
  func.func @transform_13(%arg0: i32) -> (i32, i32) {
    %c0_i32 = arith.constant 0 : i32
    %c0_i32_0 = arith.constant 0 : i32
    %c0_i32_1 = arith.constant 0 : i32
    return %c0_i32, %c0_i32_0 : i32, i32
  }
  func.func @transform_14(%arg0: i32) -> (i32, i32, i32) {
    %c0_i32 = arith.constant 0 : i32
    %c0_i32_0 = arith.constant 0 : i32
    %c0_i32_1 = arith.constant 0 : i32
    return %arg0, %c0_i32, %c0_i32_0 : i32, i32, i32
  }
}

</mosaic_0001>

<bundles_post_ra>
// kernel: gpt_forward.5
= control target key start
LH: loop header
LB: loop body
LE: loop exit
PB: predicated region body
PF: predicated region fallthrough
CT: control target
= control target key end

     0   :  { %s370_s0 = inlined_call_operand.vmem [shape: f32[64,128], index: 0, kind: input, shape index: {}]   ;;  %s371_s1 = inlined_call_operand.vmem [shape: bf16[128,128], index: 1, kind: input, shape index: {}]   ;;  %s372_s2 = inlined_call_operand.vmem [shape: f32[1,128], index: 2, kind: input, shape index: {}]   ;;  %s373_s3 = inlined_call_operand.hbm [shape: f32[64,128], index: 3, kind: output, shape index: {}]  }
   0x1   :  { %v252_v0 = vld [vmem:[%s371_s1] sm:$0xff]   ;;  %v253_v1 = vld [vmem:[%s371_s1 + $0x8] sm:$0xff]   ;;  %v254_v2 = vld [vmem:[%s371_s1 + $0x10] sm:$0xff]  }
   0x2   :  { %209 = vmatprep.subr.bf16.mxu0 %v252_v0  ;;  %233 = vmatprep.subr.bf16.mxu1 %v252_v0  ;;  %v255_v3 = vld [vmem:[%s371_s1 + $0x18] sm:$0xff]   ;;  %v16_v4 = vld [vmem:[%s370_s0] sm:$0xff]  ;;  %v17_v5 = vld [vmem:[%s370_s0 + $0x8] sm:$0xff] }
   0x3   :  { %210 = vmatpush3.bf16.msra.mxu0 %v252_v0  ;;  %241 = vmatpush3.bf16.msra.mxu1 %v252_v0  ;;  %v20_v6 = vld [vmem:[%s370_s0 + $0x20] sm:$0xff]  ;;  %v24_v7 = vpack.c.bf16 %v17_v5, %v16_v4  ;;  %v21_v8 = vld [vmem:[%s370_s0 + $0x28] sm:$0xff] }
   0x4   :  { %211 = vmatprep.subr.bf16.mxu0 %v253_v1  ;;  %234 = vmatprep.subr.bf16.mxu1 %v253_v1  ;;  %v26_v9 = vpack.c.bf16 %v21_v8, %v20_v6 }
   0x7   :  { %212 = vmatpush3.bf16.msra.mxu0 %v253_v1  ;;  %242 = vmatpush3.bf16.msra.mxu1 %v253_v1 }
   0x8   :  { %213 = vmatprep.subr.bf16.mxu0 %v254_v2  ;;  %235 = vmatprep.subr.bf16.mxu1 %v254_v2 }
   0x9   :  { %8 = vsyncpa [#allocation3], 0  ;;  %v256_v10 = vld [vmem:[%s371_s1 + $0x20] sm:$0xff]   ;;  %225 = vmatprep.mubr.bf16.mxu0 %v24_v7  ;;  %229 = vmatprep.mubr.bf16.mxu1 %v26_v9  ;;  %v257_v11 = vld [vmem:[%s371_s1 + $0x28] sm:$0xff]   ;;  %s284_s18 = smov [#allocation2]  }
   0xa   :  { %v258_v12 = vld [vmem:[%s371_s1 + $0x30] sm:$0xff]   ;;  %v259_v13 = vld [vmem:[%s371_s1 + $0x38] sm:$0xff]   ;;  %v188_v20 = vld [vmem:[%s372_s2] ss:$0 sm:$0xff]  ;;  %s177_s19 = sshll.u32 %s284_s18, 4  ;;  %s178_s19 = int_to_ptr.vmem [resolvable:$true] %s177_s19 }
   0xb   :  { %214 = vmatpush3.bf16.msra.mxu0 %v254_v2  ;;  %243 = vmatpush3.bf16.msra.mxu1 %v254_v2  ;;  %v18_v14 = vld [vmem:[%s370_s0 + $0x10] sm:$0xff]  ;;  %v19_v15 = vld [vmem:[%s370_s0 + $0x18] sm:$0xff]  ;;  %p265_p1 = scmp.lt.s32.totalorder %s178_s19, %s178_s19 }
   0xc   :  { %215 = vmatprep.subr.bf16.mxu0 %v255_v3  ;;  %236 = vmatprep.subr.bf16.mxu1 %v255_v3  ;;  %v22_v16 = vld [vmem:[%s370_s0 + $0x30] sm:$0xff]  ;;  %v23_v17 = vld [vmem:[%s370_s0 + $0x38] sm:$0xff]  ;;  %v25_v18 = vpack.c.bf16 %v19_v15, %v18_v14  ;;  %s260_s0 = scalar_lea.vmem %s178_s19, 1024 }
   0xd   :  { %v27_v19 = vpack.c.bf16 %v23_v17, %v22_v16  ;;  %p261_p0 = scmp.ne.s32.totalorder %s178_s19, %s260_s0  ;;  %p266_p2 = scmp.lt.s32.totalorder %s260_s0, %s260_s0 }
   0xf   :  { %216 = vmatpush3.bf16.msra.mxu0 %v255_v3  ;;  %244 = vmatpush3.bf16.msra.mxu1 %v255_v3  ;;  %p267_p3 = por %p266_p2, %p265_p1 }
  0x10   :  { %217 = vmatprep.subr.bf16.mxu0 %v256_v10  ;;  %237 = vmatprep.subr.bf16.mxu1 %v256_v10 }
  0x11   :  { %p268_p4 = pnand %p267_p3, %p261_p0 }
  0x13   :  { %218 = vmatpush3.bf16.msra.mxu0 %v256_v10  ;;  %245 = vmatpush3.bf16.msra.mxu1 %v256_v10 }
  0x14   :  { %219 = vmatprep.subr.bf16.mxu0 %v257_v11  ;;  %238 = vmatprep.subr.bf16.mxu1 %v257_v11 }
  0x17   :  { %220 = vmatpush3.bf16.msra.mxu0 %v257_v11  ;;  %246 = vmatpush3.bf16.msra.mxu1 %v257_v11 }
  0x18   :  { %221 = vmatprep.subr.bf16.mxu0 %v258_v12  ;;  %239 = vmatprep.subr.bf16.mxu1 %v258_v12 }
  0x1b   :  { %222 = vmatpush3.bf16.msra.mxu0 %v258_v12  ;;  %247 = vmatpush3.bf16.msra.mxu1 %v258_v12 }
  0x1c   :  { %223 = vmatprep.subr.bf16.mxu0 %v259_v13  ;;  %240 = vmatprep.subr.bf16.mxu1 %v259_v13 }
  0x1f   :  { %224 = vmatpush3.bf16.msra.mxu0 %v259_v13  ;;  %248 = vmatpush3.bf16.msra.mxu1 %v259_v13 }
  0x22   :  { %226 = vmatmul.mubr.bf16.vlgmr.msra.gmra.mrb[0].mxu0 %v25_v18  ;;  %230 = vmatmul.mubr.bf16.vlgmr.msra.gmra.mrb[0].mxu1 %v27_v19 }
  0xf5   :  { %v227_v21 = vpop.f32.mrb[0].mxu0  ;;  %v231_v22 = vpop.f32.mrb[0].mxu1 }
  0xf6   :  { %v142_v23 = vadd.f32 %v227_v21, %v188_v20  ;;  %v158_v24 = vadd.f32 %v231_v22, %v188_v20  ;;  %v133_v25 = vpop.f32.mrb[1].mxu0  ;;  %v149_v26 = vpop.f32.mrb[1].mxu1 }
  0xf7   :  { %v134_v27 = vadd.f32 %v188_v20, %v133_v25  ;;  %v150_v28 = vadd.f32 %v188_v20, %v149_v26  ;;  %v228_v29 = vpop.f32.mrb[2].mxu0  ;;  %v232_v30 = vpop.f32.mrb[2].mxu1 }
  0xf8   :  { %166 = vst [vmem:[#allocation2 + $0x10] sm:$0xff] %v142_v23  ;;  %170 = vst [vmem:[#allocation2 + $0x30] sm:$0xff] %v158_v24  ;;  %v145_v31 = vadd.f32 %v228_v29, %v188_v20  ;;  %v161_v32 = vadd.f32 %v232_v30, %v188_v20  ;;  %v136_v33 = vpop.f32.mrb[3].mxu0  ;;  %v152_v34 = vpop.f32.mrb[3].mxu1 }
  0xf9   :  { %164 = vst [vmem:[#allocation2] sm:$0xff] %v134_v27  ;;  %168 = vst [vmem:[#allocation2 + $0x20] sm:$0xff] %v150_v28  ;;  %v137_v35 = vadd.f32 %v188_v20, %v136_v33  ;;  %v153_v36 = vadd.f32 %v188_v20, %v152_v34 }
  0xfa   :  { %167 = vst [vmem:[#allocation2 + $0x18] sm:$0xff] %v145_v31  ;;  %171 = vst [vmem:[#allocation2 + $0x38] sm:$0xff] %v161_v32 }
  0xfb   :  { %165 = vst [vmem:[#allocation2 + $0x8] sm:$0xff] %v137_v35  ;;  %169 = vst [vmem:[#allocation2 + $0x28] sm:$0xff] %v153_v36 }
  0xfc   :  { %271 = shalt.err (!%p268_p4)
}
  0xfd   :  { %s272_s21 = scalar_lea.hbm %s373_s3, 1024 }
  0xfe   :  { %p273_p5 = scmp.ne.s32.totalorder %s373_s3, %s272_s21  ;;  %p276_p6 = scmp.lt.u32.totalorder %s272_s21, %s373_s3 }
 0x100   :  { %p278_p7 = pnand %p276_p6, %p273_p5 }
 0x102   :  { %281 = shalt.err (!%p278_p7)
}
 0x103   :  { %s285_s26 = smov 128   ;;  %s286_s27 = smov 8  }
 0x104   :  { %183 = dma.vmem_to_hbm [thread:$0]  %s178_s19, 1024, %s373_s3, [#allocation3], %s285_s26, %s285_s26, %s286_s27  }
 0x105   :  { %282 = dma.done.wait [#allocation3], 1024  }
 0x106   :  { %283 = vsyncadd [#allocation3], 4294966272 }
 0x107   :  { %187 = vsyncpa [#allocation3], 1 }

// kernel: gpt_forward.3
= control target key start
LH: loop header
LB: loop body
LE: loop exit
PB: predicated region body
PF: predicated region fallthrough
CT: control target
= control target key end

     0   :  { %19 = vsyncpa [#allocation3], 0  ;;  %s7332_s0 = inlined_call_operand.vmem [shape: f32[4,16,128], index: 0, kind: input, shape index: {}]   ;;  %s7333_s1 = inlined_call_operand.vmem [shape: bf16[128,384], index: 1, kind: input, shape index: {}]   ;;  %s7334_s2 = inlined_call_operand.vmem [shape: bf16[128,128], index: 2, kind: input, shape index: {}]   ;;  %s7335_s3 = inlined_call_operand.hbm [shape: f32[1,128], index: 3, kind: input, shape index: {}]   ;;  %s7336_s4 = inlined_call_operand.vmem [shape: bf16[128,512], index: 4, kind: input, shape index: {}]   ;;  %s7337_s5 = inlined_call_operand.hbm [shape: f32[1,512], index: 5, kind: input, shape index: {}]   ;;  %s7338_s6 = inlined_call_operand.vmem [shape: bf16[512,128], index: 6, kind: input, shape index: {}]   ;;  %s7339_s7 = inlined_call_operand.hbm [shape: f32[1,128], index: 7, kind: input, shape index: {}]   ;;  %s7340_s8 = inlined_call_operand.hbm [shape: f32[1,128], index: 8, kind: input, shape index: {}]   ;;  %s7341_s9 = inlined_call_operand.hbm [shape: f32[1,128], index: 9, kind: input, shape index: {}]   ;;  %s7342_s10 = inlined_call_operand.hbm [shape: f32[1,128], index: 10, kind: input, shape index: {}]   ;;  %s7343_s11 = inlined_call_operand.hbm [shape: f32[1,128], index: 11, kind: input, shape index: {}]   ;;  %s7344_s12 = inlined_call_operand.vmem [shape: f32[1,128], index: 12, kind: input, shape index: {}]   ;;  %s7345_s13 = inlined_call_operand.vmem [shape: f32[1,128], index: 13, kind: input, shape index: {}]   ;;  %s7346_s14 = inlined_call_operand.vmem [shape: f32[4,16,128], index: 14, kind: output, shape index: {}]  }
   0x1   :  { %20 = vsyncpa [#allocation5], 0 }
   0x2   :  { %21 = vsyncpa [#allocation8], 0 }
   0x3   :  { %22 = vsyncpa [#allocation11], 0  ;;  %s6061_s29 = smov 0  }
   0x4 LB: > { %s5970_s12 = smov [#allocation4]   ;;  %s7347_s30 = sadd.s32 4294967295, %s5968_s29   ;;  %s5968_s29 = sphi %s6061_s29, %s28_s29  }
   0x5   : > { %s391_s13 = sshll.u32 %s5970_s12, 4  ;;  %p5037_p0 = scmp.ge.s32.totalorder %s5968_s29, 1  ;;  %s6075_s13 = int_to_ptr.vmem [resolvable:$true] %s391_s13 }
   0x6   : > { %p358_p1 = scmp.lt.s32.totalorder %s5968_s29, 3  ;;  %p6071_p2 = scmp.eq.s32.totalorder %s7347_s30, 0 }
   0x7   : > { %s5971_s17 = smov [#allocation7]   ;;  %s5972_s19 = smov [#allocation10]  }
   0x8   : > { %s7351_s15 = scalar_select %p6071_p2, 1, 0 }
   0x9   : > { %p6077_p3 = pnand %p5037_p0, %p358_p1  ;;  %s416_s18 = sshll.u32 %s5971_s17, 4  ;;  %s6083_s18 = int_to_ptr.vmem [resolvable:$true] %s416_s18 }
   0xa   : > { %s438_s20 = sshll.u32 %s5972_s19, 4  ;;  %s5973_s22 = smov [#allocation2]   ;;  %s6091_s20 = int_to_ptr.vmem [resolvable:$true] %s438_s20 }
   0xb   : > { %s7352_s16 = scalar_select %p6077_p3, 1, 0 }
   0xc   : > { %p5486_p4 = pneg %p6077_p3  ;;  %s377_s23 = sshll.u32 %s5973_s22, 4  ;;  %s6093_s23 = int_to_ptr.vmem [resolvable:$true] %s377_s23 }
   0xd   : > { %s5750_s26 = scalar_lea.hbm %s7337_s5, 64 }
   0xe   : > { %p6087_p5 = pnand %p6071_p2, %p5486_p4  ;;  %p5751_p6 = scmp.ne.s32.totalorder %s7337_s5, %s5750_s26 }
   0xf   : > { %p5757_p10 = scmp.lt.u32.totalorder %s5750_s26, %s7337_s5 }
  0x10   : > { %p6103_p7 = pneg %p6087_p5 }
  0x12   : > { %p5753_p8 = pnand %p6103_p7, %p5751_p6 }
  0x14   : > { %p5754_p9 = pneg %p5753_p8 }
  0x16   : > { %p5759_p11 = pnand %p5757_p10, %p5754_p9 }
  0x18   : > { %5762 = shalt.err (!%p5759_p11)
}
  0x19   : > { %s5763_s22 = scalar_lea.vmem %s6075_s13, 64  ;;  %p5771_p1 = scmp.lt.s32.totalorder %s6075_s13, %s6075_s13 }
  0x1a   : > { %p5764_p12 = scmp.ne.s32.totalorder %s6075_s13, %s5763_s22  ;;  %p5772_p4 = scmp.lt.s32.totalorder %s5763_s22, %s5763_s22 }
  0x1c   : > { %p5766_p13 = pnand %p5764_p12, %p6103_p7  ;;  %p5773_p6 = por %p5772_p4, %p5771_p1 }
  0x1e   : > { %p5767_p0 = pneg %p5766_p13 }
  0x20   : > { %p5774_p8 = pnand %p5773_p6, %p5767_p0 }
  0x22   : > { %5777 = shalt.err (!%p5774_p8)
}
  0x23   : > { %5492 = dma.hbm_to_vmem [thread:$0]  (!%p6087_p5), %s7337_s5, 64, %s6075_s13, [#allocation5]  }
  0x24   : > { %s5778_s28 = scalar_lea.hbm %s7340_s8, 16 }
  0x25   : > { %p5779_p9 = scmp.ne.s32.totalorder %s7340_s8, %s5778_s28  ;;  %p5785_p12 = scmp.lt.u32.totalorder %s5778_s28, %s7340_s8 }
  0x27   : > { %p5781_p10 = pnand %p5779_p9, %p6103_p7 }
  0x29   : > { %p5782_p11 = pneg %p5781_p10 }
  0x2b   : > { %p5787_p13 = pnand %p5785_p12, %p5782_p11 }
  0x2d   : > { %5790 = shalt.err (!%p5787_p13)
}
  0x2e   : > { %s5791_s13 = scalar_lea.vmem %s6083_s18, 16  ;;  %s5798_s24 = scalar_lea.vmem %s6083_s18, 32 }
  0x2f   : > { %p5792_p0 = scmp.ne.s32.totalorder %s6083_s18, %s5791_s13  ;;  %p5799_p6 = scmp.lt.s32.totalorder %s6083_s18, %s6083_s18 }
  0x30   : > { %p5800_p8 = scmp.lt.s32.totalorder %s5798_s24, %s5791_s13 }
  0x31   : > { %p5794_p1 = pnand %p5792_p0, %p6103_p7 }
  0x32   : > { %p5801_p9 = por %p5800_p8, %p5799_p6 }
  0x33   : > { %p5795_p4 = pneg %p5794_p1 }
  0x35   : > { %p5802_p10 = pnand %p5801_p9, %p5795_p4 }
  0x37   : > { %5805 = shalt.err (!%p5802_p10)
}
  0x38   : > { %5498 = dma.hbm_to_vmem [thread:$0]  (!%p6087_p5), %s7340_s8, 16, %s6083_s18, [#allocation8]  }
  0x39   : > { %s5806_s28 = scalar_lea.hbm %s7342_s10, 16 }
  0x3a   : > { %p5807_p11 = scmp.ne.s32.totalorder %s7342_s10, %s5806_s28  ;;  %p5813_p0 = scmp.lt.u32.totalorder %s5806_s28, %s7342_s10 }
  0x3c   : > { %p5809_p12 = pnand %p5807_p11, %p6103_p7 }
  0x3e   : > { %p5810_p13 = pneg %p5809_p12 }
  0x40   : > { %p5815_p1 = pnand %p5813_p0, %p5810_p13 }
  0x42   : > { %5818 = shalt.err (!%p5815_p1)
}
  0x43   : > { %s5819_s18 = scalar_lea.vmem %s6091_s20, 16  ;;  %s5826_s24 = scalar_lea.vmem %s6091_s20, 32 }
  0x44   : > { %p5820_p4 = scmp.ne.s32.totalorder %s6091_s20, %s5819_s18  ;;  %p5827_p9 = scmp.lt.s32.totalorder %s6091_s20, %s6091_s20 }
  0x45   : > { %p5828_p10 = scmp.lt.s32.totalorder %s5826_s24, %s5819_s18 }
  0x46   : > { %p5822_p6 = pnand %p5820_p4, %p6103_p7 }
  0x47   : > { %p5829_p11 = por %p5828_p10, %p5827_p9 }
  0x48   : > { %p5823_p8 = pneg %p5822_p6 }
  0x4a   : > { %p5830_p12 = pnand %p5829_p11, %p5823_p8 }
  0x4c   : > { %5833 = shalt.err (!%p5830_p12)
}
  0x4d   : > { %5504 = dma.hbm_to_vmem [thread:$0]  (!%p6087_p5), %s7342_s10, 16, %s6091_s20, [#allocation11]  }
  0x4e   : > { %s5834_s28 = scalar_lea.hbm %s7335_s3, 16 }
  0x4f   : > { %p5835_p13 = scmp.ne.s32.totalorder %s7335_s3, %s5834_s28  ;;  %p5841_p4 = scmp.lt.u32.totalorder %s5834_s28, %s7335_s3 }
  0x51   : > { %p5837_p0 = pnand %p5835_p13, %p6103_p7 }
  0x53   : > { %p5838_p1 = pneg %p5837_p0 }
  0x55   : > { %p5843_p6 = pnand %p5841_p4, %p5838_p1 }
  0x57   : > { %5846 = shalt.err (!%p5843_p6)
}
  0x58   : > { %s5847_s20 = scalar_lea.vmem %s6093_s23, 16  ;;  %s5854_s18 = scalar_lea.vmem %s6093_s23, 32 }
  0x59   : > { %p5848_p8 = scmp.ne.s32.totalorder %s6093_s23, %s5847_s20  ;;  %p5855_p11 = scmp.lt.s32.totalorder %s6093_s23, %s6093_s23 }
  0x5a   : > { %p5856_p12 = scmp.lt.s32.totalorder %s5854_s18, %s5847_s20 }
  0x5b   : > { %p5850_p9 = pnand %p5848_p8, %p6103_p7 }
  0x5c   : > { %p5857_p13 = por %p5856_p12, %p5855_p11 }
  0x5d   : > { %p5851_p10 = pneg %p5850_p9 }
  0x5f   : > { %p5858_p0 = pnand %p5857_p13, %p5851_p10 }
  0x61   : > { %5861 = shalt.err (!%p5858_p0)
}
  0x62   : > { %5489 = dma.hbm_to_vmem [thread:$0]  (!%p6087_p5), %s7335_s3, 16, %s6093_s23, [#allocation3]  }
  0x63   : > { %s5974_s25 = smov [#allocation6]   ;;  %s5975_s27 = smov [#allocation9]  }
  0x64   : > { %s405_s26 = sshll.u32 %s5974_s25, 4  ;;  %s427_s28 = sshll.u32 %s5975_s27, 4  ;;  %s406_s26 = int_to_ptr.vmem [resolvable:$true] %s405_s26  ;;  %s428_s28 = int_to_ptr.vmem [resolvable:$true] %s427_s28 }
  0x65   : > { %s5862_s22 = scalar_lea.hbm %s7339_s7, 16 }
  0x66   : > { %p5863_p1 = scmp.ne.s32.totalorder %s7339_s7, %s5862_s22  ;;  %p5869_p8 = scmp.lt.u32.totalorder %s5862_s22, %s7339_s7 }
  0x68   : > { %p5865_p4 = pnand %p5863_p1, %p6103_p7 }
  0x6a   : > { %p5866_p6 = pneg %p5865_p4 }
  0x6c   : > { %p5871_p9 = pnand %p5869_p8, %p5866_p6 }
  0x6e   : > { %5874 = shalt.err (!%p5871_p9)
}
  0x6f   : > { %s5875_s23 = scalar_lea.vmem %s406_s26, 16  ;;  %s5882_s30 = scalar_lea.vmem %s406_s26, 32 }
  0x70   : > { %p5876_p10 = scmp.ne.s32.totalorder %s406_s26, %s5875_s23  ;;  %p5883_p13 = scmp.lt.s32.totalorder %s406_s26, %s406_s26 }
  0x71   : > { %p5884_p0 = scmp.lt.s32.totalorder %s5882_s30, %s5875_s23 }
  0x72   : > { %p5878_p11 = pnand %p5876_p10, %p6103_p7 }
  0x73   : > { %p5885_p2 = por %p5884_p0, %p5883_p13 }
  0x74   : > { %p5879_p12 = pneg %p5878_p11 }
  0x76   : > { %p5886_p3 = pnand %p5885_p2, %p5879_p12 }
  0x78   : > { %5889 = shalt.err (!%p5886_p3)
}
  0x79   : > { %5495 = dma.hbm_to_vmem [thread:$0]  (!%p6087_p5), %s7339_s7, 16, %s406_s26, [#allocation5]  }
  0x7a   : > { %s5890_s22 = scalar_lea.hbm %s7341_s9, 16 }
  0x7b   : > { %p5891_p1 = scmp.ne.s32.totalorder %s7341_s9, %s5890_s22  ;;  %p5897_p3 = scmp.lt.u32.totalorder %s5890_s22, %s7341_s9 }
  0x7d   : > { %p5893_p4 = pnand %p5891_p1, %p6103_p7 }
  0x7f   : > { %p5894_p2 = pneg %p5893_p4 }
  0x81   : > { %p5899_p6 = pnand %p5897_p3, %p5894_p2 }
  0x83   : > { %5902 = shalt.err (!%p5899_p6)
}
  0x84   : > { %s5903_s23 = scalar_lea.vmem %s428_s28, 16  ;;  %s5910_s26 = scalar_lea.vmem %s428_s28, 32 }
  0x85   : > { %p5904_p8 = scmp.ne.s32.totalorder %s428_s28, %s5903_s23  ;;  %p5911_p11 = scmp.lt.s32.totalorder %s428_s28, %s428_s28 }
  0x86   : > { %p5912_p12 = scmp.lt.s32.totalorder %s5910_s26, %s5903_s23 }
  0x87   : > { %p5906_p9 = pnand %p5904_p8, %p6103_p7 }
  0x88   : > { %p5913_p13 = por %p5912_p12, %p5911_p11 }
  0x89   : > { %p5907_p10 = pneg %p5906_p9 }
  0x8b   : > { %p5914_p0 = pnand %p5913_p13, %p5907_p10 }
  0x8d   : > { %5917 = shalt.err (!%p5914_p0)
}
  0x8e   : > { %5501 = dma.hbm_to_vmem [thread:$0]  (!%p6087_p5), %s7341_s9, 16, %s428_s28, [#allocation8]  }
  0x8f   : > { %s5976_s27 = smov [#allocation12]   ;;  %s5918_s13 = scalar_lea.hbm %s7343_s11, 16 }
  0x90   : > { %s449_s17 = sshll.u32 %s5976_s27, 4  ;;  %p5919_p1 = scmp.ne.s32.totalorder %s7343_s11, %s5918_s13  ;;  %s450_s17 = int_to_ptr.vmem [resolvable:$true] %s449_s17 }
  0x91   : > { %p5925_p3 = scmp.lt.u32.totalorder %s5918_s13, %s7343_s11 }
  0x92   : > { %p5921_p4 = pnand %p5919_p1, %p6103_p7 }
  0x94   : > { %p5922_p2 = pneg %p5921_p4 }
  0x96   : > { %p5927_p6 = pnand %p5925_p3, %p5922_p2 }
  0x98   : > { %5930 = shalt.err (!%p5927_p6)
}
  0x99   : > { %s5931_s28 = scalar_lea.vmem %s450_s17, 16  ;;  %s5938_s26 = scalar_lea.vmem %s450_s17, 32 }
  0x9a   : > { %p5932_p8 = scmp.ne.s32.totalorder %s450_s17, %s5931_s28  ;;  %p5939_p11 = scmp.lt.s32.totalorder %s450_s17, %s450_s17 }
  0x9b   : > { %p5940_p12 = scmp.lt.s32.totalorder %s5938_s26, %s5931_s28 }
  0x9c   : > { %p5934_p9 = pnand %p5932_p8, %p6103_p7 }
  0x9d   : > { %p5941_p13 = por %p5940_p12, %p5939_p11 }
  0x9e   : > { %p5935_p10 = pneg %p5934_p9 }
  0xa0   : > { %p5942_p0 = pnand %p5941_p13, %p5935_p10 }
  0xa2   : > { %5945 = shalt.err (!%p5942_p0)
}
  0xa3   : > { %5507 = dma.hbm_to_vmem [thread:$0]  (!%p6087_p5), %s7343_s11, 16, %s450_s17, [#allocation11]  }
  0xa4   : > { %p7355_p1 = scmp.ne.s32.totalorder %s7352_s16, 0 }
  0xa5   : > { %p7356_p4 = scmp.ne.s32.totalorder (!%p7355_p1), %s7351_s15, 0 }
  0xa6   : > { %478 = sbr.rel (%p7355_p1) target bundleno = 2896 (0xb50), region = 76 }
  0xad   : > { %5951 = dma.done.wait (%p7356_p4), [#allocation3], 16  }
  0xae   : > { %5953 = vsyncadd (%p7356_p4), [#allocation3], 4294967280 }
  0xaf   : > { %5955 = dma.done.wait (%p7356_p4), [#allocation5], 80  }
  0xb0   : > { %5957 = vsyncadd (%p7356_p4), [#allocation5], 4294967216 }
  0xb1   : > { %5959 = dma.done.wait (%p7356_p4), [#allocation8], 32  }
  0xb2   : > { %5961 = vsyncadd (%p7356_p4), [#allocation8], 4294967264 }
  0xb3   : > { %5963 = dma.done.wait (%p7356_p4), [#allocation11], 32  }
  0xb4   : > { %5965 = vsyncadd (%p7356_p4), [#allocation11], 4294967264  ;;  %s7357_s16 = sadd.s32 4294967295, %s5968_s29   ;;  %v5977_v0 = vmov 0   ;;  %v5546_v1 = vld [vmem:[%s7333_s1 + $0x4] ss:$12 sps:$4 sm:$0xff]   ;;  %v891_v46 = vlaneseq }
  0xb5   : > { %s5054_s21 = sshll.u32 %s7357_s16, 1  ;;  %763 = vmatprep.mubr.bf16.mxu0 %v5977_v0  ;;  %v5548_v2 = vld [vmem:[%s7333_s1] ss:$12 sps:$4 sm:$0xff]   ;;  %731 = vmatprep.subr.bf16.mxu0 %v5546_v1  ;;  %v5549_v3 = vld [vmem:[%s7333_s1 + $0x1c] ss:$12 sps:$4 sm:$0xff]   ;;  %s5978_s30 = smov 64   ;;  %v6401_v54 = vpack.i.b16 %v5977_v0, %v5977_v0 }
  0xb6   : > { %p551_p5 = scmp.lt.s32.totalorder %s5054_s21, 3  ;;  %732 = vmatpush1.bf16.msra.mxu0 %v5548_v2  ;;  %v5551_v4 = vld [vmem:[%s7333_s1 + $0x18] ss:$12 sps:$4 sm:$0xff]   ;;  %v5552_v5 = vld [vmem:[%s7333_s1 + $0x34] ss:$12 sps:$4 sm:$0xff]   ;;  %s5979_s25 = smov 96  }
  0xb7   : > { %733 = vmatprep.subr.bf16.mxu0 %v5549_v3  ;;  %v5554_v6 = vld [vmem:[%s7333_s1 + $0x30] ss:$12 sps:$4 sm:$0xff]   ;;  %v5555_v7 = vld [vmem:[%s7333_s1 + $0x4c] ss:$12 sps:$4 sm:$0xff]   ;;  %v5557_v9 = vld [vmem:[%s7333_s1 + $0x48] ss:$12 sps:$4 sm:$0xff]  }
  0xb8   : > { %s7359_s21 = smov (!%p551_p5, %s5054_s21), 3  ;;  %v5558_v10 = vld [vmem:[%s7333_s1 + $0x64] ss:$12 sps:$4 sm:$0xff]   ;;  %v5560_v13 = vld [vmem:[%s7333_s1 + $0x60] ss:$12 sps:$4 sm:$0xff]   ;;  %s5980_s12 = smov 32  }
  0xb9   : > { %s5212_s23 = sshll.u32 %s7359_s21, 4  ;;  %v5561_v14 = vld [vmem:[%s7333_s1 + $0x7c] ss:$12 sps:$4 sm:$0xff]   ;;  %v5563_v15 = vld [vmem:[%s7333_s1 + $0x78] ss:$12 sps:$4 sm:$0xff]   ;;  %v5981_v43 = vmov 0.0  }
  0xba   : > { %734 = vmatpush1.bf16.msra.mxu0 %v5551_v4  ;;  %s6297_s16 = scalar_lea.vmem %s7332_s0, %s5212_s23  ;;  %v5564_v16 = vld [vmem:[%s7333_s1 + $0x94] ss:$12 sps:$4 sm:$0xff]   ;;  %v5566_v17 = vld [vmem:[%s7333_s1 + $0x90] ss:$12 sps:$4 sm:$0xff]   ;;  %v5567_v18 = vld [vmem:[%s7333_s1 + $0xac] ss:$12 sps:$4 sm:$0xff]   ;;  %s562_s26 = scalar_lea.vmem %s7346_s14, %s5212_s23 }
  0xbb   : > { %735 = vmatprep.subr.bf16.mxu0 %v5552_v5  ;;  %v565_v8 = vld [vmem:[%s6297_s16] sm:$0xff]  ;;  %v566_v11 = vld [vmem:[%s6297_s16 + $0x8] sm:$0xff]  ;;  %v567_v20 = vld [vmem:[%s6297_s16 + $0x10] sm:$0xff]  ;;  %vm5982_vm0 = vmmov 0   ;;  %v5983_v44 = vmov 1983009808  }
  0xbc   : > { %v569_v12 = vpack.c.bf16 %v566_v11, %v565_v8  ;;  %v5569_v19 = vld [vmem:[%s7333_s1 + $0xa8] ss:$12 sps:$4 sm:$0xff]   ;;  %v568_v21 = vld [vmem:[%s6297_s16 + $0x18] sm:$0xff]  ;;  %v5571_v24 = vld [vmem:[%s7333_s1 + $0x20] ss:$12 sps:$4 sm:$0xff]   ;;  %v889_v45 = vunpack.c.l.s4 %v5983_v44  ;;  %v6397_v50 = vshrl.u32 %v891_v46, 7 }
  0xbd   : > { %v570_v22 = vpack.c.bf16 %v568_v21, %v567_v20  ;;  %v5570_v23 = vld [vmem:[%s7333_s1 + $0x8] ss:$12 sps:$4 sm:$0xff]   ;;  %v5572_v25 = vld [vmem:[%s7333_s1 + $0x38] ss:$12 sps:$4 sm:$0xff]   ;;  %v5573_v37 = vld [vmem:[%s7333_s1 + $0x50] ss:$12 sps:$4 sm:$0xff]  }
  0xbe   : > { %736 = vmatpush1.bf16.msra.mxu0 %v5554_v6  ;;  %5338 = vmatprep.mubr.bf16.mxu1 %v569_v12  ;;  %v5574_v39 = vld [vmem:[%s7333_s1 + $0x68] ss:$12 sps:$4 sm:$0xff]   ;;  %v5575_v40 = vld [vmem:[%s7333_s1 + $0x80] ss:$12 sps:$4 sm:$0xff]   ;;  %v5576_v41 = vld [vmem:[%s7333_s1 + $0x98] ss:$12 sps:$4 sm:$0xff]   ;;  %v890_v49 = vunpack.c.0.s8 %v889_v45 }
  0xbf   : > { %737 = vmatprep.subr.bf16.mxu0 %v5555_v7  ;;  %5322 = vmatprep.subr.bf16.mxu1 %v5570_v23  ;;  %v5577_v42 = vld [vmem:[%s7333_s1 + $0xb0] ss:$12 sps:$4 sm:$0xff]   ;;  %v5984_v52 = vmov 1934713408   ;;  %vm2464_vm1 = vcmask 261120   ;;  %vm2841_vm4 = vcmask 130048  }
  0xc0   : > { %5323 = vmatpush3.bf16.msra.mxu1 %v5570_v23  ;;  %v920_v53 = vunpack.c.l.s4 %v5984_v52  ;;  %v6406_v59 = vsub.s32 %v890_v49, %v6397_v50  ;;  %vm3924_vm5 = vcmask 523264   ;;  %vm3929_vm6 = vcmask 785408  }
  0xc1   : > { %5324 = vmatprep.subr.bf16.mxu1 %v5571_v24 }
  0xc2   : > { %738 = vmatpush1.bf16.msra.mxu0 %v5557_v9  ;;  %v921_v61 = vunpack.c.0.s8 %v920_v53 }
  0xc3   : > { %739 = vmatprep.subr.bf16.mxu0 %v5558_v10 }
  0xc4   : > { %5325 = vmatpush3.bf16.msra.mxu1 %v5571_v24  ;;  %v6413_v8 = vsub.s32 %v921_v61, %v6397_v50 }
  0xc5   : > { %5326 = vmatprep.subr.bf16.mxu1 %v5572_v25 }
  0xc6   : > { %740 = vmatpush1.bf16.msra.mxu0 %v5560_v13 }
  0xc7   : > { %741 = vmatprep.subr.bf16.mxu0 %v5561_v14 }
  0xc8   : > { %5327 = vmatpush3.bf16.msra.mxu1 %v5572_v25 }
  0xc9   : > { %5328 = vmatprep.subr.bf16.mxu1 %v5573_v37 }
  0xca   : > { %742 = vmatpush1.bf16.msra.mxu0 %v5563_v15 }
  0xcb   : > { %743 = vmatprep.subr.bf16.mxu0 %v5564_v16 }
  0xcc   : > { %5329 = vmatpush3.bf16.msra.mxu1 %v5573_v37 }
  0xcd   : > { %5330 = vmatprep.subr.bf16.mxu1 %v5574_v39 }
  0xce   : > { %744 = vmatpush1.bf16.msra.mxu0 %v5566_v17 }
  0xcf   : > { %745 = vmatprep.subr.bf16.mxu0 %v5567_v18 }
  0xd0   : > { %5331 = vmatpush3.bf16.msra.mxu1 %v5574_v39 }
  0xd1   : > { %5332 = vmatprep.subr.bf16.mxu1 %v5575_v40 }
  0xd2   : > { %746 = vmatpush1.bf16.msra.mxu0 %v5569_v19 }
  0xd3   : > { %5342 = vmatprep.subr.bf16.mxu0 %v5981_v43 }
  0xd4   : > { %5333 = vmatpush3.bf16.msra.mxu1 %v5575_v40 }
  0xd5   : > { %764 = vmatmul.mubr.bf16.vlgmr.msra.gmra.mrb[0].mxu0 %v569_v12  ;;  %5334 = vmatprep.subr.bf16.mxu1 %v5576_v41 }
  0xd6   : > { %773 = vmatprep.mubr.bf16.mxu0 %v5977_v0 }
  0xd8   : > { %5335 = vmatpush3.bf16.msra.mxu1 %v5576_v41 }
  0xd9   : > { %5336 = vmatprep.subr.bf16.mxu1 %v5577_v42 }
  0xdc   : > { %5337 = vmatpush3.bf16.msra.mxu1 %v5577_v42 }
  0xdd   : > { %774 = vmatmul.mubr.bf16.gmra.mrb[4].mxu0 %v570_v22  ;;  %5354 = vmatprep.subr.bf16.mxu1 %v5981_v43 }
  0xde   : > { %5344 = vmatprep.mubr.msk.bf16.mxu0 %vm5982_vm0, %v5981_v43 }
  0xdf   : > { %5339 = vmatmul.mubr.bf16.vlgmr.msra.gmra.mrb[0].mxu1 %v570_v22 }
  0xe0   : > { %5356 = vmatprep.mubr.msk.bf16.mxu1 %vm5982_vm0, %v5981_v43 }
 0x1a8   : > { %v765_v26 = vpop.f32.mrb[0].mxu0 }
 0x1a9   : > { %v767_v27 = vpop.f32.mrb[1].mxu0 }
 0x1aa   : > { %v769_v28 = vpop.f32.mrb[2].mxu0 }
 0x1ab   : > { %v6343_v29 = vpack.c.bf16 %v769_v28, %v765_v26  ;;  %v771_v30 = vpop.f32.mrb[3].mxu0 }
 0x1ac   : > { %v6345_v31 = vpack.c.bf16 %v771_v30, %v767_v27 }
 0x1ad   : > { %841 = vrot.lane.b32.xlu0 %v6343_v29, %s5978_s30  ;;  %837 = vrot.lane.b32.xlu1 %v6343_v29, %s5979_s25  ;;  %v853_v56 = vshrl.u32 %v6343_v29, 16 }
 0x1ae   : > { %v1395_v7 = vshrl.u32 %v6345_v31, 16 }
 0x1b0   : > { %v775_v32 = vpop.f32.mrb[4].mxu0 }
 0x1b1   : > { %1387 = vrot.lane.b32.xlu1 %v6345_v31, %s5980_s12  ;;  %1379 = vrot.lane.b32.xlu0 %v6345_v31, %s5979_s25  ;;  %v777_v33 = vpop.f32.mrb[5].mxu0 }
 0x1b2   : > { %v779_v34 = vpop.f32.mrb[6].mxu0 }
 0x1b3   : > { %v6355_v35 = vpack.c.bf16 %v779_v34, %v775_v32  ;;  %v781_v36 = vpop.f32.mrb[7].mxu0 }
 0x1b4   : > { %v6360_v38 = vpack.c.bf16 %v781_v36, %v777_v33 }
 0x1b5   : > { %845 = vrot.lane.b32.xlu1 %v6343_v29, %s5980_s12  ;;  %1383 = vrot.lane.b32.xlu0 %v6345_v31, %s5978_s30 }
 0x1b9   : > { %1385 = vrot.lane.b32.xlu1 %v6360_v38, %s5978_s30  ;;  %1381 = vrot.lane.b32.xlu0 %v6360_v38, %s5979_s25 }
 0x1bd   : > { %839 = vrot.lane.b32.xlu1 %v6355_v35, %s5979_s25  ;;  %1389 = vrot.lane.b32.xlu0 %v6360_v38, %s5980_s12 }
 0x1c1   : > { %847 = vrot.lane.b32.xlu1 %v6355_v35, %s5980_s12  ;;  %843 = vrot.lane.b32.xlu0 %v6355_v35, %s5978_s30 }
 0x21f   : > { %v842_v47 = vpop.permute.xlu0 %841  ;;  %v838_v48 = vpop.permute.xlu1 %837 }
 0x220   : > { %v854_v51 = vshrl.u32 %v838_v48, 16  ;;  %v851_v55 = vpack.i.b16 %v838_v48, %v6343_v29  ;;  %v861_v1 = vshrl.u32 %v842_v47, 16 }
 0x222   : > { %v855_v60 = vpack.i.b16 %v854_v51, %v853_v56  ;;  %v887_v62 = vcombine.high %v851_v55, %v6401_v54  ;;  %v894_v5 = vrot.slane %v851_v55, %v6406_v59 }
 0x223   : > { %v1388_v57 = vpop.permute.xlu1 %1387  ;;  %v1380_v58 = vpop.permute.xlu0 %1379 }
 0x224   : > { %v953_v6 = vcombine.high %v855_v60, %v6401_v54  ;;  %v901_v9 = vrot.slane %v887_v62, %v6406_v59  ;;  %v960_v13 = vrot.slane %v855_v60, %v6406_v59  ;;  %v1404_v14 = vshrl.u32 %v1388_v57, 16 }
 0x225   : > { %v1393_v15 = vpack.i.b16 %v1380_v58, %v6345_v31  ;;  %v1396_v22 = vshrl.u32 %v1380_v58, 16 }
 0x226   : > { %v967_v21 = vrot.slane %v953_v6, %v6406_v59 }
 0x227   : > { %v846_v63 = vpop.permute.xlu1 %845  ;;  %v1384_v4 = vpop.permute.xlu0 %1383  ;;  %v1430_v44 = vrot.slane %v1393_v15, %v6406_v59  ;;  %v1397_v55 = vpack.i.b16 %v1396_v22, %v1395_v7 }
 0x228   : > { %v859_v2 = vpack.i.b16 %v846_v63, %v842_v47  ;;  %v862_v3 = vshrl.u32 %v846_v63, 16  ;;  %v1401_v16 = vpack.i.b16 %v1388_v57, %v1384_v4  ;;  %v1403_v24 = vshrl.u32 %v1384_v4, 16 }
 0x229   : > { %v1423_v57 = vcombine.high %v1393_v15, %v6401_v54 }
 0x22a   : > { %v863_v10 = vpack.i.b16 %v862_v3, %v861_v1  ;;  %v902_v11 = vcombine.high %v859_v2, %v6401_v54  ;;  %v909_v12 = vrot.slane %v859_v2, %v6406_v59  ;;  %v1445_v32 = vrot.slane %v1401_v16, %v6406_v59 }
 0x22b   : > { %v1438_v48 = vcombine.high %v1401_v16, %v6401_v54  ;;  %v1405_v56 = vpack.i.b16 %v1404_v14, %v1403_v24  ;;  %v1382_v7 = vpop.permute.xlu0 %1381  ;;  %v1386_v14 = vpop.permute.xlu1 %1385 }
 0x22c   : > { %v916_v17 = vrot.slane %v902_v11, %v6406_v59  ;;  %v917_v18 = vcombine.low %v894_v5, %v909_v12  ;;  %v918_v19 = vcombine.high %v894_v5, %v909_v12  ;;  %v968_v20 = vcombine.high %v863_v10, %v6401_v54 }
 0x22d   : > { %v975_v23 = vrot.slane %v863_v10, %v6406_v59  ;;  %v1453_v61 = vcombine.low %v1430_v44, %v1445_v32  ;;  %v1452_v5 = vrot.slane %v1438_v48, %v6406_v59  ;;  %v1454_v6 = vcombine.high %v1430_v44, %v1445_v32 }
 0x22e   : > { %v925_v25 = vrot.slane %v917_v18, %v6413_v8  ;;  %v932_v26 = vrot.slane %v918_v19, %v6413_v8  ;;  %v933_v27 = vcombine.low %v901_v9, %v916_v17  ;;  %v934_v28 = vcombine.high %v901_v9, %v916_v17 }
 0x22f   : > { %v982_v29 = vrot.slane %v968_v20, %v6406_v59  ;;  %v983_v30 = vcombine.low %v960_v13, %v975_v23  ;;  %v984_v31 = vcombine.high %v960_v13, %v975_v23  ;;  %v1504_v9 = vcombine.high %v1405_v56, %v6401_v54 }
 0x230   : > { %v941_v33 = vrot.slane %v933_v27, %v6413_v8  ;;  %v948_v34 = vrot.slane %v934_v28, %v6413_v8  ;;  %v1151_v36 = vcombine.low %v925_v25, %v932_v26  ;;  %v5084_v37 = vcombine.high %v925_v25, %v932_v26 }
 0x231   : > { %v991_v39 = vrot.slane %v983_v30, %v6413_v8  ;;  %v998_v40 = vrot.slane %v984_v31, %v6413_v8  ;;  %v999_v41 = vcombine.low %v967_v21, %v982_v29  ;;  %v1000_v42 = vcombine.high %v967_v21, %v982_v29  ;;  %v1390_v29 = vpop.permute.xlu0 %1389 }
 0x232   : > { %v1167_v45 = vcombine.low %v941_v33, %v948_v34  ;;  %v5085_v47 = vcombine.high %v941_v33, %v948_v34  ;;  %v1158_v58 = vrot.slane %v1151_v36, %v6406_v59  ;;  %v1166_v60 = vrot.slane %v5084_v37, %v6406_v59 }
 0x233   : > { %v1007_v49 = vrot.slane %v999_v41, %v6413_v8  ;;  %v1014_v51 = vrot.slane %v1000_v42, %v6413_v8  ;;  %v1201_v52 = vcombine.low %v991_v39, %v998_v40  ;;  %v5086_v53 = vcombine.high %v991_v39, %v998_v40  ;;  %v840_v40 = vpop.permute.xlu1 %839 }
 0x234   : > { %v1174_v62 = vrot.slane %v1167_v45, %v6406_v59  ;;  %v1182_v63 = vrot.slane %v5085_v47, %v6406_v59  ;;  %v1437_v10 = vrot.slane %v1423_v57, %v6406_v59  ;;  %v1489_v11 = vcombine.high %v1397_v55, %v6401_v54 }
 0x235   : > { %v1217_v1 = vcombine.low %v1007_v49, %v1014_v51  ;;  %v5087_v2 = vcombine.high %v1007_v49, %v1014_v51  ;;  %v1208_v3 = vrot.slane %v1201_v52, %v6406_v59  ;;  %v1216_v4 = vrot.slane %v5086_v53, %v6406_v59 }
 0x236   : > { %v1183_v12 = vcombine.low %v1158_v58, %v1166_v60  ;;  %v1461_v13 = vrot.slane %v1453_v61, %v6413_v8  ;;  %v1191_v15 = vcombine.low %v1174_v62, %v1182_v63  ;;  %v1511_v18 = vrot.slane %v1405_v56, %v6406_v59 }
 0x237   : > { %v1224_v16 = vrot.slane %v1217_v1, %v6406_v59  ;;  %v1232_v17 = vrot.slane %v5087_v2, %v6406_v59  ;;  %v1233_v19 = vcombine.low %v1208_v3, %v1216_v4  ;;  %v1468_v20 = vrot.slane %v1454_v6, %v6413_v8  ;;  %v844_v6 = vpop.permute.xlu0 %843 }
 0x238   : > { %v1469_v21 = vcombine.low %v1437_v10, %v1452_v5  ;;  %v1470_v22 = vcombine.high %v1437_v10, %v1452_v5  ;;  %v1496_v23 = vrot.slane %v1397_v55, %v6406_v59  ;;  %v1518_v24 = vrot.slane %v1504_v9, %v6406_v59  ;;  %v848_v5 = vpop.permute.xlu1 %847 }
 0x239   : > { %v1503_v25 = vrot.slane %v1489_v11, %v6406_v59  ;;  %v6456_v26 = vrot.slane %v1183_v12, %v6413_v8  ;;  %v1411_v27 = vshrl.u32 %v6360_v38, 16  ;;  %v875_v28 = vshrl.u32 %v6355_v35, 16 }
 0x23a   : > { %v6461_v30 = vrot.slane %v1191_v15, %v6413_v8  ;;  %v1241_v31 = vcombine.low %v1224_v16, %v1232_v17  ;;  %v1519_v32 = vcombine.low %v1496_v23, %v1511_v18  ;;  %v1520_v33 = vcombine.high %v1496_v23, %v1511_v18 }
 0x23b   : > { %v6464_v34 = vrot.slane %v1233_v19, %v6413_v8  ;;  %v6467_v36 = vrot.slane %v1469_v21, %v6413_v8  ;;  %v6470_v37 = vrot.slane %v1470_v22, %v6413_v8  ;;  %v1687_v39 = vcombine.low %v1461_v13, %v1468_v20 }
 0x23c   : > { %v1535_v41 = vcombine.low %v1503_v25, %v1518_v24  ;;  %v5092_v42 = vcombine.high %v1461_v13, %v1468_v20  ;;  %v1409_v44 = vpack.i.b16 %v1382_v7, %v6360_v38  ;;  %v1417_v45 = vpack.i.b16 %v1390_v29, %v1386_v14 }
 0x23d   : > { %v1536_v47 = vcombine.high %v1503_v25, %v1518_v24  ;;  %v1419_v48 = vshrl.u32 %v1386_v14, 16  ;;  %v1412_v49 = vshrl.u32 %v1382_v7, 16  ;;  %v1420_v51 = vshrl.u32 %v1390_v29, 16 }
 0x23e   : > { %v6474_v52 = vrot.slane %v1241_v31, %v6413_v8  ;;  %v6477_v53 = vrot.slane %v1519_v32, %v6413_v8  ;;  %v6480_v55 = vrot.slane %v1520_v33, %v6413_v8  ;;  %v1570_v56 = vcombine.high %v1417_v45, %v6401_v54 }
 0x23f   : > { %v6484_v57 = vrot.slane %v1687_v39, %v6406_v59  ;;  %v873_v38 = vpack.i.b16 %v840_v40, %v6355_v35  ;;  %v876_v58 = vshrl.u32 %v840_v40, 16  ;;  %v1421_v60 = vpack.i.b16 %v1420_v51, %v1419_v48 }
 0x240   : > { %v6488_v61 = vrot.slane %v1535_v41, %v6413_v8  ;;  %v6491_v62 = vrot.slane %v5092_v42, %v6406_v59  ;;  %v1703_v63 = vcombine.low %v6467_v36, %v6470_v37  ;;  %v1555_v1 = vcombine.high %v1409_v44, %v6401_v54 }
 0x241   : > { %v6497_v2 = vrot.slane %v1536_v47, %v6413_v8  ;;  %v5093_v3 = vcombine.high %v6467_v36, %v6470_v37  ;;  %v1413_v35 = vpack.i.b16 %v1412_v49, %v1411_v27  ;;  %v1577_v4 = vrot.slane %v1417_v45, %v6406_v59 }
 0x242   : > { %v1737_v7 = vcombine.low %v6477_v53, %v6480_v55  ;;  %v5094_v9 = vcombine.high %v6477_v53, %v6480_v55  ;;  %v1562_v10 = vrot.slane %v1409_v44, %v6406_v59  ;;  %v1584_v11 = vrot.slane %v1570_v56, %v6406_v59 }
 0x243   : > { %v877_v12 = vpack.i.b16 %v876_v58, %v875_v28  ;;  %v1019_v13 = vcombine.high %v873_v38, %v6401_v54  ;;  %v1636_v14 = vcombine.high %v1421_v60, %v6401_v54  ;;  %v1643_v15 = vrot.slane %v1421_v60, %v6406_v59 }
 0x244   : > { %v1569_v16 = vrot.slane %v1555_v1, %v6406_v59  ;;  %v884_v17 = vshrl.u32 %v848_v5, 16  ;;  %v881_v18 = vpack.i.b16 %v848_v5, %v844_v6  ;;  %v883_v19 = vshrl.u32 %v844_v6, 16 }
 0x245   : > { %v1621_v20 = vcombine.high %v1413_v35, %v6401_v54  ;;  %v1628_v21 = vrot.slane %v1413_v35, %v6406_v59  ;;  %v1585_v22 = vcombine.low %v1562_v10, %v1577_v4  ;;  %v1586_v23 = vcombine.high %v1562_v10, %v1577_v4 }
 0x246   : > { %v1753_v24 = vcombine.low %v6488_v61, %v6497_v2  ;;  %v5095_v25 = vcombine.high %v6488_v61, %v6497_v2  ;;  %v1601_v27 = vcombine.low %v1569_v16, %v1584_v11  ;;  %v1602_v28 = vcombine.high %v1569_v16, %v1584_v11 }
 0x247   : > { %v1026_v29 = vrot.slane %v873_v38, %v6406_v59  ;;  %v1650_v31 = vrot.slane %v1636_v14, %v6406_v59  ;;  %v1651_v32 = vcombine.low %v1628_v21, %v1643_v15  ;;  %v1652_v33 = vcombine.high %v1628_v21, %v1643_v15 }
 0x248   : > { %v1033_v36 = vrot.slane %v1019_v13, %v6406_v59  ;;  %v1085_v37 = vcombine.high %v877_v12, %v6401_v54  ;;  %v885_v39 = vpack.i.b16 %v884_v17, %v883_v19  ;;  %v1034_v40 = vcombine.high %v881_v18, %v6401_v54 }
 0x249   : > { %v1635_v41 = vrot.slane %v1621_v20, %v6406_v59  ;;  %v1092_v42 = vrot.slane %v877_v12, %v6406_v59  ;;  %v1593_v44 = vrot.slane %v1585_v22, %v6413_v8  ;;  %v1600_v45 = vrot.slane %v1586_v23, %v6413_v8 }
 0x24a   : > { %v1609_v47 = vrot.slane %v1601_v27, %v6413_v8  ;;  %v1616_v48 = vrot.slane %v1602_v28, %v6413_v8  ;;  %v1041_v49 = vrot.slane %v881_v18, %v6406_v59  ;;  %v1100_v51 = vcombine.high %v885_v39, %v6401_v54 }
 0x24b   : > { %v1659_v56 = vrot.slane %v1651_v32, %v6413_v8  ;;  %v1666_v38 = vrot.slane %v1652_v33, %v6413_v8  ;;  %v1667_v58 = vcombine.low %v1635_v41, %v1650_v31  ;;  %v1048_v60 = vrot.slane %v1034_v40, %v6406_v59 }
 0x24c   : > { %v1668_v1 = vcombine.high %v1635_v41, %v1650_v31  ;;  %v1114_v35 = vrot.slane %v1100_v51, %v6406_v59  ;;  %v1710_v4 = vrot.slane %v1703_v63, %v6406_v59  ;;  %v1718_v5 = vrot.slane %v5093_v3, %v6406_v59 }
 0x24d   : > { %v1099_v6 = vrot.slane %v1085_v37, %v6406_v59  ;;  %v1787_v10 = vcombine.low %v1593_v44, %v1600_v45  ;;  %v5096_v11 = vcombine.high %v1593_v44, %v1600_v45  ;;  %v1107_v12 = vrot.slane %v885_v39, %v6406_v59 }
 0x24e   : > { %v1803_v13 = vcombine.low %v1609_v47, %v1616_v48  ;;  %v5097_v14 = vcombine.high %v1609_v47, %v1616_v48  ;;  %v1049_v15 = vcombine.low %v1026_v29, %v1041_v49  ;;  %v1050_v16 = vcombine.high %v1026_v29, %v1041_v49 }
 0x24f   : > { %v1065_v17 = vcombine.low %v1033_v36, %v1048_v60  ;;  %v1066_v18 = vcombine.high %v1033_v36, %v1048_v60  ;;  %v1131_v19 = vcombine.low %v1099_v6, %v1114_v35  ;;  %v1132_v20 = vcombine.high %v1099_v6, %v1114_v35 }
 0x250   : > { %v1675_v21 = vrot.slane %v1667_v58, %v6413_v8  ;;  %v1682_v63 = vrot.slane %v1668_v1, %v6413_v8  ;;  %v1837_v22 = vcombine.low %v1659_v56, %v1666_v38  ;;  %v1727_v3 = vcombine.low %v1710_v4, %v1718_v5 }
 0x251   : > { %v1794_v23 = vrot.slane %v1787_v10, %v6406_v59  ;;  %v5098_v27 = vcombine.high %v1659_v56, %v1666_v38  ;;  %v1115_v28 = vcombine.low %v1092_v42, %v1107_v12  ;;  %v1719_v31 = vcombine.low %v6484_v57, %v6491_v62 }
 0x252   : > { %v6545_v32 = vrot.slane %v1049_v15, %v6413_v8  ;;  %v6548_v29 = vrot.slane %v1050_v16, %v6413_v8  ;;  %v1116_v33 = vcombine.high %v1092_v42, %v1107_v12  ;;  %v1744_v36 = vrot.slane %v1737_v7, %v6406_v59 }
 0x253   : > { %v1073_v37 = vrot.slane %v1065_v17, %v6413_v8  ;;  %v1080_v39 = vrot.slane %v1066_v18, %v6413_v8  ;;  %v1139_v40 = vrot.slane %v1131_v19, %v6413_v8  ;;  %v1146_v57 = vrot.slane %v1132_v20, %v6413_v8 }
 0x254   : > { %v1802_v62 = vrot.slane %v5096_v11, %v6406_v59  ;;  %v1853_v41 = vcombine.low %v1675_v21, %v1682_v63  ;;  %v6560_v44 = vrot.slane %v1727_v3, %v6413_v8  ;;  %v1752_v42 = vrot.slane %v5094_v9, %v6406_v59 }
 0x255   : > { %v5099_v7 = vcombine.high %v1675_v21, %v1682_v63  ;;  %v1123_v45 = vrot.slane %v1115_v28, %v6413_v8  ;;  %v1726_v47 = vrot.slane %v1719_v31, %v6413_v8  ;;  %v1760_v48 = vrot.slane %v1753_v24, %v6406_v59 }
 0x256   : > { %v1130_v49 = vrot.slane %v1116_v33, %v6413_v8  ;;  %v1251_v51 = vcombine.low %v6545_v32, %v6548_v29  ;;  %v1768_v53 = vrot.slane %v5095_v25, %v6406_v59  ;;  %v1769_v55 = vcombine.low %v1744_v36, %v1752_v42 }
 0x257   : > { %v1267_v9 = vcombine.low %v1073_v37, %v1080_v39  ;;  %v1317_v56 = vcombine.low %v1139_v40, %v1146_v57  ;;  %v1810_v38 = vrot.slane %v1803_v13, %v6406_v59  ;;  %v1818_v58 = vrot.slane %v5097_v14, %v6406_v59 }
 0x258   : > { %v5091_v60 = vcombine.high %v1139_v40, %v1146_v57  ;;  %v1735_v24 = vcombine.low %v1726_v47, %v6560_v44  ;;  %v1777_v1 = vcombine.low %v1760_v48, %v1768_v53  ;;  %v1844_v35 = vrot.slane %v1837_v22, %v6406_v59 }
 0x259   : > { %v1819_v4 = vcombine.low %v1794_v23, %v1802_v62  ;;  %v1827_v5 = vcombine.low %v1810_v38, %v1818_v58  ;;  %v1852_v6 = vrot.slane %v5098_v27, %v6406_v59  ;;  %v1860_v61 = vrot.slane %v1853_v41, %v6406_v59 }
 0x25a   : > { %v5088_v2 = vcombine.high %v6545_v32, %v6548_v29  ;;  %v1776_v25 = vrot.slane %v1769_v55, %v6413_v8  ;;  %v1784_v10 = vrot.slane %v1777_v1, %v6413_v8  ;;  %v1868_v11 = vrot.slane %v5099_v7, %v6406_v59 }
 0x25b   : > { %v5089_v12 = vcombine.high %v1073_v37, %v1080_v39  ;;  %v1301_v13 = vcombine.low %v1123_v45, %v1130_v49  ;;  %v5090_v14 = vcombine.high %v1123_v45, %v1130_v49  ;;  %v1869_v15 = vcombine.low %v1844_v35, %v1852_v6 }
 0x25c   : > { %v1274_v16 = vrot.slane %v1267_v9, %v6406_v59  ;;  %v1785_v17 = vcombine.low %v1776_v25, %v1784_v10  ;;  %v6592_v18 = vrot.slane %v1827_v5, %v6413_v8  ;;  %v1877_v19 = vcombine.low %v1860_v61, %v1868_v11 }
 0x25d   : > { %v1324_v20 = vrot.slane %v1317_v56, %v6406_v59  ;;  %v1332_v21 = vrot.slane %v5091_v60, %v6406_v59  ;;  %v1890_v63 = vshrl.u32 %v1735_v24, 16  ;;  %v6597_v22 = vrot.slane %v1819_v4, %v6413_v8 }
 0x25e   : > { %v1889_v3 = vpack.i.b16 %v1785_v17, %v1735_v24  ;;  %v1891_v23 = vshrl.u32 %v1785_v17, 16  ;;  %v1876_v27 = vrot.slane %v1869_v15, %v6413_v8  ;;  %v1884_v28 = vrot.slane %v1877_v19, %v6413_v8 }
 0x25f   : > { %v1282_v31 = vrot.slane %v5089_v12, %v6406_v59  ;;  %v1308_v32 = vrot.slane %v1301_v13, %v6406_v59  ;;  %v1316_v29 = vrot.slane %v5090_v14, %v6406_v59  ;;  %v1249_v33 = vcombine.low %v6464_v34, %v6474_v52 }
 0x260   : > { %v2469_v36 = vsel %vm2464_vm1, %v1889_v3, 0  ;;  %v1892_v37 = vpack.i.b16 %v1891_v23, %v1890_v63  ;;  %v1835_v39 = vcombine.low %v6597_v22, %v6592_v18  ;;  %v1885_v40 = vcombine.low %v1876_v27, %v1884_v28 }
 0x261   : > { %v1199_v57 = vcombine.low %v6456_v26, %v6461_v30  ;;  %v1258_v62 = vrot.slane %v1251_v51, %v6406_v59  ;;  %v1266_v41 = vrot.slane %v5088_v2, %v6406_v59  ;;  %5343 = vmatpush3.bf16.xpose.msra.mxu0 %v2469_v36  ;;  %v1341_v42 = vcombine.low %v1324_v20, %v1332_v21 }
 0x262   : > { %v2563_v7 = vsel %vm2464_vm1, %v1892_v37, 0  ;;  %5348 = vmatprep.subr.bf16.mxu0 %v5981_v43  ;;  %v1901_v45 = vpack.i.b16 %v1885_v40, %v1835_v39  ;;  %v1786_v48 = vcombine.high %v1776_v25, %v1784_v10  ;;  %v1291_v49 = vcombine.low %v1274_v16, %v1282_v31 }
 0x263   : > { %5355 = vmatpush3.bf16.xpose.msra.mxu1 %v2563_v7  ;;  %v1333_v53 = vcombine.low %v1308_v32, %v1316_v29  ;;  %v1355_v55 = vshrl.u32 %v1249_v33, 16  ;;  %v1736_v9 = vcombine.high %v1726_v47, %v6560_v44  ;;  %v1283_v56 = vcombine.low %v1258_v62, %v1266_v41 }
 0x264   : > { %5366 = vmatprep.subr.bf16.mxu1 %v5981_v43  ;;  %v1353_v51 = vpack.i.b16 %v1249_v33, %v1199_v57  ;;  %v2516_v38 = vsel %vm2464_vm1, %v1901_v45, 0  ;;  %v1354_v58 = vshrl.u32 %v1199_v57, 16  ;;  %v1348_v24 = vrot.slane %v1341_v42, %v6413_v8 }
 0x265   : > { %v1895_v60 = vpack.i.b16 %v1786_v48, %v1736_v9  ;;  %v1298_v35 = vrot.slane %v1291_v49, %v6413_v8  ;;  %v1340_v4 = vrot.slane %v1333_v53, %v6413_v8  ;;  %v1903_v5 = vshrl.u32 %v1885_v40, 16  ;;  %v5340_v40 = vpop.f32.mrb[0].mxu1 }
 0x266   : > { %v1356_v1 = vpack.i.b16 %v1355_v55, %v1354_v58  ;;  %v1290_v6 = vrot.slane %v1283_v56, %v6413_v8  ;;  %v1902_v61 = vshrl.u32 %v1835_v39, 16  ;;  %v1897_v2 = vshrl.u32 %v1786_v48, 16  ;;  %v818_v57 = vpop.f32.mrb[1].mxu1 }
 0x267   : > { %v2657_v44 = vsel %vm2464_vm1, %v1895_v60, 0  ;;  %v1349_v47 = vcombine.low %v1340_v4, %v1348_v24  ;;  %v1250_v11 = vcombine.high %v6464_v34, %v6474_v52  ;;  %v1896_v12 = vshrl.u32 %v1736_v9, 16  ;;  %v5341_v62 = vpop.f32.mrb[2].mxu1 }
 0x268   : > { %5345 = vmatmul.mubr.msk.bf16.vlgmr.msra.gmra.mrb[8].mxu0 %vm2464_vm1, %v1353_v51  ;;  %v1299_v25 = vcombine.low %v1290_v6, %v1298_v35  ;;  %v1904_v10 = vpack.i.b16 %v1903_v5, %v1902_v61  ;;  %v1200_v14 = vcombine.high %v6456_v26, %v6461_v30  ;;  %v1886_v19 = vcombine.high %v1876_v27, %v1884_v28  ;;  %v821_v42 = vpop.f32.mrb[3].mxu1 }
 0x269   : > { %5349 = vmatpush3.bf16.xpose.msra.mxu0 %v2516_v38  ;;  %5350 = vmatprep.mubr.msk.bf16.mxu0 %vm5982_vm0, %v5981_v43  ;;  %v1898_v15 = vpack.i.b16 %v1897_v2, %v1896_v12  ;;  %v1367_v52 = vshrl.u32 %v1349_v47, 16  ;;  %v1836_v26 = vcombine.high %v6597_v22, %v6592_v18  ;;  %v1361_v21 = vshrl.u32 %v1250_v11, 16 }
 0x26a   : > { %5357 = vmatmul.mubr.msk.bf16.vlgmr.msra.gmra.mrb[4].mxu1 %vm2464_vm1, %v1356_v1  ;;  %5360 = vmatprep.subr.bf16.mxu0 %v5981_v43  ;;  %v1365_v13 = vpack.i.b16 %v1349_v47, %v1299_v25  ;;  %v2610_v16 = vsel %vm2464_vm1, %v1904_v10, 0  ;;  %v1359_v17 = vpack.i.b16 %v1250_v11, %v1200_v14  ;;  %v1366_v30 = vshrl.u32 %v1299_v25, 16 }
 0x26b   : > { %5367 = vmatpush3.bf16.xpose.msra.mxu1 %v2657_v44  ;;  %5368 = vmatprep.mubr.msk.bf16.mxu1 %vm5982_vm0, %v5981_v43  ;;  %v2751_v34 = vsel %vm2464_vm1, %v1898_v15, 0  ;;  %v1907_v20 = vpack.i.b16 %v1886_v19, %v1836_v26  ;;  %v1360_v3 = vshrl.u32 %v1200_v14, 16  ;;  %v1909_v28 = vshrl.u32 %v1886_v19, 16 }
 0x26c   : > { %5378 = vmatprep.subr.bf16.mxu1 %v5981_v43  ;;  %v1368_v63 = vpack.i.b16 %v1367_v52, %v1366_v30  ;;  %v1350_v18 = vcombine.high %v1340_v4, %v1348_v24  ;;  %v1908_v22 = vshrl.u32 %v1836_v26, 16  ;;  %v1300_v31 = vcombine.high %v1290_v6, %v1298_v35 }
 0x26d   : > { %v2704_v23 = vsel %vm2464_vm1, %v1907_v20, 0  ;;  %v1362_v27 = vpack.i.b16 %v1361_v21, %v1360_v3  ;;  %v6663_v41 = vpack.c.bf16 %v5341_v62, %v5340_v40  ;;  %v6665_v7 = vpack.c.bf16 %v821_v42, %v818_v57 }
 0x26e   : > { %v1910_v32 = vpack.i.b16 %v1909_v28, %v1908_v22  ;;  %v1371_v29 = vpack.i.b16 %v1350_v18, %v1300_v31  ;;  %v1373_v36 = vshrl.u32 %v1350_v18, 16  ;;  %v1372_v37 = vshrl.u32 %v1300_v31, 16 }
 0x26f   : > { %v2459_v45 = vand.u32 127, %v891_v46  ;;  %v2457_v48 = vadd.s32 8, %v6397_v50  ;;  %v5985_v49 = vmov -1e+30  }
 0x270   : > { %5351 = vmatmul.mubr.msk.bf16.vlgmr.msra.gmra.mrb[12].mxu0 %vm2464_vm1, %v1365_v13  ;;  %v2798_v33 = vsel %vm2464_vm1, %v1910_v32, 0  ;;  %v1374_v39 = vpack.i.b16 %v1373_v36, %v1372_v37 }
 0x271   : > { %5361 = vmatpush3.bf16.xpose.msra.mxu0 %v2610_v16  ;;  %5362 = vmatprep.mubr.msk.bf16.mxu0 %vm5982_vm0, %v5981_v43  ;;  %vm2460_vm2 = vcmp.le.s32.totalorder %v2459_v45, %v6397_v50  ;;  %vm2461_vm3 = vcmp.le.s32.totalorder %v2459_v45, %v2457_v48 }
 0x272   : > { %5369 = vmatmul.mubr.msk.bf16.vlgmr.msra.gmra.mrb[8].mxu1 %vm2464_vm1, %v1359_v17  ;;  %5372 = vmatprep.subr.bf16.mxu0 %v5981_v43  ;;  %v6670_v53 = vsel %vm2460_vm2, 0.0, %v5985_v49  ;;  %v6672_v9 = vsel %vm2461_vm3, 0.0, %v5985_v49 }
 0x273   : > { %5379 = vmatpush3.bf16.xpose.msra.mxu1 %v2751_v34  ;;  %5380 = vmatprep.mubr.msk.bf16.mxu1 %vm5982_vm0, %v5981_v43 }
 0x274   : > { %5390 = vmatprep.subr.bf16.mxu1 %v5981_v43 }
 0x278   : > { %5363 = vmatmul.mubr.msk.bf16.vlgmr.msra.gmra.mrb[16].mxu0 %vm2464_vm1, %v1368_v63 }
 0x279   : > { %5373 = vmatpush3.bf16.xpose.msra.mxu0 %v2704_v23  ;;  %5374 = vmatprep.mubr.msk.bf16.mxu0 %vm5982_vm0, %v5981_v43 }
 0x27a   : > { %5381 = vmatmul.mubr.msk.bf16.vlgmr.msra.gmra.mrb[12].mxu1 %vm2464_vm1, %v1362_v27  ;;  %5384 = vmatprep.subr.bf16.mxu0 %v5981_v43 }
 0x27b   : > { %5392 = vmatprep.mubr.msk.bf16.mxu1 %vm5982_vm0, %v5981_v43 }
 0x280   : > { %5375 = vmatmul.mubr.msk.bf16.vlgmr.msra.gmra.mrb[20].mxu0 %vm2464_vm1, %v1371_v29 }
 0x281   : > { %5385 = vmatpush3.bf16.xpose.msra.mxu0 %v2798_v33  ;;  %5386 = vmatprep.mubr.msk.bf16.mxu0 %vm5982_vm0, %v5981_v43 }
 0x282   : > { %5396 = vmatprep.subr.bf16.mxu0 %v5981_v43 }
 0x288   : > { %5387 = vmatmul.mubr.msk.bf16.vlgmr.msra.gmra.mrb[24].mxu0 %vm2464_vm1, %v1374_v39 }
 0x289   : > { %5398 = vmatprep.mubr.msk.bf16.mxu0 %vm5982_vm0, %v5981_v43 }
 0x33b   : > { %v2505_v55 = vpop.f32.mrb[8].mxu0 }
 0x33c   : > { %v6675_v56 = vadd.f32 %v2505_v55, %v6670_v53  ;;  %v5346_v51 = vpop.f32.mrb[9].mxu0 }
 0x33d   : > { %v2508_v38 = vpop.f32.mrb[10].mxu0  ;;  %v2599_v58 = vpop.f32.mrb[4].mxu1 }
 0x33e   : > { %v6678_v46 = vadd.f32 %v2508_v38, %v6672_v9  ;;  %v5347_v60 = vpop.f32.mrb[11].mxu0  ;;  %v5358_v24 = vpop.f32.mrb[5].mxu1  ;;  %v2842_v1 = vsel %vm2841_vm4, %v6675_v56, -inf  ;;  %v6683_v4 = vadd.f32 %v2599_v58, %v6670_v53 }
 0x33f   : > { %v2602_v35 = vpop.f32.mrb[6].mxu1  ;;  %2843 = vmax.xlane.f32.xlu0 %v2842_v1 }
 0x340   : > { %v5359_v5 = vpop.f32.mrb[7].mxu1  ;;  %v2845_v6 = vsel %vm2841_vm4, %v6678_v46, -inf  ;;  %v2854_v2 = vsel %vm2841_vm4, %v6683_v4, -inf  ;;  %v6703_v34 = vadd.f32 %v2602_v35, %v6672_v9 }
 0x341   : > { %2846 = vmax.xlane.f32.xlu1 %v2845_v6 }
 0x342   : > { %v2857_v18 = vsel %vm2841_vm4, %v6703_v34, -inf }
 0x343   : > { %v2552_v44 = vpop.f32.mrb[12].mxu0 }
 0x344   : > { %v6688_v47 = vadd.f32 %v2552_v44, %v6670_v53  ;;  %v5352_v61 = vpop.f32.mrb[13].mxu0 }
 0x345   : > { %v2693_v25 = vpop.f32.mrb[8].mxu1  ;;  %2855 = vmax.xlane.f32.xlu1 %v2854_v2  ;;  %v2555_v10 = vpop.f32.mrb[14].mxu0 }
 0x346   : > { %v6693_v11 = vadd.f32 %v2693_v25, %v6670_v53  ;;  %v6696_v12 = vadd.f32 %v2555_v10, %v6672_v9  ;;  %v5353_v13 = vpop.f32.mrb[15].mxu0  ;;  %v5370_v14 = vpop.f32.mrb[9].mxu1  ;;  %v2848_v15 = vsel %vm2841_vm4, %v6688_v47, -inf }
 0x347   : > { %v2696_v16 = vpop.f32.mrb[10].mxu1  ;;  %2849 = vmax.xlane.f32.xlu0 %v2848_v15 }
 0x348   : > { %v5371_v17 = vpop.f32.mrb[11].mxu1  ;;  %v2866_v19 = vsel %vm2841_vm4, %v6693_v11, -inf  ;;  %v2851_v52 = vsel %vm2841_vm4, %v6696_v12, -inf  ;;  %v6721_v29 = vadd.f32 %v2696_v16, %v6672_v9 }
 0x349   : > { %2867 = vmax.xlane.f32.xlu1 %v2866_v19 }
 0x34a   : > { %v2869_v45 = vsel %vm2841_vm4, %v6721_v29, -inf }
 0x34b   : > { %2852 = vmax.xlane.f32.xlu0 %v2851_v52  ;;  %v2646_v26 = vpop.f32.mrb[16].mxu0 }
 0x34c   : > { %v6708_v30 = vadd.f32 %v2646_v26, %v6670_v53  ;;  %v5364_v20 = vpop.f32.mrb[17].mxu0 }
 0x34d   : > { %v2649_v21 = vpop.f32.mrb[18].mxu0  ;;  %v2787_v63 = vpop.f32.mrb[12].mxu1 }
 0x34e   : > { %v6711_v3 = vadd.f32 %v2649_v21, %v6672_v9  ;;  %v6714_v23 = vadd.f32 %v2787_v63, %v6670_v53  ;;  %v5365_v27 = vpop.f32.mrb[19].mxu0  ;;  %v5382_v28 = vpop.f32.mrb[13].mxu1  ;;  %v2860_v22 = vsel %vm2841_vm4, %v6708_v30, -inf }
 0x34f   : > { %v2790_v31 = vpop.f32.mrb[14].mxu1  ;;  %2858 = vmax.xlane.f32.xlu0 %v2857_v18  ;;  %2861 = vmax.xlane.f32.xlu1 %v2860_v22 }
 0x350   : > { %v5383_v32 = vpop.f32.mrb[15].mxu1  ;;  %v2878_v33 = vsel %vm2841_vm4, %v6714_v23, -inf  ;;  %v2863_v36 = vsel %vm2841_vm4, %v6711_v3, -inf  ;;  %v6738_v49 = vadd.f32 %v2790_v31, %v6672_v9 }
 0x352   : > { %v2881_v35 = vsel %vm2841_vm4, %v6738_v49, -inf }
 0x353   : > { %2879 = vmax.xlane.f32.xlu1 %v2878_v33  ;;  %2864 = vmax.xlane.f32.xlu0 %v2863_v36  ;;  %v2740_v37 = vpop.f32.mrb[20].mxu0 }
 0x354   : > { %v6728_v39 = vadd.f32 %v2740_v37, %v6670_v53  ;;  %v5376_v40 = vpop.f32.mrb[21].mxu0 }
 0x355   : > { %v2743_v57 = vpop.f32.mrb[22].mxu0 }
 0x356   : > { %v6731_v62 = vadd.f32 %v2743_v57, %v6672_v9  ;;  %v5377_v42 = vpop.f32.mrb[23].mxu0  ;;  %v2872_v48 = vsel %vm2841_vm4, %v6728_v39, -inf }
 0x357   : > { %2870 = vmax.xlane.f32.xlu0 %v2869_v45  ;;  %2873 = vmax.xlane.f32.xlu1 %v2872_v48 }
 0x358   : > { %v2875_v55 = vsel %vm2841_vm4, %v6731_v62, -inf }
 0x35b   : > { %2876 = vmax.xlane.f32.xlu0 %v2875_v55  ;;  %v2834_v51 = vpop.f32.mrb[24].mxu0 }
 0x35c   : > { %v6743_v38 = vadd.f32 %v2834_v51, %v6670_v53  ;;  %v5388_v58 = vpop.f32.mrb[25].mxu0 }
 0x35d   : > { %v2837_v60 = vpop.f32.mrb[26].mxu0 }
 0x35e   : > { %v6746_v24 = vadd.f32 %v2837_v60, %v6672_v9  ;;  %v5389_v1 = vpop.f32.mrb[27].mxu0  ;;  %v2884_v53 = vsel %vm2841_vm4, %v6743_v38, -inf }
 0x35f   : > { %2882 = vmax.xlane.f32.xlu0 %v2881_v35 }
 0x360   : > { %v2887_v5 = vsel %vm2841_vm4, %v6746_v24, -inf }
 0x363   : > { %2888 = vmax.xlane.f32.xlu0 %v2887_v5 }
 0x368   : > { %1915 = vrot.lane.b32.xlu1 %v6665_v7, %s5979_s25 }
 0x379   : > { %1919 = vrot.lane.b32.xlu0 %v6665_v7, %s5978_s30 }
 0x37d   : > { %1921 = vrot.lane.b32.xlu0 %v6663_v41, %s5978_s30 }
 0x38c   : > { %2885 = vmax.xlane.f32.xlu1 %v2884_v53 }
 0x39d   : > { %1923 = vrot.lane.b32.xlu1 %v6665_v7, %s5980_s12 }
 0x3a1   : > { %1917 = vrot.lane.b32.xlu1 %v6663_v41, %s5979_s25 }
 0x3cc   : > { %v2844_v9 = vpop.xlane.xlu0 %2843 }
 0x3cd   : > { %v2890_v6 = vsub.f32 %v6675_v56, %v2844_v9 }
 0x3ce   : > { %v2847_v44 = vpop.xlane.xlu1 %2846 }
 0x3cf   : > { %v2906_v61 = vmul.f32 1.442695, %v2890_v6  ;;  %v2891_v2 = vsub.f32 %v6678_v46, %v2847_v44 }
 0x3d1   : > { %5666 = vpow2.f32 %v2906_v61  ;;  %v2908_v25 = vmul.f32 1.442695, %v2891_v2 }
 0x3d2   : > { %v2856_v10 = vpop.xlane.xlu1 %2855 }
 0x3d3   : > { %5668 = vpow2.f32 %v2908_v25  ;;  %v2894_v13 = vsub.f32 %v6683_v4, %v2856_v10 }
 0x3d4   : > { %v2850_v14 = vpop.xlane.xlu0 %2849 }
 0x3d5   : > { %v2914_v15 = vmul.f32 1.442695, %v2894_v13  ;;  %v2892_v16 = vsub.f32 %v6688_v47, %v2850_v14 }
 0x3d6   : > { %v6768_v19 = vpop.xlane.xlu1 %2867 }
 0x3d7   : > { %5670 = vpow2.f32 %v2914_v15  ;;  %v2910_v17 = vmul.f32 1.442695, %v2892_v16  ;;  %v2898_v14 = vsub.f32 %v6693_v11, %v6768_v19 }
 0x3d8   : > { %v2853_v52 = vpop.xlane.xlu0 %2852 }
 0x3d9   : > { %5672 = vpow2.f32 %v2910_v17  ;;  %v2893_v56 = vsub.f32 %v6696_v12, %v2853_v52  ;;  %v2922_v17 = vmul.f32 1.442695, %v2898_v14 }
 0x3db   : > { %v6771_v26 = vpop.eup %5666  ;;  %v2912_v46 = vmul.f32 1.442695, %v2893_v56 }
 0x3dc   : > { %v2859_v20 = vpop.xlane.xlu0 %2858  ;;  %v2862_v21 = vpop.xlane.xlu1 %2861  ;;  %v2938_v4 = vsel %vm2841_vm4, %v6771_v26, 0.0 }
 0x3dd   : > { %v6775_v63 = vpop.eup %5668  ;;  %5674 = vpow2.f32 %v2912_v46  ;;  %v2896_v47 = vsub.f32 %v6708_v30, %v2862_v21  ;;  %2939 = vadd.xlane.f32.xlu1 %v2938_v4  ;;  %v2895_v13 = vsub.f32 %v6703_v34, %v2859_v20  ;;  %v1931_v34 = vshrl.u32 %v6665_v7, 16 }
 0x3de   : > { %v2941_v27 = vsel %vm2841_vm4, %v6775_v63, 0.0 }
 0x3df   : > { %v2918_v28 = vmul.f32 1.442695, %v2896_v47  ;;  %2942 = vadd.xlane.f32.xlu0 %v2941_v27  ;;  %v2916_v15 = vmul.f32 1.442695, %v2895_v13 }
 0x3e0   : > { %v2865_v12 = vpop.xlane.xlu0 %2864  ;;  %v2880_v10 = vpop.xlane.xlu1 %2879 }
 0x3e1   : > { %v6780_v18 = vpop.eup %5670  ;;  %v2897_v22 = vsub.f32 %v6711_v3, %v2865_v12  ;;  %5676 = vpow2.f32 %v2918_v28  ;;  %v2902_v56 = vsub.f32 %v6714_v23, %v2880_v10 }
 0x3e2   : > { %v2950_v31 = vsel %vm2841_vm4, %v6780_v18, 0.0 }
 0x3e3   : > { %v6785_v32 = vpop.eup %5672  ;;  %v2920_v33 = vmul.f32 1.442695, %v2897_v22  ;;  %2951 = vadd.xlane.f32.xlu0 %v2950_v31  ;;  %v2930_v21 = vmul.f32 1.442695, %v2902_v56 }
 0x3e4   : > { %v2871_v30 = vpop.xlane.xlu0 %2870  ;;  %v2944_v36 = vsel %vm2841_vm4, %v6785_v32, 0.0  ;;  %v2874_v16 = vpop.xlane.xlu1 %2873 }
 0x3e5   : > { %v2899_v37 = vsub.f32 %v6721_v29, %v2871_v30  ;;  %2945 = vadd.xlane.f32.xlu1 %v2944_v36  ;;  %5678 = vpow2.f32 %v2920_v33  ;;  %v2900_v52 = vsub.f32 %v6728_v39, %v2874_v16 }
 0x3e7   : > { %v6790_v40 = vpop.eup %5674  ;;  %v2924_v57 = vmul.f32 1.442695, %v2899_v37  ;;  %v2926_v46 = vmul.f32 1.442695, %v2900_v52 }
 0x3e8   : > { %v2877_v3 = vpop.xlane.xlu0 %2876  ;;  %v2947_v42 = vsel %vm2841_vm4, %v6790_v40, 0.0  ;;  %v1916_v4 = vpop.permute.xlu1 %1915 }
 0x3e9   : > { %5680 = vpow2.f32 %v2924_v57  ;;  %v2901_v45 = vsub.f32 %v6731_v62, %v2877_v3  ;;  %2948 = vadd.xlane.f32.xlu0 %v2947_v42  ;;  %v1932_v27 = vshrl.u32 %v1916_v4, 16  ;;  %v1929_v11 = vpack.i.b16 %v1916_v4, %v6665_v7 }
 0x3eb   : > { %v2928_v48 = vmul.f32 1.442695, %v2901_v45  ;;  %v6795_v55 = vpop.eup %5676  ;;  %v1933_v28 = vpack.i.b16 %v1932_v27, %v1931_v34  ;;  %v1959_v31 = vcombine.high %v1929_v11, %v6401_v54 }
 0x3ec   : > { %v2883_v51 = vpop.xlane.xlu0 %2882  ;;  %v2956_v58 = vsel %vm2841_vm4, %v6795_v55, 0.0 }
 0x3ed   : > { %5682 = vpow2.f32 %v2928_v48  ;;  %v2903_v29 = vsub.f32 %v6738_v49, %v2883_v51  ;;  %2957 = vadd.xlane.f32.xlu0 %v2956_v58  ;;  %v2025_v3 = vcombine.high %v1933_v28, %v6401_v54  ;;  %v1973_v51 = vrot.slane %v1959_v31, %v6406_v59 }
 0x3ef   : > { %v6800_v60 = vpop.eup %5678  ;;  %v2932_v1 = vmul.f32 1.442695, %v2903_v29 }
 0x3f0   : > { %v2889_v35 = vpop.xlane.xlu0 %2888  ;;  %v2959_v62 = vsel %vm2841_vm4, %v6800_v60, 0.0 }
 0x3f1   : > { %v2905_v5 = vsub.f32 %v6746_v24, %v2889_v35  ;;  %5684 = vpow2.f32 %v2932_v1  ;;  %2960 = vadd.xlane.f32.xlu0 %v2959_v62 }
 0x3f3   : > { %v6805_v53 = vpop.eup %5680  ;;  %v2936_v9 = vmul.f32 1.442695, %v2905_v5 }
 0x3f4   : > { %v2965_v49 = vsel %vm2841_vm4, %v6805_v53, 0.0  ;;  %v1920_v12 = vpop.permute.xlu0 %1919 }
 0x3f5   : > { %5686 = vpow2.f32 %v2936_v9  ;;  %2966 = vadd.xlane.f32.xlu0 %v2965_v49  ;;  %v1939_v7 = vshrl.u32 %v1920_v12, 16  ;;  %v2032_v9 = vrot.slane %v1933_v28, %v6406_v59  ;;  %v2039_v49 = vrot.slane %v2025_v3, %v6406_v59 }
 0x3f6   : > { %1925 = vrot.lane.b32.xlu1 %v6663_v41, %s5980_s12  ;;  %5688 = vpow2.f32 %v2916_v15 }
 0x3f7   : > { %v6811_v6 = vpop.eup %5682  ;;  %5690 = vpow2.f32 %v2922_v17 }
 0x3f8   : > { %v2971_v24 = vsel %vm2841_vm4, %v6811_v6, 0.0  ;;  %5692 = vpow2.f32 %v2926_v46 }
 0x3f9   : > { %2972 = vadd.xlane.f32.xlu0 %v2971_v24  ;;  %5694 = vpow2.f32 %v2930_v21 }
 0x3fb   : > { %v6815_v44 = vpop.eup %5684 }
 0x3fc   : > { %v2977_v61 = vsel %vm2841_vm4, %v6815_v44, 0.0 }
 0x3fd   : > { %2978 = vadd.xlane.f32.xlu0 %v2977_v61 }
 0x3ff   : > { %v6819_v2 = vpop.eup %5686 }
 0x400   : > { %v2983_v25 = vsel %vm2841_vm4, %v6819_v2, 0.0  ;;  %v6828_v47 = vpop.eup %5688 }
 0x401   : > { %2984 = vadd.xlane.f32.xlu0 %v2983_v25  ;;  %v2953_v20 = vsel %vm2841_vm4, %v6828_v47, 0.0  ;;  %v6834_v39 = vpop.eup %5690 }
 0x402   : > { %v2962_v30 = vsel %vm2841_vm4, %v6834_v39, 0.0  ;;  %v6840_v36 = vpop.eup %5692 }
 0x403   : > { %v2968_v29 = vsel %vm2841_vm4, %v6840_v36, 0.0  ;;  %v6849_v58 = vpop.eup %5694 }
 0x404   : > { %v2974_v17 = vsel %vm2841_vm4, %v6849_v58, 0.0 }
 0x419   : > { %v2886_v19 = vpop.xlane.xlu1 %2885 }
 0x41a   : > { %v2904_v23 = vsub.f32 %v6743_v38, %v2886_v19  ;;  %2954 = vadd.xlane.f32.xlu1 %v2953_v20  ;;  %v1966_v38 = vrot.slane %v1929_v11, %v6406_v59 }
 0x41c   : > { %v2934_v22 = vmul.f32 1.442695, %v2904_v23 }
 0x41d   : > { %v1924_v33 = vpop.permute.xlu1 %1923 }
 0x41e   : > { %v1937_v37 = vpack.i.b16 %v1924_v33, %v1920_v12  ;;  %v1940_v57 = vshrl.u32 %v1924_v33, 16  ;;  %2963 = vadd.xlane.f32.xlu1 %v2962_v30  ;;  %5696 = vpow2.f32 %v2934_v22 }
 0x420   : > { %v1941_v42 = vpack.i.b16 %v1940_v57, %v1939_v7  ;;  %v1974_v45 = vcombine.high %v1937_v37, %v6401_v54  ;;  %v1981_v48 = vrot.slane %v1937_v37, %v6406_v59 }
 0x422   : > { %v1988_v1 = vrot.slane %v1974_v45, %v6406_v59  ;;  %v1989_v35 = vcombine.low %v1966_v38, %v1981_v48  ;;  %v1990_v5 = vcombine.high %v1966_v38, %v1981_v48  ;;  %v2040_v62 = vcombine.high %v1941_v42, %v6401_v54  ;;  %2969 = vadd.xlane.f32.xlu1 %v2968_v29 }
 0x423   : > { %v2047_v24 = vrot.slane %v1941_v42, %v6406_v59 }
 0x424   : > { %v1997_v61 = vrot.slane %v1989_v35, %v6413_v8  ;;  %v2004_v25 = vrot.slane %v1990_v5, %v6413_v8  ;;  %v2005_v10 = vcombine.low %v1973_v51, %v1988_v1  ;;  %v2006_v13 = vcombine.high %v1973_v51, %v1988_v1 }
 0x425   : > { %v2054_v14 = vrot.slane %v2040_v62, %v6406_v59  ;;  %v2055_v15 = vcombine.low %v2032_v9, %v2047_v24  ;;  %v2056_v16 = vcombine.high %v2032_v9, %v2047_v24 }
 0x426   : > { %v2013_v52 = vrot.slane %v2005_v10, %v6413_v8  ;;  %v2020_v56 = vrot.slane %v2006_v13, %v6413_v8  ;;  %v2223_v46 = vcombine.low %v1997_v61, %v2004_v25  ;;  %v5100_v21 = vcombine.high %v1997_v61, %v2004_v25  ;;  %2975 = vadd.xlane.f32.xlu1 %v2974_v17 }
 0x427   : > { %v2063_v4 = vrot.slane %v2055_v15, %v6413_v8  ;;  %v2070_v27 = vrot.slane %v2056_v16, %v6413_v8  ;;  %v2071_v34 = vcombine.low %v2039_v49, %v2054_v14  ;;  %v2072_v11 = vcombine.high %v2039_v49, %v2054_v14 }
 0x428   : > { %v2230_v19 = vrot.slane %v2223_v46, %v6406_v59  ;;  %v2238_v20 = vrot.slane %v5100_v21, %v6406_v59  ;;  %v2239_v23 = vcombine.low %v2013_v52, %v2020_v56  ;;  %v5101_v28 = vcombine.high %v2013_v52, %v2020_v56  ;;  %v6867_v12 = vpop.eup %5696 }
 0x429   : > { %v2079_v22 = vrot.slane %v2071_v34, %v6413_v8  ;;  %v2086_v31 = vrot.slane %v2072_v11, %v6413_v8  ;;  %v2273_v33 = vcombine.low %v2063_v4, %v2070_v27  ;;  %v5102_v30 = vcombine.high %v2063_v4, %v2070_v27  ;;  %v1918_v4 = vpop.permute.xlu1 %1917  ;;  %v1922_v27 = vpop.permute.xlu0 %1921 }
 0x42a   : > { %v2246_v7 = vrot.slane %v2239_v23, %v6406_v59  ;;  %v2254_v37 = vrot.slane %v5101_v28, %v6406_v59  ;;  %v2980_v45 = vsel %vm2841_vm4, %v6867_v12, 0.0  ;;  %v2255_v48 = vcombine.low %v2230_v19, %v2238_v20 }
 0x42b   : > { %v2280_v57 = vrot.slane %v2273_v33, %v6406_v59  ;;  %v2288_v3 = vrot.slane %v5102_v30, %v6406_v59  ;;  %v2289_v38 = vcombine.low %v2079_v22, %v2086_v31  ;;  %v5103_v42 = vcombine.high %v2079_v22, %v2086_v31  ;;  %2981 = vadd.xlane.f32.xlu1 %v2980_v45 }
 0x42c   : > { %v2263_v51 = vcombine.low %v2246_v7, %v2254_v37  ;;  %v2262_v5 = vrot.slane %v2255_v48, %v6413_v8  ;;  %v1948_v19 = vshrl.u32 %v1918_v4, 16  ;;  %v1947_v20 = vshrl.u32 %v6663_v41, 16 }
 0x42d   : > { %v2296_v29 = vrot.slane %v2289_v38, %v6406_v59  ;;  %v2304_v1 = vrot.slane %v5103_v42, %v6406_v59  ;;  %v2305_v35 = vcombine.low %v2280_v57, %v2288_v3  ;;  %v1945_v23 = vpack.i.b16 %v1918_v4, %v6663_v41 }
 0x42e   : > { %v2270_v62 = vrot.slane %v2263_v51, %v6413_v8  ;;  %v1949_v22 = vpack.i.b16 %v1948_v19, %v1947_v20  ;;  %v1955_v57 = vshrl.u32 %v1922_v27, 16 }
 0x42f   : > { %v2313_v9 = vcombine.low %v2296_v29, %v2304_v1  ;;  %v2312_v24 = vrot.slane %v2305_v35, %v6413_v8  ;;  %v2091_v30 = vcombine.high %v1945_v23, %v6401_v54  ;;  %v2098_v41 = vrot.slane %v1945_v23, %v6406_v59 }
 0x430   : > { %v2271_v49 = vcombine.low %v2262_v5, %v2270_v62  ;;  %v6883_v25 = vcombine.high %v2262_v5, %v2270_v62  ;;  %v2157_v42 = vcombine.high %v1949_v22, %v6401_v54 }
 0x431   : > { %v2320_v61 = vrot.slane %v2313_v9, %v6413_v8  ;;  %v2105_v5 = vrot.slane %v2091_v30, %v6406_v59 }
 0x432   : > { %v2427_v14 = vshrl.u32 %v2271_v49, 16  ;;  %v2435_v15 = vshrl.u32 %v6883_v25, 16 }
 0x433   : > { %v2321_v10 = vcombine.low %v2312_v24, %v2320_v61  ;;  %v6885_v13 = vcombine.high %v2312_v24, %v2320_v61 }
 0x435   : > { %v2425_v16 = vpack.i.b16 %v2321_v10, %v2271_v49  ;;  %v2428_v17 = vshrl.u32 %v2321_v10, 16  ;;  %v2433_v52 = vpack.i.b16 %v6885_v13, %v6883_v25  ;;  %v2436_v56 = vshrl.u32 %v6885_v13, 16 }
 0x437   : > { %5391 = vmatpush3.bf16.msra.mxu1 %v2425_v16  ;;  %v2429_v46 = vpack.i.b16 %v2428_v17, %v2427_v14  ;;  %v6891_v21 = vpack.i.b16 %v2436_v56, %v2435_v15 }
 0x438   : > { %5402 = vmatprep.subr.bf16.mxu1 %v5981_v43 }
 0x46a   : > { %v2940_v34 = vpop.xlane.xlu1 %2939 }
 0x46b   : > { %5698 = vrcp.f32 %v2940_v34 }
 0x46c   : > { %v2943_v11 = vpop.xlane.xlu0 %2942 }
 0x46d   : > { %5700 = vrcp.f32 %v2943_v11 }
 0x470   : > { %v6896_v33 = vpop.xlane.xlu0 %2951 }
 0x472   : > { %v2946_v28 = vpop.xlane.xlu1 %2945 }
 0x473   : > { %5702 = vrcp.f32 %v2946_v28 }
 0x475   : > { %v5699_v31 = vpop.eup %5698 }
 0x476   : > { %v1926_v7 = vpop.permute.xlu1 %1925  ;;  %v3002_v45 = vmul.f32 %v5699_v31, %v6771_v26  ;;  %v2949_v35 = vpop.xlane.xlu0 %2948  ;;  %v2164_v26 = vrot.slane %v1949_v22, %v6406_v59 }
 0x477   : > { %v5701_v37 = vpop.eup %5700  ;;  %v1953_v3 = vpack.i.b16 %v1926_v7, %v1922_v27  ;;  %v1956_v38 = vshrl.u32 %v1926_v7, 16  ;;  %5704 = vrcp.f32 %v2949_v35 }
 0x478   : > { %v3003_v48 = vmul.f32 %v5701_v37, %v6775_v63  ;;  %v2171_v63 = vrot.slane %v2157_v42, %v6406_v59 }
 0x479   : > { %v1957_v51 = vpack.i.b16 %v1956_v38, %v1955_v57  ;;  %v2106_v29 = vcombine.high %v1953_v3, %v6401_v54  ;;  %v2113_v1 = vrot.slane %v1953_v3, %v6406_v59 }
 0x47a   : > { %v3018_v62 = vpack.c.bf16 %v3003_v48, %v3002_v45  ;;  %v2958_v23 = vpop.xlane.xlu0 %2957 }
 0x47b   : > { %v2120_v9 = vrot.slane %v2106_v29, %v6406_v59  ;;  %v2121_v49 = vcombine.low %v2098_v41, %v2113_v1  ;;  %v2122_v24 = vcombine.high %v2098_v41, %v2113_v1  ;;  %v2172_v61 = vcombine.high %v1957_v51, %v6401_v54 }
 0x47c   : > { %v2179_v10 = vrot.slane %v1957_v51, %v6406_v59  ;;  %5393 = vmatmul.mubr.msk.bf16.vlgmr.msra.gmra.mrb[16].mxu1 %vm2841_vm4, %v3018_v62 }
 0x47d   : > { %v2129_v14 = vrot.slane %v2121_v49, %v6413_v8  ;;  %v2136_v15 = vrot.slane %v2122_v24, %v6413_v8  ;;  %v2137_v16 = vcombine.low %v2105_v5, %v2120_v9  ;;  %v2138_v17 = vcombine.high %v2105_v5, %v2120_v9  ;;  %5403 = vmatpush3.bf16.msra.mxu1 %v2429_v46  ;;  %v5703_v9 = vpop.eup %5702 }
 0x47e   : > { %v2186_v56 = vrot.slane %v2172_v61, %v6406_v59  ;;  %v2187_v4 = vcombine.low %v2164_v26, %v2179_v10  ;;  %v2188_v27 = vcombine.high %v2164_v26, %v2179_v10  ;;  %5404 = vmatprep.mubr.msk.bf16.mxu1 %vm5982_vm0, %v5981_v43  ;;  %5414 = vmatprep.subr.bf16.mxu1 %v5981_v43  ;;  %v2961_v5 = vpop.xlane.xlu0 %2960 }
 0x47f   : > { %v2145_v34 = vrot.slane %v2137_v16, %v6413_v8  ;;  %v2152_v11 = vrot.slane %v2138_v17, %v6413_v8  ;;  %v2323_v19 = vcombine.low %v2129_v14, %v2136_v15  ;;  %v5104_v20 = vcombine.high %v2129_v14, %v2136_v15 }
 0x480   : > { %v2195_v28 = vrot.slane %v2187_v4, %v6413_v8  ;;  %v2202_v46 = vrot.slane %v2188_v27, %v6413_v8  ;;  %v2203_v22 = vcombine.low %v2171_v63, %v2186_v56  ;;  %v2204_v31 = vcombine.high %v2171_v63, %v2186_v56 }
 0x481   : > { %v2330_v30 = vrot.slane %v2323_v19, %v6406_v59  ;;  %v2338_v7 = vrot.slane %v5104_v20, %v6406_v59  ;;  %v2339_v37 = vcombine.low %v2145_v34, %v2152_v11  ;;  %v5105_v57 = vcombine.high %v2145_v34, %v2152_v11  ;;  %v5705_v63 = vpop.eup %5704 }
 0x482   : > { %v2211_v3 = vrot.slane %v2203_v22, %v6413_v8  ;;  %v2218_v38 = vrot.slane %v2204_v31, %v6413_v8  ;;  %v2373_v42 = vcombine.low %v2195_v28, %v2202_v46  ;;  %v5106_v45 = vcombine.high %v2195_v28, %v2202_v46 }
 0x483   : > { %v2346_v48 = vrot.slane %v2339_v37, %v6406_v59  ;;  %v2354_v41 = vrot.slane %v5105_v57, %v6406_v59  ;;  %v2355_v49 = vcombine.low %v2330_v30, %v2338_v7  ;;  %5706 = vrcp.f32 %v2961_v5  ;;  %v2967_v57 = vpop.xlane.xlu0 %2966 }
 0x484   : > { %v2380_v51 = vrot.slane %v2373_v42, %v6406_v59  ;;  %v2388_v29 = vrot.slane %v5106_v45, %v6406_v59  ;;  %v2389_v1 = vcombine.low %v2211_v3, %v2218_v38  ;;  %v5107_v35 = vcombine.high %v2211_v3, %v2218_v38 }
 0x485   : > { %v2363_v62 = vcombine.low %v2346_v48, %v2354_v41  ;;  %5708 = vrcp.f32 %v2958_v23  ;;  %v2362_v15 = vrot.slane %v2355_v49, %v6413_v8  ;;  %v3005_v27 = vmul.f32 %v5705_v63, %v6790_v40 }
 0x486   : > { %v2396_v24 = vrot.slane %v2389_v1, %v6406_v59  ;;  %v2404_v61 = vrot.slane %v5107_v35, %v6406_v59  ;;  %v2405_v26 = vcombine.low %v2380_v51, %v2388_v29  ;;  %v3004_v19 = vmul.f32 %v5703_v9, %v6785_v32 }
 0x487   : > { %v2370_v10 = vrot.slane %v2363_v62, %v6413_v8  ;;  %5710 = vrcp.f32 %v6896_v33  ;;  %v2973_v3 = vpop.xlane.xlu0 %2972 }
 0x488   : > { %v2413_v14 = vcombine.low %v2396_v24, %v2404_v61  ;;  %v2412_v16 = vrot.slane %v2405_v26, %v6413_v8  ;;  %v3019_v28 = vpack.c.bf16 %v3005_v27, %v3004_v19 }
 0x489   : > { %v2371_v56 = vcombine.low %v2362_v15, %v2370_v10  ;;  %v2372_v30 = vcombine.high %v2362_v15, %v2370_v10 }
 0x48a   : > { %v2420_v17 = vrot.slane %v2413_v14, %v6413_v8 }
 0x48b   : > { %v2443_v20 = vshrl.u32 %v2371_v56, 16  ;;  %v2979_v45 = vpop.xlane.xlu0 %2978  ;;  %v2451_v25 = vshrl.u32 %v2372_v30, 16 }
 0x48c   : > { %v2421_v4 = vcombine.low %v2412_v16, %v2420_v17  ;;  %v2422_v31 = vcombine.high %v2412_v16, %v2420_v17 }
 0x48d   : > { %v5707_v23 = vpop.eup %5706 }
 0x48e   : > { %v2441_v34 = vpack.i.b16 %v2421_v4, %v2371_v56  ;;  %v2444_v11 = vshrl.u32 %v2421_v4, 16  ;;  %v3009_v40 = vmul.f32 %v5707_v23, %v6800_v60  ;;  %v2449_v37 = vpack.i.b16 %v2422_v31, %v2372_v30 }
 0x48f   : > { %v5709_v22 = vpop.eup %5708  ;;  %v2985_v35 = vpop.xlane.xlu0 %2984  ;;  %v2452_v49 = vshrl.u32 %v2422_v31, 16 }
 0x490   : > { %5397 = vmatpush3.bf16.msra.mxu0 %v2441_v34  ;;  %v2445_v46 = vpack.i.b16 %v2444_v11, %v2443_v20  ;;  %v3008_v32 = vmul.f32 %v5709_v22, %v6795_v55  ;;  %v5581_v34 = vld [vmem:[%s7334_s2 + $0x18] sm:$0xff]   ;;  %v5582_v11 = vld [vmem:[%s7334_s2 + $0x20] sm:$0xff]  }
 0x491   : > { %5408 = vmatprep.subr.bf16.mxu0 %v5981_v43  ;;  %v5711_v42 = vpop.eup %5710  ;;  %v2453_v10 = vpack.i.b16 %v2452_v49, %v2451_v25 }
 0x492   : > { %v3021_v7 = vpack.c.bf16 %v3009_v40, %v3008_v32  ;;  %v3006_v41 = vmul.f32 %v5711_v42, %v6780_v18 }
 0x493   : > { %5399 = vmatmul.mubr.msk.bf16.vlgmr.msra.gmra.mrb[28].mxu0 %vm2841_vm4, %v3019_v28 }
 0x494   : > { %5409 = vmatpush3.bf16.msra.mxu0 %v2445_v46  ;;  %5410 = vmatprep.mubr.msk.bf16.mxu0 %vm5982_vm0, %v5981_v43 }
 0x495   : > { %5420 = vmatprep.subr.bf16.mxu0 %v5981_v43 }
 0x49b   : > { %5411 = vmatmul.mubr.msk.bf16.vlgmr.msra.gmra.mrb[32].mxu0 %vm2841_vm4, %v3021_v7 }
 0x49c   : > { %5421 = vmatpush3.bf16.msra.mxu0 %v2449_v37  ;;  %5422 = vmatprep.mubr.msk.bf16.mxu0 %vm5982_vm0, %v5981_v43 }
 0x49d   : > { %5432 = vmatprep.subr.bf16.mxu0 %v5981_v43 }
 0x4a7   : > { %v2955_v60 = vpop.xlane.xlu1 %2954 }
 0x4a8   : > { %5712 = vrcp.f32 %v2955_v60 }
 0x4ab   : > { %v2964_v38 = vpop.xlane.xlu1 %2963 }
 0x4ac   : > { %5714 = vrcp.f32 %v2964_v38 }
 0x4ad   : > { %5716 = vrcp.f32 %v2967_v57 }
 0x4ae   : > { %5718 = vrcp.f32 %v2973_v3 }
 0x4af   : > { %v2970_v55 = vpop.xlane.xlu1 %2969 }
 0x4b0   : > { %5720 = vrcp.f32 %v2970_v55 }
 0x4b2   : > { %v5713_v48 = vpop.eup %5712 }
 0x4b3   : > { %v3007_v51 = vmul.f32 %v5713_v48, %v6828_v47  ;;  %v2976_v29 = vpop.xlane.xlu1 %2975 }
 0x4b4   : > { %5722 = vrcp.f32 %v2976_v29 }
 0x4b5   : > { %v3020_v1 = vpack.c.bf16 %v3007_v51, %v3006_v41  ;;  %5724 = vrcp.f32 %v2979_v45 }
 0x4b6   : > { %v5715_v33 = vpop.eup %5714  ;;  %5726 = vrcp.f32 %v2985_v35 }
 0x4b7   : > { %v5717_v5 = vpop.eup %5716  ;;  %5405 = vmatmul.mubr.msk.bf16.vlgmr.msra.gmra.mrb[20].mxu1 %vm2841_vm4, %v3020_v1  ;;  %v3010_v18 = vmul.f32 %v5715_v33, %v6834_v39 }
 0x4b8   : > { %v5719_v62 = vpop.eup %5718  ;;  %5415 = vmatpush3.bf16.msra.mxu1 %v2433_v52  ;;  %5416 = vmatprep.mubr.msk.bf16.mxu1 %vm5982_vm0, %v5981_v43  ;;  %v2982_v9 = vpop.xlane.xlu1 %2981  ;;  %v3011_v24 = vmul.f32 %v5717_v5, %v6805_v53 }
 0x4b9   : > { %5426 = vmatprep.subr.bf16.mxu1 %v5981_v43  ;;  %v3013_v61 = vmul.f32 %v5719_v62, %v6811_v6  ;;  %5728 = vrcp.f32 %v2982_v9 }
 0x4ba   : > { %v5721_v47 = vpop.eup %5720  ;;  %v3022_v13 = vpack.c.bf16 %v3011_v24, %v3010_v18 }
 0x4bb   : > { %v3012_v26 = vmul.f32 %v5721_v47, %v6840_v36 }
 0x4bd   : > { %v3023_v52 = vpack.c.bf16 %v3013_v61, %v3012_v26 }
 0x4be   : > { %v5723_v63 = vpop.eup %5722 }
 0x4bf   : > { %5417 = vmatmul.mubr.msk.bf16.vlgmr.msra.gmra.mrb[24].mxu1 %vm2841_vm4, %v3022_v13  ;;  %5423 = vmatmul.mubr.msk.bf16.vlgmr.msra.gmra.mrb[36].mxu0 %vm2841_vm4, %v3023_v52  ;;  %v5725_v39 = vpop.eup %5724  ;;  %v3014_v53 = vmul.f32 %v5723_v63, %v6849_v58  ;;  %v5580_v58 = vld [vmem:[%s7334_s2 + $0x10] sm:$0xff]  }
 0x4c0   : > { %5427 = vmatpush3.bf16.msra.mxu1 %v6891_v21  ;;  %5433 = vmatpush3.bf16.msra.mxu0 %v2453_v10  ;;  %v5727_v6 = vpop.eup %5726  ;;  %v3015_v36 = vmul.f32 %v5725_v39, %v6815_v44  ;;  %v5579_v44 = vld [vmem:[%s7334_s2 + $0x8] sm:$0xff]  }
 0x4c1   : > { %5428 = vmatprep.mubr.msk.bf16.mxu1 %vm5982_vm0, %v5981_v43  ;;  %5434 = vmatprep.mubr.msk.bf16.mxu0 %vm5982_vm0, %v5981_v43  ;;  %v3017_v16 = vmul.f32 %v5727_v6, %v6819_v2  ;;  %v5578_v43 = vld [vmem:[%s7334_s2] sm:$0xff]  }
 0x4c2   : > { %v3024_v15 = vpack.c.bf16 %v3015_v36, %v3014_v53  ;;  %5438 = vmatprep.subr.bf16.mxu1 %v5578_v43 }
 0x4c3   : > { %v5729_v14 = vpop.eup %5728 }
 0x4c4   : > { %v3016_v17 = vmul.f32 %v5729_v14, %v6867_v12 }
 0x4c6   : > { %v3025_v21 = vpack.c.bf16 %v3017_v16, %v3016_v17 }
 0x4c7   : > { %5429 = vmatmul.mubr.msk.bf16.vlgmr.msra.gmra.mrb[28].mxu1 %vm2841_vm4, %v3024_v15 }
 0x4c8   : > { %5435 = vmatmul.mubr.msk.bf16.vlgmr.msra.gmra.mrb[40].mxu0 %vm2841_vm4, %v3025_v21  ;;  %5439 = vmatpush3.bf16.msra.mxu1 %v5578_v43 }
 0x4c9   : > { %4375 = vmatprep.mubr.bf16.mxu0 %v5977_v0  ;;  %5440 = vmatprep.subr.bf16.mxu1 %v5579_v44 }
 0x4cc   : > { %5441 = vmatpush3.bf16.msra.mxu1 %v5579_v44 }
 0x4cd   : > { %5442 = vmatprep.subr.bf16.mxu1 %v5580_v58 }
 0x4d0   : > { %5443 = vmatpush3.bf16.msra.mxu1 %v5580_v58 }
 0x4d1   : > { %5444 = vmatprep.subr.bf16.mxu1 %v5581_v34 }
 0x4d4   : > { %5445 = vmatpush3.bf16.msra.mxu1 %v5581_v34 }
 0x4d5   : > { %5446 = vmatprep.subr.bf16.mxu1 %v5582_v11 }
 0x4d8   : > { %5447 = vmatpush3.bf16.msra.mxu1 %v5582_v11 }
 0x54f   : > { %v3063_v2 = vpop.f32.mrb[16].mxu1 }
 0x550   : > { %v5394_v12 = vpop.f32.mrb[17].mxu1 }
 0x551   : > { %v3066_v56 = vpop.f32.mrb[18].mxu1 }
 0x552   : > { %v3378_v4 = vpack.c.bf16 %v3066_v56, %v3063_v2  ;;  %v5395_v27 = vpop.f32.mrb[19].mxu1 }
 0x554   : > { %v3390_v48 = vshrl.u32 %v3378_v4, 16 }
 0x566   : > { %v3107_v19 = vpop.f32.mrb[28].mxu0 }
 0x567   : > { %v5400_v20 = vpop.f32.mrb[29].mxu0 }
 0x568   : > { %v3110_v28 = vpop.f32.mrb[30].mxu0 }
 0x569   : > { %v3379_v23 = vpack.c.bf16 %v3110_v28, %v3107_v19  ;;  %v5401_v46 = vpop.f32.mrb[31].mxu0 }
 0x56b   : > { %v3406_v7 = vshrl.u32 %v3379_v23, 16 }
 0x56e   : > { %v3195_v22 = vpop.f32.mrb[32].mxu0 }
 0x56f   : > { %v5412_v40 = vpop.f32.mrb[33].mxu0 }
 0x570   : > { %v3198_v31 = vpop.f32.mrb[34].mxu0 }
 0x571   : > { %v3381_v32 = vpack.c.bf16 %v3198_v31, %v3195_v22  ;;  %v5413_v30 = vpop.f32.mrb[35].mxu0 }
 0x573   : > { %v3404_v37 = vpack.i.b16 %v3381_v32, %v3379_v23  ;;  %v3407_v57 = vshrl.u32 %v3381_v32, 16 }
 0x575   : > { %v3408_v60 = vpack.i.b16 %v3407_v57, %v3406_v7  ;;  %v3550_v61 = vcombine.high %v3404_v37, %v6401_v54  ;;  %v3557_v6 = vrot.slane %v3404_v37, %v6406_v59 }
 0x577   : > { %v3616_v13 = vcombine.high %v3408_v60, %v6401_v54  ;;  %v6997_v36 = vrot.slane %v3550_v61, %v6406_v59  ;;  %v7001_v16 = vrot.slane %v3408_v60, %v6406_v59 }
 0x579   : > { %v7004_v2 = vrot.slane %v3616_v13, %v6406_v59 }
 0x58a   : > { %v3151_v3 = vpop.f32.mrb[20].mxu1 }
 0x58b   : > { %v5406_v38 = vpop.f32.mrb[21].mxu1 }
 0x58c   : > { %v3154_v55 = vpop.f32.mrb[22].mxu1 }
 0x58d   : > { %v3380_v42 = vpack.c.bf16 %v3154_v55, %v3151_v3  ;;  %v5407_v45 = vpop.f32.mrb[23].mxu1 }
 0x58f   : > { %v3388_v41 = vpack.i.b16 %v3380_v42, %v3378_v4  ;;  %v3391_v51 = vshrl.u32 %v3380_v42, 16 }
 0x591   : > { %v3392_v29 = vpack.i.b16 %v3391_v51, %v3390_v48  ;;  %v3418_v52 = vcombine.high %v3388_v41, %v6401_v54  ;;  %v3425_v58 = vrot.slane %v3388_v41, %v6406_v59 }
 0x592   : > { %v3239_v1 = vpop.f32.mrb[24].mxu1  ;;  %v3283_v33 = vpop.f32.mrb[36].mxu0 }
 0x593   : > { %v5418_v35 = vpop.f32.mrb[25].mxu1  ;;  %v5424_v5 = vpop.f32.mrb[37].mxu0  ;;  %v3484_v14 = vcombine.high %v3392_v29, %v6401_v54  ;;  %v3432_v12 = vrot.slane %v3418_v52, %v6406_v59  ;;  %v3491_v27 = vrot.slane %v3392_v29, %v6406_v59 }
 0x594   : > { %v3242_v62 = vpop.f32.mrb[26].mxu1  ;;  %v3286_v18 = vpop.f32.mrb[38].mxu0 }
 0x595   : > { %v3382_v47 = vpack.c.bf16 %v3242_v62, %v3239_v1  ;;  %v3383_v9 = vpack.c.bf16 %v3286_v18, %v3283_v33  ;;  %v5419_v49 = vpop.f32.mrb[27].mxu1  ;;  %v5425_v24 = vpop.f32.mrb[39].mxu0  ;;  %v3498_v20 = vrot.slane %v3484_v14, %v6406_v59 }
 0x597   : > { %v3398_v17 = vshrl.u32 %v3382_v47, 16  ;;  %v3414_v28 = vshrl.u32 %v3383_v9, 16 }
 0x59a   : > { %v3327_v26 = vpop.f32.mrb[28].mxu1 }
 0x59b   : > { %v5430_v25 = vpop.f32.mrb[29].mxu1  ;;  %v3371_v10 = vpop.f32.mrb[40].mxu0 }
 0x59c   : > { %v3330_v63 = vpop.f32.mrb[30].mxu1  ;;  %v5436_v15 = vpop.f32.mrb[41].mxu0 }
 0x59d   : > { %v3384_v39 = vpack.c.bf16 %v3330_v63, %v3327_v26  ;;  %v5431_v53 = vpop.f32.mrb[31].mxu1  ;;  %v3374_v44 = vpop.f32.mrb[42].mxu0 }
 0x59e   : > { %v3385_v56 = vpack.c.bf16 %v3374_v44, %v3371_v10  ;;  %v5437_v4 = vpop.f32.mrb[43].mxu0 }
 0x59f   : > { %v3396_v21 = vpack.i.b16 %v3384_v39, %v3382_v47  ;;  %v3399_v43 = vshrl.u32 %v3384_v39, 16 }
 0x5a0   : > { %v3412_v23 = vpack.i.b16 %v3385_v56, %v3383_v9  ;;  %v3415_v46 = vshrl.u32 %v3385_v56, 16 }
 0x5a1   : > { %v3400_v34 = vpack.i.b16 %v3399_v43, %v3398_v17  ;;  %v3433_v11 = vcombine.high %v3396_v21, %v6401_v54  ;;  %v3440_v19 = vrot.slane %v3396_v21, %v6406_v59 }
 0x5a2   : > { %v3416_v7 = vpack.i.b16 %v3415_v46, %v3414_v28  ;;  %v3565_v37 = vcombine.high %v3412_v23, %v6401_v54  ;;  %v3572_v57 = vrot.slane %v3412_v23, %v6406_v59 }
 0x5a3   : > { %v3447_v22 = vrot.slane %v3433_v11, %v6406_v59  ;;  %v3448_v40 = vcombine.low %v3425_v58, %v3440_v19  ;;  %v3449_v31 = vcombine.high %v3425_v58, %v3440_v19  ;;  %v3499_v32 = vcombine.high %v3400_v34, %v6401_v54 }
 0x5a4   : > { %v3506_v30 = vrot.slane %v3400_v34, %v6406_v59  ;;  %v3579_v41 = vrot.slane %v3565_v37, %v6406_v59  ;;  %v3580_v49 = vcombine.low %v3557_v6, %v3572_v57  ;;  %v3581_v24 = vcombine.high %v3557_v6, %v3572_v57 }
 0x5a5   : > { %v3456_v60 = vrot.slane %v3448_v40, %v6413_v8  ;;  %v3463_v3 = vrot.slane %v3449_v31, %v6413_v8  ;;  %v3464_v38 = vcombine.low %v3432_v12, %v3447_v22  ;;  %v3465_v55 = vcombine.high %v3432_v12, %v3447_v22  ;;  %v5583_v40 = vld [vmem:[%s7334_s2 + $0x28] sm:$0xff]  }
 0x5a6   : > { %v3513_v42 = vrot.slane %v3499_v32, %v6406_v59  ;;  %v3514_v45 = vcombine.low %v3491_v27, %v3506_v30  ;;  %v3515_v48 = vcombine.high %v3491_v27, %v3506_v30  ;;  %v3588_v52 = vrot.slane %v3580_v49, %v6413_v8  ;;  %5448 = vmatprep.subr.bf16.mxu1 %v5583_v40 }
 0x5a7   : > { %v3472_v51 = vrot.slane %v3464_v38, %v6413_v8  ;;  %v3479_v29 = vrot.slane %v3465_v55, %v6413_v8  ;;  %v3682_v1 = vcombine.low %v3456_v60, %v3463_v3  ;;  %v5124_v33 = vcombine.high %v3456_v60, %v3463_v3  ;;  %5449 = vmatpush3.bf16.msra.mxu1 %v5583_v40 }
 0x5a8   : > { %v3522_v35 = vrot.slane %v3514_v45, %v6413_v8  ;;  %v3529_v5 = vrot.slane %v3515_v48, %v6413_v8  ;;  %v3530_v62 = vcombine.low %v3498_v20, %v3513_v42  ;;  %v3531_v18 = vcombine.high %v3498_v20, %v3513_v42 }
 0x5a9   : > { %v3698_v47 = vcombine.low %v3472_v51, %v3479_v29  ;;  %v5125_v9 = vcombine.high %v3472_v51, %v3479_v29  ;;  %v3595_v63 = vrot.slane %v3581_v24, %v6413_v8  ;;  %v3596_v10 = vcombine.low %v6997_v36, %v3579_v41 }
 0x5aa   : > { %v3538_v61 = vrot.slane %v3530_v62, %v6413_v8  ;;  %v3545_v26 = vrot.slane %v3531_v18, %v6413_v8  ;;  %v3732_v25 = vcombine.low %v3522_v35, %v3529_v5  ;;  %v5126_v13 = vcombine.high %v3522_v35, %v3529_v5 }
 0x5ab   : > { %v3597_v39 = vcombine.high %v6997_v36, %v3579_v41  ;;  %v3631_v53 = vcombine.high %v3416_v7, %v6401_v54  ;;  %v3638_v14 = vrot.slane %v3416_v7, %v6406_v59  ;;  %v3689_v6 = vrot.slane %v3682_v1, %v6406_v59 }
 0x5ac   : > { %v3697_v15 = vrot.slane %v5124_v33, %v6406_v59  ;;  %v3604_v17 = vrot.slane %v3596_v10, %v6413_v8  ;;  %v3782_v43 = vcombine.low %v3588_v52, %v3595_v63  ;;  %v5128_v44 = vcombine.high %v3588_v52, %v3595_v63 }
 0x5ad   : > { %v3611_v21 = vrot.slane %v3597_v39, %v6413_v8  ;;  %v3645_v58 = vrot.slane %v3631_v53, %v6406_v59  ;;  %v3646_v12 = vcombine.low %v7001_v16, %v3638_v14  ;;  %v3647_v36 = vcombine.high %v7001_v16, %v3638_v14 }
 0x5ae   : > { %v3705_v54 = vrot.slane %v3698_v47, %v6406_v59  ;;  %v3789_v56 = vrot.slane %v3782_v43, %v6406_v59  ;;  %v3797_v4 = vrot.slane %v5128_v44, %v6406_v59  ;;  %v3713_v23 = vrot.slane %v5125_v9, %v6406_v59  ;;  %v5584_v47 = vld [vmem:[%s7334_s2 + $0x30] sm:$0xff]  }
 0x5af   : > { %v3798_v27 = vcombine.low %v3604_v17, %v3611_v21  ;;  %v5129_v34 = vcombine.high %v3604_v17, %v3611_v21  ;;  %v3654_v11 = vrot.slane %v3646_v12, %v6413_v8  ;;  %v3661_v19 = vrot.slane %v3647_v36, %v6413_v8  ;;  %5450 = vmatprep.subr.bf16.mxu1 %v5584_v47 }
 0x5b0   : > { %v3662_v20 = vcombine.low %v7004_v2, %v3645_v58  ;;  %v3663_v28 = vcombine.high %v7004_v2, %v3645_v58  ;;  %v3714_v46 = vcombine.low %v3689_v6, %v3697_v15  ;;  %v3739_v16 = vrot.slane %v3732_v25, %v6406_v59  ;;  %5451 = vmatpush3.bf16.msra.mxu1 %v5584_v47  ;;  %v5585_v15 = vld [vmem:[%s7334_s2 + $0x38] sm:$0xff]  }
 0x5b1   : > { %v3747_v22 = vrot.slane %v5126_v13, %v6406_v59  ;;  %v3832_v30 = vcombine.low %v3654_v11, %v3661_v19  ;;  %v5130_v7 = vcombine.high %v3654_v11, %v3661_v19  ;;  %v3722_v2 = vcombine.low %v3705_v54, %v3713_v23  ;;  %5452 = vmatprep.subr.bf16.mxu1 %v5585_v15 }
 0x5b2   : > { %v3670_v31 = vrot.slane %v3662_v20, %v6413_v8  ;;  %v3677_v32 = vrot.slane %v3663_v28, %v6413_v8  ;;  %v3721_v37 = vrot.slane %v3714_v46, %v6413_v8  ;;  %v3748_v57 = vcombine.low %v3538_v61, %v3545_v26 }
 0x5b3   : > { %v5127_v60 = vcombine.high %v3538_v61, %v3545_v26  ;;  %v3764_v55 = vcombine.low %v3739_v16, %v3747_v22  ;;  %v3805_v42 = vrot.slane %v3798_v27, %v6406_v59  ;;  %v3729_v45 = vrot.slane %v3722_v2, %v6413_v8 }
 0x5b4   : > { %v3848_v3 = vcombine.low %v3670_v31, %v3677_v32  ;;  %v5131_v38 = vcombine.high %v3670_v31, %v3677_v32  ;;  %v3755_v48 = vrot.slane %v3748_v57, %v6406_v59  ;;  %v3813_v51 = vrot.slane %v5129_v34, %v6406_v59  ;;  %5453 = vmatpush3.bf16.msra.mxu1 %v5585_v15 }
 0x5b5   : > { %v3763_v41 = vrot.slane %v5127_v60, %v6406_v59  ;;  %v3814_v29 = vcombine.low %v3789_v56, %v3797_v4  ;;  %v3839_v1 = vrot.slane %v3832_v30, %v6406_v59  ;;  %v3847_v33 = vrot.slane %v5130_v7, %v6406_v59  ;;  %v5132_v60 = vld [vmem:[#allocation2] ss:$0 sm:$0xff] }
 0x5b6   : > { %v3731_v35 = vcombine.high %v3721_v37, %v3729_v45  ;;  %v3822_v62 = vcombine.low %v3805_v42, %v3813_v51  ;;  %v3855_v18 = vrot.slane %v3848_v3, %v6406_v59  ;;  %v3863_v9 = vrot.slane %v5131_v38, %v6406_v59  ;;  %v5746_v51 = vld [vmem:[%s6297_s16] sm:$0xff] }
 0x5b7   : > { %v3772_v5 = vcombine.low %v3755_v48, %v3763_v41  ;;  %v3864_v49 = vcombine.low %v3839_v1, %v3847_v33  ;;  %v3730_v24 = vcombine.low %v3721_v37, %v3729_v45  ;;  %v3771_v61 = vrot.slane %v3764_v55, %v6413_v8  ;;  %v5747_v1 = vld [vmem:[%s6297_s16 + $0x8] sm:$0xff] }
 0x5b8   : > { %v3821_v25 = vrot.slane %v3814_v29, %v6413_v8  ;;  %v3829_v13 = vrot.slane %v3822_v62, %v6413_v8  ;;  %v3872_v52 = vcombine.low %v3855_v18, %v3863_v9  ;;  %v3891_v6 = vshrl.u32 %v3731_v35, 16  ;;  %v5749_v18 = vld [vmem:[%s6297_s16 + $0x18] sm:$0xff]  ;;  %v5586_v9 = vld [vmem:[%s7336_s4] ss:$16 sps:$4 sm:$0xff]  }
 0x5b9   : > { %v3779_v26 = vrot.slane %v3772_v5, %v6413_v8  ;;  %v3871_v14 = vrot.slane %v3864_v49, %v6413_v8  ;;  %v3885_v21 = vshrl.u32 %v3730_v24, 16  ;;  %v5748_v5 = vld [vmem:[%s6297_s16 + $0x10] sm:$0xff] }
 0x5ba   : > { %v3830_v10 = vcombine.low %v3821_v25, %v3829_v13  ;;  %v3831_v53 = vcombine.high %v3821_v25, %v3829_v13  ;;  %v3879_v59 = vrot.slane %v3872_v52, %v6413_v8  ;;  %v5588_v49 = vld [vmem:[%s7336_s4 + $0x4] ss:$16 sps:$4 sm:$0xff]   ;;  %v5597_v25 = vld [vmem:[%s7336_s4 + $0x2c] ss:$16 sps:$4 sm:$0xff]   ;;  %v5592_v13 = vld [vmem:[%s7336_s4 + $0x20] ss:$16 sps:$4 sm:$0xff]  }
 0x5bb   : > { %v3781_v63 = vcombine.high %v3771_v61, %v3779_v26  ;;  %v3780_v39 = vcombine.low %v3771_v61, %v3779_v26  ;;  %v5591_v61 = vld [vmem:[%s7336_s4 + $0xc] ss:$16 sps:$4 sm:$0xff]   ;;  %v5594_v26 = vld [vmem:[%s7336_s4 + $0x24] ss:$16 sps:$4 sm:$0xff]   ;;  %4343 = vmatprep.subr.bf16.mxu0 %v5588_v49  ;;  %v5595_v52 = vld [vmem:[%s7336_s4 + $0x28] ss:$16 sps:$4 sm:$0xff]  }
 0x5bc   : > { %v3880_v58 = vcombine.low %v3871_v14, %v3879_v59  ;;  %v3881_v12 = vcombine.high %v3871_v14, %v3879_v59  ;;  %v3897_v54 = vshrl.u32 %v3830_v10, 16  ;;  %v3903_v27 = vshrl.u32 %v3831_v53, 16  ;;  %4396 = vmatprep.subr.bf16.mxu1 %v5591_v61  ;;  %4344 = vmatpush1.bf16.msra.mxu0 %v5586_v9  ;;  %v5141_v49 = vld [vmem:[#allocation7] ss:$0 sm:$0xff] }
 0x5bd   : > { %v3890_v17 = vpack.i.b16 %v3781_v63, %v3731_v35  ;;  %v3886_v43 = vshrl.u32 %v3780_v39, 16  ;;  %v3892_v44 = vshrl.u32 %v3781_v63, 16  ;;  %v3884_v36 = vpack.i.b16 %v3780_v39, %v3730_v24  ;;  %v5589_v24 = vld [vmem:[%s7336_s4 + $0x8] ss:$16 sps:$4 sm:$0xff]   ;;  %4345 = vmatprep.subr.bf16.mxu0 %v5594_v26 }
 0x5be   : > { %v3898_v8 = vshrl.u32 %v3880_v58, 16  ;;  %v3902_v34 = vpack.i.b16 %v3881_v12, %v3831_v53  ;;  %v3904_v11 = vshrl.u32 %v3881_v12, 16  ;;  %v3896_v19 = vpack.i.b16 %v3880_v58, %v3830_v10 }
 0x5bf   : > { %3910 = vrot.lane.b32.xlu1 %v3890_v17, %s5978_s30  ;;  %v3887_v56 = vpack.i.b16 %v3886_v43, %v3885_v21  ;;  %v3893_v4 = vpack.i.b16 %v3892_v44, %v3891_v6 }
 0x5c0   : > { %v3899_v20 = vpack.i.b16 %v3898_v8, %v3897_v54  ;;  %v3905_v28 = vpack.i.b16 %v3904_v11, %v3903_v27  ;;  %4346 = vmatpush1.bf16.msra.mxu0 %v5592_v13  ;;  %v5598_v27 = vld [vmem:[%s7336_s4 + $0x40] ss:$16 sps:$4 sm:$0xff]   ;;  %v5601_v8 = vld [vmem:[%s7336_s4 + $0x48] ss:$16 sps:$4 sm:$0xff]   ;;  %v5609_v11 = vld [vmem:[%s7336_s4 + $0x6c] ss:$16 sps:$4 sm:$0xff]  }
 0x5c2   : > { %3908 = vrot.lane.b32.xlu0 %v3899_v20, %s5980_s12  ;;  %v5607_v20 = vld [vmem:[%s7336_s4 + $0x68] ss:$16 sps:$4 sm:$0xff]  }
 0x5c3   : > { %3906 = vrot.lane.b32.xlu1 %v3887_v56, %s5980_s12  ;;  %v5600_v56 = vld [vmem:[%s7336_s4 + $0x44] ss:$16 sps:$4 sm:$0xff]  }
 0x5c4   : > { %4347 = vmatprep.subr.bf16.mxu0 %v5600_v56  ;;  %v5642_v56 = vld [vmem:[%s7338_s6 + $0x50] sm:$0xff]  }
 0x5c5   : > { %4348 = vmatpush1.bf16.msra.mxu0 %v5598_v27 }
 0x5c6   : > { %3914 = vrot.lane.b32.xlu0 %v3893_v4, %s5979_s25  ;;  %v5603_v4 = vld [vmem:[%s7336_s4 + $0x4c] ss:$16 sps:$4 sm:$0xff]  }
 0x5c7   : > { %3912 = vrot.lane.b32.xlu1 %v3902_v34, %s5978_s30  ;;  %v5606_v34 = vld [vmem:[%s7336_s4 + $0x64] ss:$16 sps:$4 sm:$0xff]  }
 0x5c8   : > { %4349 = vmatprep.subr.bf16.mxu0 %v5606_v34  ;;  %v5645_v34 = vld [vmem:[%s7338_s6 + $0x90] sm:$0xff]  }
 0x5cb   : > { %3916 = vrot.lane.b32.xlu1 %v3905_v28, %s5979_s25  ;;  %v5612_v28 = vld [vmem:[%s7336_s4 + $0x84] ss:$16 sps:$4 sm:$0xff]  }
 0x631   : > { %v3911_v23 = vpop.permute.xlu1 %3910 }
 0x634   : > { %v3909_v16 = vpop.permute.xlu0 %3908 }
 0x635   : > { %v3907_v46 = vpop.permute.xlu1 %3906  ;;  %v3923_v7 = vsel %vm2464_vm1, %v3896_v19, %v3909_v16  ;;  %v5604_v19 = vld [vmem:[%s7336_s4 + $0x60] ss:$16 sps:$4 sm:$0xff]   ;;  %v5613_v16 = vld [vmem:[%s7336_s4 + $0x88] ss:$16 sps:$4 sm:$0xff]  }
 0x636   : > { %v3920_v22 = vsel %vm2464_vm1, %v3884_v36, %v3907_v46  ;;  %4350 = vmatpush1.bf16.msra.mxu0 %v5604_v19  ;;  %v5610_v46 = vld [vmem:[%s7336_s4 + $0x80] ss:$16 sps:$4 sm:$0xff]   ;;  %v5647_v19 = vld [vmem:[%s7338_s6 + $0xd8] sm:$0xff]  }
 0x637   : > { %v3926_v40 = vsel %vm3924_vm5, %v3920_v22, %v3911_v23  ;;  %v5615_v23 = vld [vmem:[%s7336_s4 + $0x8c] ss:$16 sps:$4 sm:$0xff]   ;;  %4351 = vmatprep.subr.bf16.mxu0 %v5612_v28  ;;  %v5618_v22 = vld [vmem:[%s7336_s4 + $0xa4] ss:$16 sps:$4 sm:$0xff]  }
 0x638   : > { %v3915_v32 = vpop.permute.xlu0 %3914  ;;  %v5649_v28 = vld [vmem:[%s7338_s6 + $0x98] sm:$0xff]  }
 0x639   : > { %v3913_v31 = vpop.permute.xlu1 %3912  ;;  %v3931_v30 = vsel %vm3929_vm6, %v3926_v40, %v3915_v32  ;;  %v5621_v40 = vld [vmem:[%s7336_s4 + $0xac] ss:$16 sps:$4 sm:$0xff]   ;;  %v5619_v32 = vld [vmem:[%s7336_s4 + $0xa8] ss:$16 sps:$4 sm:$0xff]  }
 0x63a   : > { %5454 = vmatprep.mubr.bf16.mxu1 %v3931_v30  ;;  %v3928_v37 = vsel %vm3924_vm5, %v3923_v7, %v3913_v31  ;;  %4352 = vmatpush1.bf16.msra.mxu0 %v5610_v46  ;;  %v5616_v31 = vld [vmem:[%s7336_s4 + $0xa0] ss:$16 sps:$4 sm:$0xff]   ;;  %v5624_v7 = vld [vmem:[%s7336_s4 + $0xc4] ss:$16 sps:$4 sm:$0xff]  }
 0x63b   : > { %4353 = vmatprep.subr.bf16.mxu0 %v5618_v22  ;;  %v5622_v30 = vld [vmem:[%s7336_s4 + $0xc0] ss:$16 sps:$4 sm:$0xff]  }
 0x63c   : > { %v5651_v46 = vld [vmem:[%s7338_s6 + $0xe0] sm:$0xff]  }
 0x63d   : > { %v3917_v2 = vpop.permute.xlu1 %3916  ;;  %v5653_v22 = vld [vmem:[%s7338_s6 + $0xa0] sm:$0xff]  }
 0x63e   : > { %v3934_v57 = vsel %vm3929_vm6, %v3928_v37, %v3917_v2  ;;  %4354 = vmatpush1.bf16.msra.mxu0 %v5616_v31  ;;  %v5625_v37 = vld [vmem:[%s7336_s4 + $0xc8] ss:$16 sps:$4 sm:$0xff]   ;;  %v5627_v2 = vld [vmem:[%s7336_s4 + $0xcc] ss:$16 sps:$4 sm:$0xff]  }
 0x63f   : > { %5455 = vmatmul.mubr.bf16.vlgmr.msra.gmra.mrb[32].mxu1 %v3934_v57  ;;  %v5630_v57 = vld [vmem:[%s7336_s4 + $0xe4] ss:$16 sps:$4 sm:$0xff]   ;;  %4355 = vmatprep.subr.bf16.mxu0 %v5624_v7  ;;  %v5655_v31 = vld [vmem:[%s7338_s6 + $0xe8] sm:$0xff]  }
 0x640   : > { %4428 = vmatprep.mubr.bf16.mxu1 %v5977_v0  ;;  %4397 = vmatpush1.bf16.msra.mxu1 %v5589_v24  ;;  %v5658_v7 = vld [vmem:[%s7338_s6 + $0x70] sm:$0xff]  }
 0x641   : > { %4398 = vmatprep.subr.bf16.mxu1 %v5597_v25 }
 0x642   : > { %4356 = vmatpush1.bf16.msra.mxu0 %v5622_v30  ;;  %v5657_v30 = vld [vmem:[%s7338_s6 + $0xa8] sm:$0xff]  }
 0x643   : > { %4357 = vmatprep.subr.bf16.mxu0 %v5630_v57  ;;  %v5661_v57 = vld [vmem:[%s7338_s6 + $0xb0] sm:$0xff]  }
 0x644   : > { %4399 = vmatpush1.bf16.msra.mxu1 %v5595_v52  ;;  %v5142_v52 = vld [vmem:[#allocation9] ss:$0 sm:$0xff] }
 0x645   : > { %4400 = vmatprep.subr.bf16.mxu1 %v5603_v4 }
 0x648   : > { %4401 = vmatpush1.bf16.msra.mxu1 %v5601_v8  ;;  %v5644_v8 = vld [vmem:[%s7338_s6 + $0x10] sm:$0xff]  }
 0x649   : > { %4402 = vmatprep.subr.bf16.mxu1 %v5609_v11  ;;  %v5646_v11 = vld [vmem:[%s7338_s6 + $0x58] sm:$0xff]  }
 0x64c   : > { %4403 = vmatpush1.bf16.msra.mxu1 %v5607_v20  ;;  %v5648_v20 = vld [vmem:[%s7338_s6 + $0x18] sm:$0xff]  }
 0x64d   : > { %4404 = vmatprep.subr.bf16.mxu1 %v5615_v23  ;;  %v5650_v23 = vld [vmem:[%s7338_s6 + $0x60] sm:$0xff]  }
 0x650   : > { %4405 = vmatpush1.bf16.msra.mxu1 %v5613_v16  ;;  %v5652_v16 = vld [vmem:[%s7338_s6 + $0x20] sm:$0xff]  }
 0x651   : > { %4406 = vmatprep.subr.bf16.mxu1 %v5621_v40  ;;  %v5654_v40 = vld [vmem:[%s7338_s6 + $0x68] sm:$0xff]  }
 0x654   : > { %4407 = vmatpush1.bf16.msra.mxu1 %v5619_v32  ;;  %v5656_v32 = vld [vmem:[%s7338_s6 + $0x28] sm:$0xff]  }
 0x655   : > { %4408 = vmatprep.subr.bf16.mxu1 %v5627_v2  ;;  %v5660_v2 = vld [vmem:[%s7338_s6 + $0x30] sm:$0xff]  }
 0x658   : > { %4409 = vmatpush1.bf16.msra.mxu1 %v5625_v37  ;;  %v5659_v37 = vld [vmem:[%s7338_s6 + $0xf0] sm:$0xff]  }
 0x712   : > { %v5456_v3 = vpop.f32.mrb[32].mxu1 }
 0x713   : > { %v4041_v38 = vpop.f32.mrb[33].mxu1  ;;  %v4050_v48 = vadd.f32 %v5456_v3, %v5132_v60  ;;  %v5628_v3 = vld [vmem:[%s7336_s4 + $0xe0] ss:$16 sps:$4 sm:$0xff]  }
 0x714   : > { %v4042_v55 = vadd.f32 %v5132_v60, %v4041_v38  ;;  %v5457_v42 = vpop.f32.mrb[34].mxu1  ;;  %v5631_v38 = vld [vmem:[%s7336_s4 + $0xe8] ss:$16 sps:$4 sm:$0xff]   ;;  %4358 = vmatpush1.bf16.msra.mxu0 %v5628_v3 }
 0x715   : > { %v4044_v45 = vpop.f32.mrb[35].mxu1  ;;  %v4053_v35 = vadd.f32 %v5457_v42, %v5132_v60  ;;  %v4058_v62 = vadd.f32 %v5748_v5, %v4050_v48  ;;  %v5635_v42 = vld [vmem:[%s7338_s6 + $0xc0] sm:$0xff]   ;;  %v5663_v3 = vld [vmem:[%s7338_s6 + $0xf8] sm:$0xff]  }
 0x716   : > { %v4045_v41 = vadd.f32 %v5132_v60, %v4044_v45  ;;  %v4056_v29 = vadd.f32 %v5746_v51, %v4042_v55  ;;  %v5633_v60 = vld [vmem:[%s7336_s4 + $0xec] ss:$16 sps:$4 sm:$0xff]   ;;  %v5634_v55 = vld [vmem:[%s7338_s6 + $0x40] sm:$0xff]  }
 0x717   : > { %v4059_v47 = vadd.f32 %v5749_v18, %v4053_v35  ;;  %4410 = vmatprep.subr.bf16.mxu1 %v5633_v60  ;;  %5266 = vmatprep.subr.bf16.mxu0 %v5634_v55  ;;  %v5662_v60 = vld [vmem:[%s7338_s6 + $0x78] sm:$0xff]  }
 0x718   : > { %4062 = vadd.xlane.f32.xlu0 %v4056_v29  ;;  %v4057_v33 = vadd.f32 %v5747_v1, %v4045_v41  ;;  %4411 = vmatpush1.bf16.msra.mxu1 %v5631_v38  ;;  %v5664_v38 = vld [vmem:[%s7338_s6 + $0x38] sm:$0xff]  }
 0x719   : > { %5294 = vmatprep.subr.bf16.mxu1 %v5635_v42  ;;  %v5665_v55 = vld [vmem:[%s7338_s6 + $0xb8] sm:$0xff]   ;;  %v4165_v42 = vsub.s32 0, %v6397_v50 }
 0x71a   : > { %4064 = vadd.xlane.f32.xlu1 %v4057_v33 }
 0x71c   : > { %4066 = vadd.xlane.f32.xlu0 %v4058_v62 }
 0x720   : > { %4068 = vadd.xlane.f32.xlu0 %v4059_v47 }
 0x7a5   : > { %v4063_v63 = vpop.xlane.xlu0 %4062 }
 0x7a6   : > { %v4071_v10 = vmul.f32 0.0078125, %v4063_v63 }
 0x7a7   : > { %v4065_v39 = vpop.xlane.xlu1 %4064 }
 0x7a8   : > { %v7114_v53 = vsub.f32 %v4056_v29, %v4071_v10  ;;  %v4072_v14 = vmul.f32 0.0078125, %v4065_v39 }
 0x7a9   : > { %v4067_v59 = vpop.xlane.xlu0 %4066 }
 0x7aa   : > { %v7116_v6 = vsub.f32 %v4057_v33, %v4072_v14  ;;  %v4073_v15 = vmul.f32 0.0078125, %v4067_v59  ;;  %v4079_v17 = vmul.f32 %v7114_v53, %v7114_v53 }
 0x7ac   : > { %v7120_v21 = vsub.f32 %v4058_v62, %v4073_v15  ;;  %4083 = vadd.xlane.f32.xlu1 %v4079_v17  ;;  %v4080_v43 = vmul.f32 %v7116_v6, %v7116_v6 }
 0x7ad   : > { %v4069_v44 = vpop.xlane.xlu0 %4068 }
 0x7ae   : > { %v4074_v58 = vmul.f32 0.0078125, %v4069_v44  ;;  %4085 = vadd.xlane.f32.xlu0 %v4080_v43  ;;  %v4081_v12 = vmul.f32 %v7120_v21, %v7120_v21  ;;  %v5638_v43 = vld [vmem:[%s7338_s6 + $0x48] sm:$0xff]  }
 0x7b0   : > { %v7126_v36 = vsub.f32 %v4059_v47, %v4074_v58  ;;  %4087 = vadd.xlane.f32.xlu1 %v4081_v12 }
 0x7b2   : > { %v4082_v54 = vmul.f32 %v7126_v36, %v7126_v36 }
 0x7b4   : > { %4089 = vadd.xlane.f32.xlu0 %v4082_v54  ;;  %v5641_v54 = vld [vmem:[%s7338_s6 + $0x88] sm:$0xff]  }
 0x839   : > { %v4084_v45 = vpop.xlane.xlu1 %4083 }
 0x83a   : > { %v4091_v48 = vmul.f32 0.0078125, %v4084_v45  ;;  %v4173_v45 = vsub.s32 2, %v6397_v50 }
 0x83b   : > { %v4086_v41 = vpop.xlane.xlu0 %4085 }
 0x83c   : > { %v4095_v51 = vadd.f32 1e-05, %v4091_v48  ;;  %v4092_v29 = vmul.f32 0.0078125, %v4086_v41  ;;  %v4161_v48 = vld [vmem:[#allocation4] sm:$0xf]  ;;  %v4169_v41 = vsub.s32 1, %v6397_v50 }
 0x83d   : > { %v4088_v1 = vpop.xlane.xlu1 %4087 }
 0x83e   : > { %5730 = vrsqrt.f32 %v4095_v51  ;;  %v4096_v33 = vadd.f32 1e-05, %v4092_v29  ;;  %v4093_v35 = vmul.f32 0.0078125, %v4088_v1  ;;  %v4177_v51 = vsub.s32 3, %v6397_v50 }
 0x83f   : > { %v4166_v29 = vrot.slane %v4161_v48, %v4165_v42  ;;  %v4174_v1 = vrot.slane %v4161_v48, %v4173_v45 }
 0x840   : > { %5732 = vrsqrt.f32 %v4096_v33  ;;  %v4097_v5 = vadd.f32 1e-05, %v4093_v35  ;;  %v4170_v33 = vrot.slane %v4161_v48, %v4169_v41  ;;  %v4178_v35 = vrot.slane %v4161_v48, %v4177_v51 }
 0x841   : > { %v4090_v62 = vpop.xlane.xlu0 %4089 }
 0x842   : > { %5734 = vrsqrt.f32 %v4097_v5  ;;  %v4094_v18 = vmul.f32 0.0078125, %v4090_v62 }
 0x844   : > { %v4098_v47 = vadd.f32 1e-05, %v4094_v18 }
 0x846   : > { %5736 = vrsqrt.f32 %v4098_v47 }
 0x848   : > { %v5731_v9 = vpop.eup %5730 }
 0x849   : > { %v4103_v24 = vmul.f32 %v5731_v9, %v7114_v53  ;;  %v5636_v53 = vld [vmem:[%s7338_s6] sm:$0xff]  }
 0x84a   : > { %v5733_v61 = vpop.eup %5732 }
 0x84b   : > { %v4104_v26 = vmul.f32 %v5733_v61, %v7116_v6  ;;  %v4113_v25 = vmul.f32 %v5141_v49, %v4103_v24  ;;  %v5637_v6 = vld [vmem:[%s7338_s6 + $0x80] sm:$0xff]  }
 0x84c   : > { %v5735_v13 = vpop.eup %5734 }
 0x84d   : > { %v4114_v63 = vmul.f32 %v5141_v49, %v4104_v26  ;;  %v7210_v10 = vadd.f32 %v5142_v52, %v4113_v25  ;;  %v4105_v14 = vmul.f32 %v5735_v13, %v7120_v21  ;;  %v5639_v21 = vld [vmem:[%s7338_s6 + $0xc8] sm:$0xff]  }
 0x84f   : > { %v7212_v39 = vadd.f32 %v5142_v52, %v4114_v63  ;;  %v4115_v44 = vmul.f32 %v5141_v49, %v4105_v14 }
 0x850   : > { %v5737_v59 = vpop.eup %5736 }
 0x851   : > { %v4127_v15 = vpack.c.bf16 %v7212_v39, %v7210_v10  ;;  %v4106_v17 = vmul.f32 %v5737_v59, %v7126_v36  ;;  %v5640_v36 = vld [vmem:[%s7338_s6 + $0x8] sm:$0xff]   ;;  %v7246_v4 = vadd.f32 %v5142_v52, %v4115_v44 }
 0x853   : > { %4376 = vmatmul.mubr.bf16.vlgmr.msra.gmra.mrb[44].mxu0 %v4127_v15  ;;  %4429 = vmatmul.mubr.bf16.vlgmr.msra.gmra.mrb[36].mxu1 %v4127_v15  ;;  %v4116_v58 = vmul.f32 %v5141_v49, %v4106_v17 }
 0x854   : > { %4385 = vmatprep.mubr.bf16.mxu0 %v5977_v0  ;;  %4438 = vmatprep.mubr.bf16.mxu1 %v5977_v0  ;;  %v5643_v0 = vld [vmem:[%s7338_s6 + $0xd0] sm:$0xff]  }
 0x855   : > { %v7232_v12 = vadd.f32 %v5142_v52, %v4116_v58  ;;  %5267 = vmatpush3.bf16.msra.mxu0 %v5636_v53  ;;  %5295 = vmatpush3.bf16.msra.mxu1 %v5637_v6 }
 0x856   : > { %5268 = vmatprep.subr.bf16.mxu0 %v5638_v43  ;;  %5296 = vmatprep.subr.bf16.mxu1 %v5639_v21 }
 0x857   : > { %v4128_v27 = vpack.c.bf16 %v7232_v12, %v7246_v4 }
 0x859   : > { %5269 = vmatpush3.bf16.msra.mxu0 %v5640_v36  ;;  %5297 = vmatpush3.bf16.msra.mxu1 %v5641_v54 }
 0x85a   : > { %5270 = vmatprep.subr.bf16.mxu0 %v5642_v56  ;;  %5298 = vmatprep.subr.bf16.mxu1 %v5643_v0 }
 0x85b   : > { %4386 = vmatmul.mubr.bf16.gmra.mrb[48].mxu0 %v4128_v27  ;;  %4439 = vmatmul.mubr.bf16.gmra.mrb[40].mxu1 %v4128_v27 }
 0x85d   : > { %5271 = vmatpush3.bf16.msra.mxu0 %v5644_v8  ;;  %5299 = vmatpush3.bf16.msra.mxu1 %v5645_v34 }
 0x85e   : > { %5272 = vmatprep.subr.bf16.mxu0 %v5646_v11  ;;  %5300 = vmatprep.subr.bf16.mxu1 %v5647_v19 }
 0x861   : > { %5273 = vmatpush3.bf16.msra.mxu0 %v5648_v20  ;;  %5301 = vmatpush3.bf16.msra.mxu1 %v5649_v28 }
 0x862   : > { %5274 = vmatprep.subr.bf16.mxu0 %v5650_v23  ;;  %5302 = vmatprep.subr.bf16.mxu1 %v5651_v46 }
 0x865   : > { %5275 = vmatpush3.bf16.msra.mxu0 %v5652_v16  ;;  %5303 = vmatpush3.bf16.msra.mxu1 %v5653_v22 }
 0x866   : > { %5276 = vmatprep.subr.bf16.mxu0 %v5654_v40  ;;  %5304 = vmatprep.subr.bf16.mxu1 %v5655_v31 }
 0x869   : > { %5277 = vmatpush3.bf16.msra.mxu0 %v5656_v32  ;;  %5305 = vmatpush3.bf16.msra.mxu1 %v5657_v30 }
 0x86a   : > { %5278 = vmatprep.subr.bf16.mxu0 %v5658_v7  ;;  %5306 = vmatprep.subr.bf16.mxu1 %v5659_v37 }
 0x86d   : > { %5279 = vmatpush3.bf16.msra.mxu0 %v5660_v2  ;;  %5307 = vmatpush3.bf16.msra.mxu1 %v5661_v57 }
 0x86e   : > { %5280 = vmatprep.subr.bf16.mxu0 %v5662_v60  ;;  %5308 = vmatprep.subr.bf16.mxu1 %v5663_v3 }
 0x871   : > { %5281 = vmatpush3.bf16.msra.mxu0 %v5664_v38  ;;  %5309 = vmatpush3.bf16.msra.mxu1 %v5665_v55 }
 0x926   : > { %v4377_v5 = vpop.f32.mrb[44].mxu0  ;;  %v4430_v62 = vpop.f32.mrb[36].mxu1 }
 0x927   : > { %v4378_v18 = vadd.f32 %v4377_v5, %v4166_v29  ;;  %v4431_v47 = vadd.f32 %v4430_v62, %v4174_v1  ;;  %v4379_v9 = vpop.f32.mrb[45].mxu0  ;;  %v4432_v49 = vpop.f32.mrb[37].mxu1 }
 0x928   : > { %v4380_v24 = vadd.f32 %v4379_v9, %v4170_v33  ;;  %v4433_v61 = vadd.f32 %v4432_v49, %v4178_v35  ;;  %v4381_v26 = vpop.f32.mrb[46].mxu0  ;;  %v4434_v25 = vpop.f32.mrb[38].mxu1 }
 0x929   : > { %v4382_v13 = vadd.f32 %v4381_v26, %v4166_v29  ;;  %v4435_v52 = vadd.f32 %v4434_v25, %v4174_v1  ;;  %v4383_v63 = vpop.f32.mrb[47].mxu0  ;;  %v4436_v14 = vpop.f32.mrb[39].mxu1  ;;  %v4449_v15 = vmax.f32 %v4378_v18, 0.0  ;;  %v4451_v17 = vmax.f32 %v4431_v47, 0.0 }
 0x92a   : > { %v4384_v59 = vadd.f32 %v4383_v63, %v4170_v33  ;;  %v4437_v50 = vadd.f32 %v4436_v14, %v4178_v35  ;;  %v4450_v43 = vmax.f32 %v4380_v24, 0.0  ;;  %v4452_v21 = vmax.f32 %v4433_v61, 0.0 }
 0x92b   : > { %v4453_v53 = vmax.f32 %v4382_v13, 0.0  ;;  %v4455_v6 = vmax.f32 %v4435_v52, 0.0 }
 0x92c   : > { %v4454_v44 = vmax.f32 %v4384_v59, 0.0  ;;  %v4456_v58 = vmax.f32 %v4437_v50, 0.0 }
 0x92d   : > { %v4465_v36 = vpack.c.bf16 %v4453_v53, %v4449_v15  ;;  %v4467_v54 = vpack.c.bf16 %v4455_v6, %v4451_v17 }
 0x92e   : > { %v4466_v56 = vpack.c.bf16 %v4454_v44, %v4450_v43  ;;  %v4468_v0 = vpack.c.bf16 %v4456_v58, %v4452_v21  ;;  %v4387_v27 = vpop.f32.mrb[48].mxu0  ;;  %v4440_v8 = vpop.f32.mrb[40].mxu1 }
 0x92f   : > { %v4388_v34 = vadd.f32 %v4387_v27, %v4166_v29  ;;  %v4441_v11 = vadd.f32 %v4440_v8, %v4174_v1  ;;  %v4389_v19 = vpop.f32.mrb[49].mxu0  ;;  %v4442_v20 = vpop.f32.mrb[41].mxu1 }
 0x930   : > { %v4390_v28 = vadd.f32 %v4389_v19, %v4170_v33  ;;  %v4443_v23 = vadd.f32 %v4442_v20, %v4178_v35  ;;  %v4391_v46 = vpop.f32.mrb[50].mxu0  ;;  %v4444_v16 = vpop.f32.mrb[42].mxu1  ;;  %4768 = vmatprep.mubr.bf16.mxu0 %v4466_v56  ;;  %4817 = vmatprep.mubr.bf16.mxu1 %v4468_v0 }
 0x931   : > { %v4392_v22 = vadd.f32 %v4391_v46, %v4166_v29  ;;  %v4445_v40 = vadd.f32 %v4444_v16, %v4174_v1  ;;  %v4393_v31 = vpop.f32.mrb[51].mxu0  ;;  %v4446_v32 = vpop.f32.mrb[43].mxu1  ;;  %4769 = vmatmul.mubr.bf16.vlgmr.msra.gmra.mrb[52].mxu0 %v4465_v36  ;;  %4818 = vmatmul.mubr.bf16.vlgmr.msra.gmra.mrb[44].mxu1 %v4467_v54  ;;  %v4457_v37 = vmax.f32 %v4388_v34, 0.0  ;;  %v4459_v2 = vmax.f32 %v4441_v11, 0.0 }
 0x932   : > { %v4394_v30 = vadd.f32 %v4393_v31, %v4170_v33  ;;  %v4447_v7 = vadd.f32 %v4446_v32, %v4178_v35  ;;  %v4458_v3 = vmax.f32 %v4390_v28, 0.0  ;;  %v4460_v38 = vmax.f32 %v4443_v23, 0.0  ;;  %v5175_v33 = vld [vmem:[#allocation6] ss:$0 sm:$0xff] }
 0x933   : > { %v4461_v57 = vmax.f32 %v4392_v22, 0.0  ;;  %v4463_v60 = vmax.f32 %v4445_v40, 0.0 }
 0x934   : > { %v4462_v55 = vmax.f32 %v4394_v30, 0.0  ;;  %v4464_v42 = vmax.f32 %v4447_v7, 0.0 }
 0x935   : > { %v4469_v45 = vpack.c.bf16 %v4461_v57, %v4457_v37  ;;  %v4471_v48 = vpack.c.bf16 %v4463_v60, %v4459_v2 }
 0x936   : > { %v4470_v41 = vpack.c.bf16 %v4462_v55, %v4458_v3  ;;  %v4472_v51 = vpack.c.bf16 %v4464_v42, %v4460_v38 }
 0x938   : > { %4776 = vmatprep.mubr.bf16.mxu0 %v4470_v41  ;;  %4825 = vmatprep.mubr.bf16.mxu1 %v4472_v51 }
 0x939   : > { %4777 = vmatmul.mubr.bf16.gmra.mrb[56].mxu0 %v4469_v45  ;;  %4826 = vmatmul.mubr.bf16.gmra.mrb[48].mxu1 %v4471_v48 }
 0xa04   : > { %v5282_v29 = vpop.f32.mrb[52].mxu0  ;;  %v5310_v1 = vpop.f32.mrb[44].mxu1 }
 0xa05   : > { %v5283_v35 = vpop.f32.mrb[53].mxu0  ;;  %v5311_v5 = vpop.f32.mrb[45].mxu1 }
 0xa06   : > { %v5284_v62 = vadd.f32 %v5283_v35, %v5282_v29  ;;  %v5312_v18 = vadd.f32 %v5311_v5, %v5310_v1  ;;  %v5285_v47 = vpop.f32.mrb[54].mxu0  ;;  %v5313_v9 = vpop.f32.mrb[46].mxu1 }
 0xa07   : > { %v5286_v49 = vpop.f32.mrb[55].mxu0  ;;  %v5314_v24 = vpop.f32.mrb[47].mxu1 }
 0xa08   : > { %v4771_v61 = vadd.f32 %v5284_v62, %v5175_v33  ;;  %v5287_v26 = vadd.f32 %v5286_v49, %v5285_v47  ;;  %v5315_v25 = vadd.f32 %v5314_v24, %v5313_v9  ;;  %v5209_v62 = vld [vmem:[#allocation12] ss:$0 sm:$0xff] }
 0xa0a   : > { %v4820_v13 = vadd.f32 %v5312_v18, %v4771_v61  ;;  %v4774_v52 = vadd.f32 %v5287_v26, %v5175_v33 }
 0xa0c   : > { %v4823_v63 = vadd.f32 %v5315_v25, %v4774_v52  ;;  %v5288_v14 = vpop.f32.mrb[56].mxu0  ;;  %v5316_v59 = vpop.f32.mrb[48].mxu1  ;;  %v4834_v50 = vadd.f32 %v4820_v13, %v7210_v10 }
 0xa0d   : > { %v5289_v15 = vpop.f32.mrb[57].mxu0  ;;  %v5317_v17 = vpop.f32.mrb[49].mxu1 }
 0xa0e   : > { %v5290_v53 = vadd.f32 %v5289_v15, %v5288_v14  ;;  %v5318_v6 = vadd.f32 %v5317_v17, %v5316_v59  ;;  %v5291_v43 = vpop.f32.mrb[58].mxu0  ;;  %v5319_v21 = vpop.f32.mrb[50].mxu1  ;;  %4840 = vadd.xlane.f32.xlu1 %v4834_v50  ;;  %v4835_v44 = vadd.f32 %v4823_v63, %v7212_v39 }
 0xa0f   : > { %v5292_v58 = vpop.f32.mrb[59].mxu0  ;;  %v5320_v36 = vpop.f32.mrb[51].mxu1 }
 0xa10   : > { %v4779_v54 = vadd.f32 %v5290_v53, %v5175_v33  ;;  %v5293_v56 = vadd.f32 %v5292_v58, %v5291_v43  ;;  %v5321_v0 = vadd.f32 %v5320_v36, %v5319_v21  ;;  %4842 = vadd.xlane.f32.xlu0 %v4835_v44 }
 0xa12   : > { %v4828_v27 = vadd.f32 %v5318_v6, %v4779_v54  ;;  %v4782_v8 = vadd.f32 %v5293_v56, %v5175_v33  ;;  %v5208_v33 = vld [vmem:[#allocation10] ss:$0 sm:$0xff] }
 0xa14   : > { %v4831_v34 = vadd.f32 %v5321_v0, %v4782_v8  ;;  %v4836_v10 = vadd.f32 %v4828_v27, %v7246_v4 }
 0xa16   : > { %4844 = vadd.xlane.f32.xlu1 %v4836_v10  ;;  %v4837_v11 = vadd.f32 %v4831_v34, %v7232_v12 }
 0xa18   : > { %4846 = vadd.xlane.f32.xlu0 %v4837_v11 }
 0xa9b   : > { %v4841_v19 = vpop.xlane.xlu1 %4840 }
 0xa9c   : > { %v4848_v20 = vmul.f32 0.0078125, %v4841_v19 }
 0xa9d   : > { %v4843_v28 = vpop.xlane.xlu0 %4842 }
 0xa9e   : > { %v4852_v23 = vsub.f32 %v4834_v50, %v4848_v20  ;;  %v4849_v39 = vmul.f32 0.0078125, %v4843_v28 }
 0xaa0   : > { %v4853_v46 = vsub.f32 %v4835_v44, %v4849_v39  ;;  %v4856_v16 = vmul.f32 %v4852_v23, %v4852_v23 }
 0xaa2   : > { %4860 = vadd.xlane.f32.xlu1 %v4856_v16  ;;  %v4857_v22 = vmul.f32 %v4853_v46, %v4853_v46 }
 0xaa3   : > { %v4845_v40 = vpop.xlane.xlu1 %4844 }
 0xaa4   : > { %v4850_v31 = vmul.f32 0.0078125, %v4845_v40  ;;  %4862 = vadd.xlane.f32.xlu0 %v4857_v22 }
 0xaa5   : > { %v4847_v32 = vpop.xlane.xlu0 %4846 }
 0xaa6   : > { %v4854_v30 = vsub.f32 %v4836_v10, %v4850_v31  ;;  %v4851_v7 = vmul.f32 0.0078125, %v4847_v32 }
 0xaa8   : > { %v4855_v4 = vsub.f32 %v4837_v11, %v4851_v7  ;;  %v4858_v37 = vmul.f32 %v4854_v30, %v4854_v30 }
 0xaaa   : > { %4864 = vadd.xlane.f32.xlu1 %v4858_v37  ;;  %v4859_v12 = vmul.f32 %v4855_v4, %v4855_v4 }
 0xaac   : > { %4866 = vadd.xlane.f32.xlu0 %v4859_v12 }
 0xb2f   : > { %v4861_v2 = vpop.xlane.xlu1 %4860 }
 0xb30   : > { %v4868_v57 = vmul.f32 0.0078125, %v4861_v2 }
 0xb31   : > { %v4863_v60 = vpop.xlane.xlu0 %4862 }
 0xb32   : > { %v4872_v3 = vadd.f32 1e-05, %v4868_v57  ;;  %v4869_v38 = vmul.f32 0.0078125, %v4863_v60 }
 0xb34   : > { %5738 = vrsqrt.f32 %v4872_v3  ;;  %v4873_v55 = vadd.f32 1e-05, %v4869_v38 }
 0xb36   : > { %5740 = vrsqrt.f32 %v4873_v55 }
 0xb37   : > { %v4865_v42 = vpop.xlane.xlu1 %4864 }
 0xb38   : > { %v4870_v45 = vmul.f32 0.0078125, %v4865_v42 }
 0xb39   : > { %v4867_v48 = vpop.xlane.xlu0 %4866 }
 0xb3a   : > { %v4874_v41 = vadd.f32 1e-05, %v4870_v45  ;;  %v4871_v51 = vmul.f32 0.0078125, %v4867_v48 }
 0xb3c   : > { %5742 = vrsqrt.f32 %v4874_v41  ;;  %v4875_v29 = vadd.f32 1e-05, %v4871_v51 }
 0xb3e   : > { %v5739_v1 = vpop.eup %5738  ;;  %5744 = vrsqrt.f32 %v4875_v29 }
 0xb3f   : > { %v4880_v35 = vmul.f32 %v5739_v1, %v4852_v23 }
 0xb40   : > { %v5741_v5 = vpop.eup %5740 }
 0xb41   : > { %v4890_v18 = vmul.f32 %v5208_v33, %v4880_v35  ;;  %v4881_v47 = vmul.f32 %v5741_v5, %v4853_v46 }
 0xb43   : > { %v4900_v9 = vadd.f32 %v5209_v62, %v4890_v18  ;;  %v4891_v49 = vmul.f32 %v5208_v33, %v4881_v47 }
 0xb45   : > { %4904 = vst [vmem:[%s562_s26] sm:$0xff] %v4900_v9  ;;  %v4901_v24 = vadd.f32 %v5209_v62, %v4891_v49 }
 0xb46   : > { %v5743_v61 = vpop.eup %5742 }
 0xb47   : > { %4905 = vst [vmem:[%s562_s26 + $0x8] sm:$0xff] %v4901_v24  ;;  %v4882_v26 = vmul.f32 %v5743_v61, %v4854_v30 }
 0xb48   : > { %v5745_v25 = vpop.eup %5744 }
 0xb49   : > { %v4892_v13 = vmul.f32 %v5208_v33, %v4882_v26  ;;  %v4883_v52 = vmul.f32 %v5745_v25, %v4855_v4 }
 0xb4b   : > { %v4902_v63 = vadd.f32 %v5209_v62, %v4892_v13  ;;  %v4893_v14 = vmul.f32 %v5208_v33, %v4883_v52 }
 0xb4d   : > { %4906 = vst [vmem:[%s562_s26 + $0x10] sm:$0xff] %v4902_v63  ;;  %v4903_v59 = vadd.f32 %v5209_v62, %v4893_v14 }
 0xb4f   : > { %4907 = vst [vmem:[%s562_s26 + $0x18] sm:$0xff] %v4903_v59 }
 0xb50 PF: > { %s28_s29 = sadd.s32 1, %s5968_s29  }
 0xb51   : > { %p25_p7 = scmp.ge.s32.totalorder %s28_s29, 4  }
 0xb53   :  { %27 = sbr.rel (!%p25_p7) target bundleno = 4 (0x4), region = 135 }
 0xb5a   :  { %4932 = vsyncpa [#allocation3], 1 }
 0xb5b   :  { %4934 = vsyncpa [#allocation3 + $0x1], 1 }
 0xb5c   :  { %4935 = vsyncpa [#allocation5], 1 }
 0xb5d   :  { %4936 = vsyncpa [#allocation8], 1 }
 0xb5e   :  { %4937 = vsyncpa [#allocation11], 1 }

// kernel: gpt_forward.4
= control target key start
LH: loop header
LB: loop body
LE: loop exit
PB: predicated region body
PF: predicated region fallthrough
CT: control target
= control target key end

     0   :  { %s5676_s29 = smov 0   ;;  %s6773_s0 = inlined_call_operand.vmem [shape: f32[4,16,128], index: 0, kind: input, shape index: {}]   ;;  %s6774_s1 = inlined_call_operand.vmem [shape: bf16[128,384], index: 1, kind: input, shape index: {}]   ;;  %s6775_s2 = inlined_call_operand.vmem [shape: bf16[128,128], index: 2, kind: input, shape index: {}]   ;;  %s6776_s3 = inlined_call_operand.vmem [shape: f32[1,128], index: 3, kind: input, shape index: {}]   ;;  %s6777_s4 = inlined_call_operand.vmem [shape: bf16[128,512], index: 4, kind: input, shape index: {}]   ;;  %s6778_s5 = inlined_call_operand.vmem [shape: f32[1,512], index: 5, kind: input, shape index: {}]   ;;  %s6779_s6 = inlined_call_operand.vmem [shape: bf16[512,128], index: 6, kind: input, shape index: {}]   ;;  %s6780_s7 = inlined_call_operand.vmem [shape: f32[1,128], index: 7, kind: input, shape index: {}]   ;;  %s6781_s8 = inlined_call_operand.vmem [shape: f32[1,128], index: 8, kind: input, shape index: {}]   ;;  %s6782_s9 = inlined_call_operand.vmem [shape: f32[1,128], index: 9, kind: input, shape index: {}]   ;;  %s6783_s10 = inlined_call_operand.vmem [shape: f32[1,128], index: 10, kind: input, shape index: {}]   ;;  %s6784_s11 = inlined_call_operand.vmem [shape: f32[1,128], index: 11, kind: input, shape index: {}]   ;;  %s6785_s12 = inlined_call_operand.vmem [shape: f32[1,128], index: 12, kind: input, shape index: {}]   ;;  %s6786_s13 = inlined_call_operand.vmem [shape: f32[1,128], index: 13, kind: input, shape index: {}]   ;;  %s6787_s14 = inlined_call_operand.vmem [shape: f32[4,16,128], index: 14, kind: output, shape index: {}]  }
   0x1 LB: > { %s4944_s30 = sadd.s32 4294967295, %s5590_s29   ;;  %p4948_p0 = scmp.ge.s32.totalorder %s5590_s29, 1  ;;  %s5590_s29 = sphi %s5676_s29, %s24_s29  }
   0x2   : > { %p414_p1 = scmp.lt.s32.totalorder %s5590_s29, 3 }
   0x4   : > { %p415_p2 = pnand %p4948_p0, %p414_p1 }
   0x5   : > { %v5372_v0 = vld [vmem:[%s6774_s1 + $0x4] ss:$12 sps:$4 sm:$0xff] (!%p415_p2)   ;;  %s4949_s17 = sshll.u32 (!%p415_p2), %s4944_s30, 1  ;;  %v5374_v1 = vld [vmem:[%s6774_s1] ss:$12 sps:$4 sm:$0xff] (!%p415_p2)   ;;  %v5592_v2 = vmov (!%p415_p2), 0   ;;  %v803_v46 = vlaneseq (!%p415_p2) }
   0x6   : > { %418 = sbr.rel (%p415_p2) target bundleno = 3032 (0xbd8), region = 76  ;;  %675 = vmatprep.mubr.bf16.mxu0 (!%p415_p2), %v5592_v2  ;;  %p463_p3 = scmp.lt.s32.totalorder (!%p415_p2), %s4949_s17, 3  ;;  %643 = vmatprep.subr.bf16.mxu0 (!%p415_p2), %v5372_v0  ;;  %v5375_v3 = vld [vmem:[%s6774_s1 + $0x1c] ss:$12 sps:$4 sm:$0xff] (!%p415_p2)   ;;  %v5377_v4 = vld [vmem:[%s6774_s1 + $0x18] ss:$12 sps:$4 sm:$0xff] (!%p415_p2)   ;;  %v5815_v54 = vpack.i.b16 (!%p415_p2), %v5592_v2, %v5592_v2 }
   0x7   : > { %644 = vmatpush1.bf16.msra.mxu0 (!%p415_p2), %v5374_v1  ;;  %v5378_v5 = vld [vmem:[%s6774_s1 + $0x34] ss:$12 sps:$4 sm:$0xff] (!%p415_p2)   ;;  %v5380_v6 = vld [vmem:[%s6774_s1 + $0x30] ss:$12 sps:$4 sm:$0xff] (!%p415_p2)   ;;  %v5381_v7 = vld [vmem:[%s6774_s1 + $0x4c] ss:$12 sps:$4 sm:$0xff] (!%p415_p2)  }
   0x8   : > { %645 = vmatprep.subr.bf16.mxu0 (!%p415_p2), %v5375_v3  ;;  %v5383_v9 = vld [vmem:[%s6774_s1 + $0x48] ss:$12 sps:$4 sm:$0xff] (!%p415_p2)   ;;  %v5384_v10 = vld [vmem:[%s6774_s1 + $0x64] ss:$12 sps:$4 sm:$0xff] (!%p415_p2)   ;;  %v5386_v13 = vld [vmem:[%s6774_s1 + $0x60] ss:$12 sps:$4 sm:$0xff] (!%p415_p2)  }
   0x9   : > { %v5387_v14 = vld [vmem:[%s6774_s1 + $0x7c] ss:$12 sps:$4 sm:$0xff] (!%p415_p2)   ;;  %v5389_v15 = vld [vmem:[%s6774_s1 + $0x78] ss:$12 sps:$4 sm:$0xff] (!%p415_p2)   ;;  %v5390_v16 = vld [vmem:[%s6774_s1 + $0x94] ss:$12 sps:$4 sm:$0xff] (!%p415_p2)  }
   0xa   : > { %v5392_v17 = vld [vmem:[%s6774_s1 + $0x90] ss:$12 sps:$4 sm:$0xff] (!%p415_p2)   ;;  %v5393_v18 = vld [vmem:[%s6774_s1 + $0xac] ss:$12 sps:$4 sm:$0xff] (!%p415_p2)   ;;  %v5395_v19 = vld [vmem:[%s6774_s1 + $0xa8] ss:$12 sps:$4 sm:$0xff] (!%p415_p2)  }
   0xb   : > { %646 = vmatpush1.bf16.msra.mxu0 (!%p415_p2), %v5377_v4  ;;  %v5396_v23 = vld [vmem:[%s6774_s1 + $0x8] ss:$12 sps:$4 sm:$0xff] (!%p415_p2)   ;;  %v5397_v24 = vld [vmem:[%s6774_s1 + $0x20] ss:$12 sps:$4 sm:$0xff] (!%p415_p2)   ;;  %v5398_v25 = vld [vmem:[%s6774_s1 + $0x38] ss:$12 sps:$4 sm:$0xff] (!%p415_p2)  }
   0xc   : > { %647 = vmatprep.subr.bf16.mxu0 (!%p415_p2), %v5378_v5  ;;  %5219 = vmatprep.subr.bf16.mxu1 (!%p415_p2), %v5396_v23  ;;  %s5593_s20 = smov (!%p415_p2), 64   ;;  %s5594_s21 = smov (!%p415_p2), 96   ;;  %v5399_v37 = vld [vmem:[%s6774_s1 + $0x50] ss:$12 sps:$4 sm:$0xff] (!%p415_p2)   ;;  %v5400_v39 = vld [vmem:[%s6774_s1 + $0x68] ss:$12 sps:$4 sm:$0xff] (!%p415_p2)  }
   0xd   : > { %s6789_s17 = smov (!%p463_p3, %s4949_s17), 3  ;;  %5220 = vmatpush3.bf16.msra.mxu1 %v5396_v23  ;;  %s5595_s22 = smov 32   ;;  %v5401_v40 = vld [vmem:[%s6774_s1 + $0x80] ss:$12 sps:$4 sm:$0xff]   ;;  %v5402_v41 = vld [vmem:[%s6774_s1 + $0x98] ss:$12 sps:$4 sm:$0xff]  }
   0xe   : > { %s5109_s26 = sshll.u32 %s6789_s17, 4  ;;  %5221 = vmatprep.subr.bf16.mxu1 %v5397_v24  ;;  %v5403_v42 = vld [vmem:[%s6774_s1 + $0xb0] ss:$12 sps:$4 sm:$0xff]   ;;  %v5596_v43 = vmov 0.0   ;;  %vm5597_vm0 = vmmov 0   ;;  %v5811_v50 = vshrl.u32 %v803_v46, 7 }
   0xf   : > { %s5711_s16 = scalar_lea.vmem %s6773_s0, %s5109_s26  ;;  %648 = vmatpush1.bf16.msra.mxu0 %v5380_v6  ;;  %v5598_v44 = vmov 1983009808   ;;  %v5599_v52 = vmov 1934713408   ;;  %vm2376_vm1 = vcmask 261120   ;;  %vm2753_vm4 = vcmask 130048   ;;  %s474_s24 = scalar_lea.vmem %s6787_s14, %s5109_s26 }
  0x10   : > { %v477_v8 = vld [vmem:[%s5711_s16] sm:$0xff]  ;;  %v478_v11 = vld [vmem:[%s5711_s16 + $0x8] sm:$0xff]  ;;  %649 = vmatprep.subr.bf16.mxu0 %v5381_v7  ;;  %v479_v20 = vld [vmem:[%s5711_s16 + $0x10] sm:$0xff]  ;;  %v801_v45 = vunpack.c.l.s4 %v5598_v44  ;;  %v832_v53 = vunpack.c.l.s4 %v5599_v52  ;;  %vm3836_vm5 = vcmask 523264   ;;  %vm3841_vm6 = vcmask 785408  }
  0x11   : > { %v481_v12 = vpack.c.bf16 %v478_v11, %v477_v8  ;;  %v480_v21 = vld [vmem:[%s5711_s16 + $0x18] sm:$0xff]  ;;  %5222 = vmatpush3.bf16.msra.mxu1 %v5397_v24 }
  0x12   : > { %v482_v22 = vpack.c.bf16 %v480_v21, %v479_v20  ;;  %5223 = vmatprep.subr.bf16.mxu1 %v5398_v25  ;;  %v802_v49 = vunpack.c.0.s8 %v801_v45  ;;  %v833_v61 = vunpack.c.0.s8 %v832_v53 }
  0x13   : > { %5235 = vmatprep.mubr.bf16.mxu1 %v481_v12  ;;  %650 = vmatpush1.bf16.msra.mxu0 %v5383_v9 }
  0x14   : > { %651 = vmatprep.subr.bf16.mxu0 %v5384_v10  ;;  %v5820_v59 = vsub.s32 %v802_v49, %v5811_v50  ;;  %v5827_v8 = vsub.s32 %v833_v61, %v5811_v50 }
  0x15   : > { %5224 = vmatpush3.bf16.msra.mxu1 %v5398_v25 }
  0x16   : > { %5225 = vmatprep.subr.bf16.mxu1 %v5399_v37 }
  0x17   : > { %652 = vmatpush1.bf16.msra.mxu0 %v5386_v13 }
  0x18   : > { %653 = vmatprep.subr.bf16.mxu0 %v5387_v14 }
  0x19   : > { %5226 = vmatpush3.bf16.msra.mxu1 %v5399_v37 }
  0x1a   : > { %5227 = vmatprep.subr.bf16.mxu1 %v5400_v39 }
  0x1b   : > { %654 = vmatpush1.bf16.msra.mxu0 %v5389_v15 }
  0x1c   : > { %655 = vmatprep.subr.bf16.mxu0 %v5390_v16 }
  0x1d   : > { %5228 = vmatpush3.bf16.msra.mxu1 %v5400_v39 }
  0x1e   : > { %5229 = vmatprep.subr.bf16.mxu1 %v5401_v40 }
  0x1f   : > { %656 = vmatpush1.bf16.msra.mxu0 %v5392_v17 }
  0x20   : > { %657 = vmatprep.subr.bf16.mxu0 %v5393_v18 }
  0x21   : > { %5230 = vmatpush3.bf16.msra.mxu1 %v5401_v40 }
  0x22   : > { %5231 = vmatprep.subr.bf16.mxu1 %v5402_v41 }
  0x23   : > { %658 = vmatpush1.bf16.msra.mxu0 %v5395_v19 }
  0x24   : > { %5239 = vmatprep.subr.bf16.mxu0 %v5596_v43 }
  0x25   : > { %5232 = vmatpush3.bf16.msra.mxu1 %v5402_v41 }
  0x26   : > { %676 = vmatmul.mubr.bf16.vlgmr.msra.gmra.mrb[0].mxu0 %v481_v12  ;;  %5233 = vmatprep.subr.bf16.mxu1 %v5403_v42 }
  0x27   : > { %685 = vmatprep.mubr.bf16.mxu0 %v5592_v2 }
  0x29   : > { %5234 = vmatpush3.bf16.msra.mxu1 %v5403_v42 }
  0x2a   : > { %5251 = vmatprep.subr.bf16.mxu1 %v5596_v43 }
  0x2c   : > { %5236 = vmatmul.mubr.bf16.vlgmr.msra.gmra.mrb[0].mxu1 %v482_v22 }
  0x2d   : > { %5253 = vmatprep.mubr.msk.bf16.mxu1 %vm5597_vm0, %v5596_v43 }
  0x2e   : > { %686 = vmatmul.mubr.bf16.gmra.mrb[4].mxu0 %v482_v22 }
  0x2f   : > { %5241 = vmatprep.mubr.msk.bf16.mxu0 %vm5597_vm0, %v5596_v43 }
  0xf9   : > { %v677_v26 = vpop.f32.mrb[0].mxu0 }
  0xfa   : > { %v679_v27 = vpop.f32.mrb[1].mxu0 }
  0xfb   : > { %v681_v28 = vpop.f32.mrb[2].mxu0 }
  0xfc   : > { %v5757_v29 = vpack.c.bf16 %v681_v28, %v677_v26  ;;  %v683_v30 = vpop.f32.mrb[3].mxu0 }
  0xfd   : > { %v5759_v31 = vpack.c.bf16 %v683_v30, %v679_v27 }
  0xfe   : > { %753 = vrot.lane.b32.xlu0 %v5757_v29, %s5593_s20  ;;  %749 = vrot.lane.b32.xlu1 %v5757_v29, %s5594_s21  ;;  %v765_v56 = vshrl.u32 %v5757_v29, 16 }
  0xff   : > { %v1307_v7 = vshrl.u32 %v5759_v31, 16 }
 0x101   : > { %v687_v32 = vpop.f32.mrb[4].mxu0 }
 0x102   : > { %1299 = vrot.lane.b32.xlu1 %v5759_v31, %s5595_s22  ;;  %1291 = vrot.lane.b32.xlu0 %v5759_v31, %s5594_s21  ;;  %v689_v33 = vpop.f32.mrb[5].mxu0 }
 0x103   : > { %v691_v34 = vpop.f32.mrb[6].mxu0 }
 0x104   : > { %v5769_v35 = vpack.c.bf16 %v691_v34, %v687_v32  ;;  %v693_v36 = vpop.f32.mrb[7].mxu0 }
 0x105   : > { %v5774_v38 = vpack.c.bf16 %v693_v36, %v689_v33 }
 0x106   : > { %757 = vrot.lane.b32.xlu1 %v5757_v29, %s5595_s22  ;;  %1295 = vrot.lane.b32.xlu0 %v5759_v31, %s5593_s20 }
 0x10a   : > { %1297 = vrot.lane.b32.xlu1 %v5774_v38, %s5593_s20  ;;  %1293 = vrot.lane.b32.xlu0 %v5774_v38, %s5594_s21 }
 0x10e   : > { %751 = vrot.lane.b32.xlu1 %v5769_v35, %s5594_s21  ;;  %1301 = vrot.lane.b32.xlu0 %v5774_v38, %s5595_s22 }
 0x112   : > { %759 = vrot.lane.b32.xlu1 %v5769_v35, %s5595_s22  ;;  %755 = vrot.lane.b32.xlu0 %v5769_v35, %s5593_s20 }
 0x170   : > { %v754_v47 = vpop.permute.xlu0 %753  ;;  %v750_v48 = vpop.permute.xlu1 %749 }
 0x171   : > { %v766_v51 = vshrl.u32 %v750_v48, 16  ;;  %v763_v55 = vpack.i.b16 %v750_v48, %v5757_v29  ;;  %v773_v0 = vshrl.u32 %v754_v47, 16 }
 0x173   : > { %v767_v60 = vpack.i.b16 %v766_v51, %v765_v56  ;;  %v799_v62 = vcombine.high %v763_v55, %v5815_v54  ;;  %v806_v5 = vrot.slane %v763_v55, %v5820_v59 }
 0x174   : > { %v1300_v57 = vpop.permute.xlu1 %1299  ;;  %v1292_v58 = vpop.permute.xlu0 %1291 }
 0x175   : > { %v865_v6 = vcombine.high %v767_v60, %v5815_v54  ;;  %v813_v9 = vrot.slane %v799_v62, %v5820_v59  ;;  %v872_v13 = vrot.slane %v767_v60, %v5820_v59  ;;  %v1316_v14 = vshrl.u32 %v1300_v57, 16 }
 0x176   : > { %v1305_v15 = vpack.i.b16 %v1292_v58, %v5759_v31  ;;  %v1308_v22 = vshrl.u32 %v1292_v58, 16 }
 0x177   : > { %v879_v21 = vrot.slane %v865_v6, %v5820_v59 }
 0x178   : > { %v758_v63 = vpop.permute.xlu1 %757  ;;  %v1296_v4 = vpop.permute.xlu0 %1295  ;;  %v1342_v44 = vrot.slane %v1305_v15, %v5820_v59  ;;  %v1309_v55 = vpack.i.b16 %v1308_v22, %v1307_v7 }
 0x179   : > { %v771_v1 = vpack.i.b16 %v758_v63, %v754_v47  ;;  %v774_v3 = vshrl.u32 %v758_v63, 16  ;;  %v1313_v16 = vpack.i.b16 %v1300_v57, %v1296_v4  ;;  %v1315_v24 = vshrl.u32 %v1296_v4, 16 }
 0x17a   : > { %v1335_v57 = vcombine.high %v1305_v15, %v5815_v54 }
 0x17b   : > { %v775_v10 = vpack.i.b16 %v774_v3, %v773_v0  ;;  %v814_v11 = vcombine.high %v771_v1, %v5815_v54  ;;  %v821_v12 = vrot.slane %v771_v1, %v5820_v59  ;;  %v1357_v32 = vrot.slane %v1313_v16, %v5820_v59 }
 0x17c   : > { %v1350_v48 = vcombine.high %v1313_v16, %v5815_v54  ;;  %v1317_v56 = vpack.i.b16 %v1316_v14, %v1315_v24  ;;  %v1294_v7 = vpop.permute.xlu0 %1293  ;;  %v1298_v14 = vpop.permute.xlu1 %1297 }
 0x17d   : > { %v828_v17 = vrot.slane %v814_v11, %v5820_v59  ;;  %v829_v18 = vcombine.low %v806_v5, %v821_v12  ;;  %v830_v19 = vcombine.high %v806_v5, %v821_v12  ;;  %v880_v20 = vcombine.high %v775_v10, %v5815_v54 }
 0x17e   : > { %v887_v23 = vrot.slane %v775_v10, %v5820_v59  ;;  %v1365_v61 = vcombine.low %v1342_v44, %v1357_v32  ;;  %v1364_v5 = vrot.slane %v1350_v48, %v5820_v59  ;;  %v1366_v6 = vcombine.high %v1342_v44, %v1357_v32 }
 0x17f   : > { %v837_v25 = vrot.slane %v829_v18, %v5827_v8  ;;  %v844_v26 = vrot.slane %v830_v19, %v5827_v8  ;;  %v845_v27 = vcombine.low %v813_v9, %v828_v17  ;;  %v846_v28 = vcombine.high %v813_v9, %v828_v17 }
 0x180   : > { %v894_v29 = vrot.slane %v880_v20, %v5820_v59  ;;  %v895_v30 = vcombine.low %v872_v13, %v887_v23  ;;  %v896_v31 = vcombine.high %v872_v13, %v887_v23  ;;  %v1416_v9 = vcombine.high %v1317_v56, %v5815_v54 }
 0x181   : > { %v853_v33 = vrot.slane %v845_v27, %v5827_v8  ;;  %v860_v34 = vrot.slane %v846_v28, %v5827_v8  ;;  %v1063_v36 = vcombine.low %v837_v25, %v844_v26  ;;  %v4979_v37 = vcombine.high %v837_v25, %v844_v26 }
 0x182   : > { %v903_v39 = vrot.slane %v895_v30, %v5827_v8  ;;  %v910_v40 = vrot.slane %v896_v31, %v5827_v8  ;;  %v911_v41 = vcombine.low %v879_v21, %v894_v29  ;;  %v912_v42 = vcombine.high %v879_v21, %v894_v29  ;;  %v1302_v29 = vpop.permute.xlu0 %1301 }
 0x183   : > { %v1079_v45 = vcombine.low %v853_v33, %v860_v34  ;;  %v4980_v47 = vcombine.high %v853_v33, %v860_v34  ;;  %v1070_v58 = vrot.slane %v1063_v36, %v5820_v59  ;;  %v1078_v60 = vrot.slane %v4979_v37, %v5820_v59 }
 0x184   : > { %v919_v49 = vrot.slane %v911_v41, %v5827_v8  ;;  %v926_v51 = vrot.slane %v912_v42, %v5827_v8  ;;  %v1113_v52 = vcombine.low %v903_v39, %v910_v40  ;;  %v4981_v53 = vcombine.high %v903_v39, %v910_v40  ;;  %v752_v40 = vpop.permute.xlu1 %751 }
 0x185   : > { %v1086_v62 = vrot.slane %v1079_v45, %v5820_v59  ;;  %v1094_v63 = vrot.slane %v4980_v47, %v5820_v59  ;;  %v1349_v10 = vrot.slane %v1335_v57, %v5820_v59  ;;  %v1401_v11 = vcombine.high %v1309_v55, %v5815_v54 }
 0x186   : > { %v1129_v0 = vcombine.low %v919_v49, %v926_v51  ;;  %v4982_v1 = vcombine.high %v919_v49, %v926_v51  ;;  %v1120_v3 = vrot.slane %v1113_v52, %v5820_v59  ;;  %v1128_v4 = vrot.slane %v4981_v53, %v5820_v59 }
 0x187   : > { %v1095_v12 = vcombine.low %v1070_v58, %v1078_v60  ;;  %v1373_v13 = vrot.slane %v1365_v61, %v5827_v8  ;;  %v1103_v15 = vcombine.low %v1086_v62, %v1094_v63  ;;  %v1423_v18 = vrot.slane %v1317_v56, %v5820_v59 }
 0x188   : > { %v1136_v16 = vrot.slane %v1129_v0, %v5820_v59  ;;  %v1144_v17 = vrot.slane %v4982_v1, %v5820_v59  ;;  %v1145_v19 = vcombine.low %v1120_v3, %v1128_v4  ;;  %v1380_v20 = vrot.slane %v1366_v6, %v5827_v8  ;;  %v756_v6 = vpop.permute.xlu0 %755 }
 0x189   : > { %v1381_v21 = vcombine.low %v1349_v10, %v1364_v5  ;;  %v1382_v22 = vcombine.high %v1349_v10, %v1364_v5  ;;  %v1408_v23 = vrot.slane %v1309_v55, %v5820_v59  ;;  %v1430_v24 = vrot.slane %v1416_v9, %v5820_v59  ;;  %v760_v5 = vpop.permute.xlu1 %759 }
 0x18a   : > { %v1415_v25 = vrot.slane %v1401_v11, %v5820_v59  ;;  %v5870_v26 = vrot.slane %v1095_v12, %v5827_v8  ;;  %v1323_v27 = vshrl.u32 %v5774_v38, 16  ;;  %v787_v28 = vshrl.u32 %v5769_v35, 16 }
 0x18b   : > { %v5875_v30 = vrot.slane %v1103_v15, %v5827_v8  ;;  %v1153_v31 = vcombine.low %v1136_v16, %v1144_v17  ;;  %v1431_v32 = vcombine.low %v1408_v23, %v1423_v18  ;;  %v1432_v33 = vcombine.high %v1408_v23, %v1423_v18 }
 0x18c   : > { %v5878_v34 = vrot.slane %v1145_v19, %v5827_v8  ;;  %v5881_v36 = vrot.slane %v1381_v21, %v5827_v8  ;;  %v5884_v37 = vrot.slane %v1382_v22, %v5827_v8  ;;  %v1599_v39 = vcombine.low %v1373_v13, %v1380_v20 }
 0x18d   : > { %v1447_v41 = vcombine.low %v1415_v25, %v1430_v24  ;;  %v4987_v42 = vcombine.high %v1373_v13, %v1380_v20  ;;  %v1321_v44 = vpack.i.b16 %v1294_v7, %v5774_v38  ;;  %v1329_v45 = vpack.i.b16 %v1302_v29, %v1298_v14 }
 0x18e   : > { %v1448_v47 = vcombine.high %v1415_v25, %v1430_v24  ;;  %v1331_v48 = vshrl.u32 %v1298_v14, 16  ;;  %v1324_v49 = vshrl.u32 %v1294_v7, 16  ;;  %v1332_v51 = vshrl.u32 %v1302_v29, 16 }
 0x18f   : > { %v5888_v52 = vrot.slane %v1153_v31, %v5827_v8  ;;  %v5891_v53 = vrot.slane %v1431_v32, %v5827_v8  ;;  %v5894_v55 = vrot.slane %v1432_v33, %v5827_v8  ;;  %v1482_v56 = vcombine.high %v1329_v45, %v5815_v54 }
 0x190   : > { %v5898_v57 = vrot.slane %v1599_v39, %v5820_v59  ;;  %v785_v38 = vpack.i.b16 %v752_v40, %v5769_v35  ;;  %v788_v58 = vshrl.u32 %v752_v40, 16  ;;  %v1333_v60 = vpack.i.b16 %v1332_v51, %v1331_v48 }
 0x191   : > { %v5902_v61 = vrot.slane %v1447_v41, %v5827_v8  ;;  %v5905_v62 = vrot.slane %v4987_v42, %v5820_v59  ;;  %v1615_v63 = vcombine.low %v5881_v36, %v5884_v37  ;;  %v1467_v0 = vcombine.high %v1321_v44, %v5815_v54 }
 0x192   : > { %v5911_v1 = vrot.slane %v1448_v47, %v5827_v8  ;;  %v4988_v3 = vcombine.high %v5881_v36, %v5884_v37  ;;  %v1325_v35 = vpack.i.b16 %v1324_v49, %v1323_v27  ;;  %v1489_v4 = vrot.slane %v1329_v45, %v5820_v59 }
 0x193   : > { %v1649_v7 = vcombine.low %v5891_v53, %v5894_v55  ;;  %v4989_v9 = vcombine.high %v5891_v53, %v5894_v55  ;;  %v1474_v10 = vrot.slane %v1321_v44, %v5820_v59  ;;  %v1496_v11 = vrot.slane %v1482_v56, %v5820_v59 }
 0x194   : > { %v789_v12 = vpack.i.b16 %v788_v58, %v787_v28  ;;  %v931_v13 = vcombine.high %v785_v38, %v5815_v54  ;;  %v1548_v14 = vcombine.high %v1333_v60, %v5815_v54  ;;  %v1555_v15 = vrot.slane %v1333_v60, %v5820_v59 }
 0x195   : > { %v1481_v16 = vrot.slane %v1467_v0, %v5820_v59  ;;  %v796_v17 = vshrl.u32 %v760_v5, 16  ;;  %v793_v18 = vpack.i.b16 %v760_v5, %v756_v6  ;;  %v795_v19 = vshrl.u32 %v756_v6, 16 }
 0x196   : > { %v1533_v20 = vcombine.high %v1325_v35, %v5815_v54  ;;  %v1540_v21 = vrot.slane %v1325_v35, %v5820_v59  ;;  %v1497_v22 = vcombine.low %v1474_v10, %v1489_v4  ;;  %v1498_v23 = vcombine.high %v1474_v10, %v1489_v4 }
 0x197   : > { %v1665_v24 = vcombine.low %v5902_v61, %v5911_v1  ;;  %v4990_v25 = vcombine.high %v5902_v61, %v5911_v1  ;;  %v1513_v27 = vcombine.low %v1481_v16, %v1496_v11  ;;  %v1514_v28 = vcombine.high %v1481_v16, %v1496_v11 }
 0x198   : > { %v938_v29 = vrot.slane %v785_v38, %v5820_v59  ;;  %v1562_v31 = vrot.slane %v1548_v14, %v5820_v59  ;;  %v1563_v32 = vcombine.low %v1540_v21, %v1555_v15  ;;  %v1564_v33 = vcombine.high %v1540_v21, %v1555_v15 }
 0x199   : > { %v945_v36 = vrot.slane %v931_v13, %v5820_v59  ;;  %v997_v37 = vcombine.high %v789_v12, %v5815_v54  ;;  %v797_v39 = vpack.i.b16 %v796_v17, %v795_v19  ;;  %v946_v40 = vcombine.high %v793_v18, %v5815_v54 }
 0x19a   : > { %v1547_v41 = vrot.slane %v1533_v20, %v5820_v59  ;;  %v1004_v42 = vrot.slane %v789_v12, %v5820_v59  ;;  %v1505_v44 = vrot.slane %v1497_v22, %v5827_v8  ;;  %v1512_v45 = vrot.slane %v1498_v23, %v5827_v8 }
 0x19b   : > { %v1521_v47 = vrot.slane %v1513_v27, %v5827_v8  ;;  %v1528_v48 = vrot.slane %v1514_v28, %v5827_v8  ;;  %v953_v49 = vrot.slane %v793_v18, %v5820_v59  ;;  %v1012_v51 = vcombine.high %v797_v39, %v5815_v54 }
 0x19c   : > { %v1571_v56 = vrot.slane %v1563_v32, %v5827_v8  ;;  %v1578_v38 = vrot.slane %v1564_v33, %v5827_v8  ;;  %v1579_v58 = vcombine.low %v1547_v41, %v1562_v31  ;;  %v960_v60 = vrot.slane %v946_v40, %v5820_v59 }
 0x19d   : > { %v1580_v0 = vcombine.high %v1547_v41, %v1562_v31  ;;  %v1026_v35 = vrot.slane %v1012_v51, %v5820_v59  ;;  %v1622_v4 = vrot.slane %v1615_v63, %v5820_v59  ;;  %v1630_v5 = vrot.slane %v4988_v3, %v5820_v59 }
 0x19e   : > { %v1011_v6 = vrot.slane %v997_v37, %v5820_v59  ;;  %v1699_v10 = vcombine.low %v1505_v44, %v1512_v45  ;;  %v4991_v11 = vcombine.high %v1505_v44, %v1512_v45  ;;  %v1019_v12 = vrot.slane %v797_v39, %v5820_v59 }
 0x19f   : > { %v1715_v13 = vcombine.low %v1521_v47, %v1528_v48  ;;  %v4992_v14 = vcombine.high %v1521_v47, %v1528_v48  ;;  %v961_v15 = vcombine.low %v938_v29, %v953_v49  ;;  %v962_v16 = vcombine.high %v938_v29, %v953_v49 }
 0x1a0   : > { %v977_v17 = vcombine.low %v945_v36, %v960_v60  ;;  %v978_v18 = vcombine.high %v945_v36, %v960_v60  ;;  %v1043_v19 = vcombine.low %v1011_v6, %v1026_v35  ;;  %v1044_v20 = vcombine.high %v1011_v6, %v1026_v35 }
 0x1a1   : > { %v1587_v21 = vrot.slane %v1579_v58, %v5827_v8  ;;  %v1594_v63 = vrot.slane %v1580_v0, %v5827_v8  ;;  %v1749_v22 = vcombine.low %v1571_v56, %v1578_v38  ;;  %v1639_v3 = vcombine.low %v1622_v4, %v1630_v5 }
 0x1a2   : > { %v1706_v23 = vrot.slane %v1699_v10, %v5820_v59  ;;  %v4993_v27 = vcombine.high %v1571_v56, %v1578_v38  ;;  %v1027_v28 = vcombine.low %v1004_v42, %v1019_v12  ;;  %v1631_v31 = vcombine.low %v5898_v57, %v5905_v62 }
 0x1a3   : > { %v5959_v32 = vrot.slane %v961_v15, %v5827_v8  ;;  %v5962_v29 = vrot.slane %v962_v16, %v5827_v8  ;;  %v1028_v33 = vcombine.high %v1004_v42, %v1019_v12  ;;  %v1656_v36 = vrot.slane %v1649_v7, %v5820_v59 }
 0x1a4   : > { %v985_v37 = vrot.slane %v977_v17, %v5827_v8  ;;  %v992_v39 = vrot.slane %v978_v18, %v5827_v8  ;;  %v1051_v40 = vrot.slane %v1043_v19, %v5827_v8  ;;  %v1058_v57 = vrot.slane %v1044_v20, %v5827_v8 }
 0x1a5   : > { %v1714_v62 = vrot.slane %v4991_v11, %v5820_v59  ;;  %v1765_v41 = vcombine.low %v1587_v21, %v1594_v63  ;;  %v5974_v44 = vrot.slane %v1639_v3, %v5827_v8  ;;  %v1664_v42 = vrot.slane %v4989_v9, %v5820_v59 }
 0x1a6   : > { %v4994_v7 = vcombine.high %v1587_v21, %v1594_v63  ;;  %v1035_v45 = vrot.slane %v1027_v28, %v5827_v8  ;;  %v1638_v47 = vrot.slane %v1631_v31, %v5827_v8  ;;  %v1672_v48 = vrot.slane %v1665_v24, %v5820_v59 }
 0x1a7   : > { %v1042_v49 = vrot.slane %v1028_v33, %v5827_v8  ;;  %v1163_v51 = vcombine.low %v5959_v32, %v5962_v29  ;;  %v1680_v53 = vrot.slane %v4990_v25, %v5820_v59  ;;  %v1681_v55 = vcombine.low %v1656_v36, %v1664_v42 }
 0x1a8   : > { %v1179_v9 = vcombine.low %v985_v37, %v992_v39  ;;  %v1229_v56 = vcombine.low %v1051_v40, %v1058_v57  ;;  %v1722_v38 = vrot.slane %v1715_v13, %v5820_v59  ;;  %v1730_v58 = vrot.slane %v4992_v14, %v5820_v59 }
 0x1a9   : > { %v4986_v60 = vcombine.high %v1051_v40, %v1058_v57  ;;  %v1647_v24 = vcombine.low %v1638_v47, %v5974_v44  ;;  %v1689_v0 = vcombine.low %v1672_v48, %v1680_v53  ;;  %v1756_v35 = vrot.slane %v1749_v22, %v5820_v59 }
 0x1aa   : > { %v1731_v4 = vcombine.low %v1706_v23, %v1714_v62  ;;  %v1739_v5 = vcombine.low %v1722_v38, %v1730_v58  ;;  %v1764_v6 = vrot.slane %v4993_v27, %v5820_v59  ;;  %v1772_v61 = vrot.slane %v1765_v41, %v5820_v59 }
 0x1ab   : > { %v4983_v1 = vcombine.high %v5959_v32, %v5962_v29  ;;  %v1688_v25 = vrot.slane %v1681_v55, %v5827_v8  ;;  %v1696_v10 = vrot.slane %v1689_v0, %v5827_v8  ;;  %v1780_v11 = vrot.slane %v4994_v7, %v5820_v59 }
 0x1ac   : > { %v4984_v12 = vcombine.high %v985_v37, %v992_v39  ;;  %v1213_v13 = vcombine.low %v1035_v45, %v1042_v49  ;;  %v4985_v14 = vcombine.high %v1035_v45, %v1042_v49  ;;  %v1781_v15 = vcombine.low %v1756_v35, %v1764_v6 }
 0x1ad   : > { %v1186_v16 = vrot.slane %v1179_v9, %v5820_v59  ;;  %v1697_v17 = vcombine.low %v1688_v25, %v1696_v10  ;;  %v6006_v18 = vrot.slane %v1739_v5, %v5827_v8  ;;  %v1789_v19 = vcombine.low %v1772_v61, %v1780_v11 }
 0x1ae   : > { %v1236_v20 = vrot.slane %v1229_v56, %v5820_v59  ;;  %v1244_v21 = vrot.slane %v4986_v60, %v5820_v59  ;;  %v1802_v63 = vshrl.u32 %v1647_v24, 16  ;;  %v6011_v22 = vrot.slane %v1731_v4, %v5827_v8 }
 0x1af   : > { %v1801_v3 = vpack.i.b16 %v1697_v17, %v1647_v24  ;;  %v1803_v23 = vshrl.u32 %v1697_v17, 16  ;;  %v1788_v27 = vrot.slane %v1781_v15, %v5827_v8  ;;  %v1796_v28 = vrot.slane %v1789_v19, %v5827_v8 }
 0x1b0   : > { %v1194_v31 = vrot.slane %v4984_v12, %v5820_v59  ;;  %v1220_v32 = vrot.slane %v1213_v13, %v5820_v59  ;;  %v1228_v29 = vrot.slane %v4985_v14, %v5820_v59  ;;  %v1161_v33 = vcombine.low %v5878_v34, %v5888_v52 }
 0x1b1   : > { %v2381_v36 = vsel %vm2376_vm1, %v1801_v3, 0  ;;  %v1804_v37 = vpack.i.b16 %v1803_v23, %v1802_v63  ;;  %v1747_v39 = vcombine.low %v6011_v22, %v6006_v18  ;;  %v1797_v40 = vcombine.low %v1788_v27, %v1796_v28 }
 0x1b2   : > { %v1111_v57 = vcombine.low %v5870_v26, %v5875_v30  ;;  %v1170_v62 = vrot.slane %v1163_v51, %v5820_v59  ;;  %v1178_v41 = vrot.slane %v4983_v1, %v5820_v59  ;;  %5240 = vmatpush3.bf16.xpose.msra.mxu0 %v2381_v36  ;;  %v1253_v42 = vcombine.low %v1236_v20, %v1244_v21 }
 0x1b3   : > { %v2475_v7 = vsel %vm2376_vm1, %v1804_v37, 0  ;;  %5245 = vmatprep.subr.bf16.mxu0 %v5596_v43  ;;  %v1813_v45 = vpack.i.b16 %v1797_v40, %v1747_v39  ;;  %v1698_v48 = vcombine.high %v1688_v25, %v1696_v10  ;;  %v1203_v49 = vcombine.low %v1186_v16, %v1194_v31 }
 0x1b4   : > { %5252 = vmatpush3.bf16.xpose.msra.mxu1 %v2475_v7  ;;  %v1245_v53 = vcombine.low %v1220_v32, %v1228_v29  ;;  %v1267_v55 = vshrl.u32 %v1161_v33, 16  ;;  %v1648_v9 = vcombine.high %v1638_v47, %v5974_v44  ;;  %v1195_v56 = vcombine.low %v1170_v62, %v1178_v41 }
 0x1b5   : > { %5263 = vmatprep.subr.bf16.mxu1 %v5596_v43  ;;  %v1265_v51 = vpack.i.b16 %v1161_v33, %v1111_v57  ;;  %v2428_v38 = vsel %vm2376_vm1, %v1813_v45, 0  ;;  %v1266_v58 = vshrl.u32 %v1111_v57, 16  ;;  %v1260_v24 = vrot.slane %v1253_v42, %v5827_v8 }
 0x1b6   : > { %v1807_v60 = vpack.i.b16 %v1698_v48, %v1648_v9  ;;  %v1210_v35 = vrot.slane %v1203_v49, %v5827_v8  ;;  %v1252_v4 = vrot.slane %v1245_v53, %v5827_v8  ;;  %v1815_v5 = vshrl.u32 %v1797_v40, 16  ;;  %v5237_v40 = vpop.f32.mrb[0].mxu1 }
 0x1b7   : > { %v1268_v0 = vpack.i.b16 %v1267_v55, %v1266_v58  ;;  %v1202_v6 = vrot.slane %v1195_v56, %v5827_v8  ;;  %v1814_v61 = vshrl.u32 %v1747_v39, 16  ;;  %v1809_v1 = vshrl.u32 %v1698_v48, 16  ;;  %v730_v57 = vpop.f32.mrb[1].mxu1 }
 0x1b8   : > { %v2569_v44 = vsel %vm2376_vm1, %v1807_v60, 0  ;;  %v1261_v47 = vcombine.low %v1252_v4, %v1260_v24  ;;  %v1162_v11 = vcombine.high %v5878_v34, %v5888_v52  ;;  %v1808_v12 = vshrl.u32 %v1648_v9, 16  ;;  %v5238_v62 = vpop.f32.mrb[2].mxu1 }
 0x1b9   : > { %5242 = vmatmul.mubr.msk.bf16.vlgmr.msra.gmra.mrb[8].mxu0 %vm2376_vm1, %v1265_v51  ;;  %v1211_v25 = vcombine.low %v1202_v6, %v1210_v35  ;;  %v1816_v10 = vpack.i.b16 %v1815_v5, %v1814_v61  ;;  %v1112_v14 = vcombine.high %v5870_v26, %v5875_v30  ;;  %v1798_v19 = vcombine.high %v1788_v27, %v1796_v28  ;;  %v733_v42 = vpop.f32.mrb[3].mxu1 }
 0x1ba   : > { %5246 = vmatpush3.bf16.xpose.msra.mxu0 %v2428_v38  ;;  %5247 = vmatprep.mubr.msk.bf16.mxu0 %vm5597_vm0, %v5596_v43  ;;  %v1810_v15 = vpack.i.b16 %v1809_v1, %v1808_v12  ;;  %v1279_v52 = vshrl.u32 %v1261_v47, 16  ;;  %v1748_v26 = vcombine.high %v6011_v22, %v6006_v18  ;;  %v1273_v21 = vshrl.u32 %v1162_v11, 16 }
 0x1bb   : > { %5254 = vmatmul.mubr.msk.bf16.vlgmr.msra.gmra.mrb[4].mxu1 %vm2376_vm1, %v1268_v0  ;;  %5257 = vmatprep.subr.bf16.mxu0 %v5596_v43  ;;  %v1277_v13 = vpack.i.b16 %v1261_v47, %v1211_v25  ;;  %v2522_v16 = vsel %vm2376_vm1, %v1816_v10, 0  ;;  %v1271_v17 = vpack.i.b16 %v1162_v11, %v1112_v14  ;;  %v1278_v30 = vshrl.u32 %v1211_v25, 16 }
 0x1bc   : > { %5264 = vmatpush3.bf16.xpose.msra.mxu1 %v2569_v44  ;;  %5265 = vmatprep.mubr.msk.bf16.mxu1 %vm5597_vm0, %v5596_v43  ;;  %v2663_v34 = vsel %vm2376_vm1, %v1810_v15, 0  ;;  %v1819_v20 = vpack.i.b16 %v1798_v19, %v1748_v26  ;;  %v1272_v3 = vshrl.u32 %v1112_v14, 16  ;;  %v1821_v28 = vshrl.u32 %v1798_v19, 16 }
 0x1bd   : > { %5275 = vmatprep.subr.bf16.mxu1 %v5596_v43  ;;  %v1280_v63 = vpack.i.b16 %v1279_v52, %v1278_v30  ;;  %v1262_v18 = vcombine.high %v1252_v4, %v1260_v24  ;;  %v1820_v22 = vshrl.u32 %v1748_v26, 16  ;;  %v1212_v31 = vcombine.high %v1202_v6, %v1210_v35 }
 0x1be   : > { %v2616_v23 = vsel %vm2376_vm1, %v1819_v20, 0  ;;  %v1274_v27 = vpack.i.b16 %v1273_v21, %v1272_v3  ;;  %v6077_v41 = vpack.c.bf16 %v5238_v62, %v5237_v40  ;;  %v6079_v7 = vpack.c.bf16 %v733_v42, %v730_v57 }
 0x1bf   : > { %v1822_v32 = vpack.i.b16 %v1821_v28, %v1820_v22  ;;  %v1283_v29 = vpack.i.b16 %v1262_v18, %v1212_v31  ;;  %v1285_v36 = vshrl.u32 %v1262_v18, 16  ;;  %v1284_v37 = vshrl.u32 %v1212_v31, 16 }
 0x1c0   : > { %v2371_v45 = vand.u32 127, %v803_v46  ;;  %v2369_v48 = vadd.s32 8, %v5811_v50  ;;  %v5600_v49 = vmov -1e+30  }
 0x1c1   : > { %5248 = vmatmul.mubr.msk.bf16.vlgmr.msra.gmra.mrb[12].mxu0 %vm2376_vm1, %v1277_v13  ;;  %v2710_v33 = vsel %vm2376_vm1, %v1822_v32, 0  ;;  %v1286_v39 = vpack.i.b16 %v1285_v36, %v1284_v37 }
 0x1c2   : > { %5258 = vmatpush3.bf16.xpose.msra.mxu0 %v2522_v16  ;;  %5259 = vmatprep.mubr.msk.bf16.mxu0 %vm5597_vm0, %v5596_v43  ;;  %vm2372_vm2 = vcmp.le.s32.totalorder %v2371_v45, %v5811_v50  ;;  %vm2373_vm3 = vcmp.le.s32.totalorder %v2371_v45, %v2369_v48 }
 0x1c3   : > { %5266 = vmatmul.mubr.msk.bf16.vlgmr.msra.gmra.mrb[8].mxu1 %vm2376_vm1, %v1271_v17  ;;  %5269 = vmatprep.subr.bf16.mxu0 %v5596_v43  ;;  %v6084_v53 = vsel %vm2372_vm2, 0.0, %v5600_v49  ;;  %v6086_v9 = vsel %vm2373_vm3, 0.0, %v5600_v49 }
 0x1c4   : > { %5276 = vmatpush3.bf16.xpose.msra.mxu1 %v2663_v34  ;;  %5277 = vmatprep.mubr.msk.bf16.mxu1 %vm5597_vm0, %v5596_v43 }
 0x1c5   : > { %5287 = vmatprep.subr.bf16.mxu1 %v5596_v43 }
 0x1c9   : > { %5260 = vmatmul.mubr.msk.bf16.vlgmr.msra.gmra.mrb[16].mxu0 %vm2376_vm1, %v1280_v63 }
 0x1ca   : > { %5270 = vmatpush3.bf16.xpose.msra.mxu0 %v2616_v23  ;;  %5271 = vmatprep.mubr.msk.bf16.mxu0 %vm5597_vm0, %v5596_v43 }
 0x1cb   : > { %5278 = vmatmul.mubr.msk.bf16.vlgmr.msra.gmra.mrb[12].mxu1 %vm2376_vm1, %v1274_v27  ;;  %5281 = vmatprep.subr.bf16.mxu0 %v5596_v43 }
 0x1cc   : > { %5289 = vmatprep.mubr.msk.bf16.mxu1 %vm5597_vm0, %v5596_v43 }
 0x1d1   : > { %5272 = vmatmul.mubr.msk.bf16.vlgmr.msra.gmra.mrb[20].mxu0 %vm2376_vm1, %v1283_v29 }
 0x1d2   : > { %5282 = vmatpush3.bf16.xpose.msra.mxu0 %v2710_v33  ;;  %5283 = vmatprep.mubr.msk.bf16.mxu0 %vm5597_vm0, %v5596_v43 }
 0x1d3   : > { %5293 = vmatprep.subr.bf16.mxu0 %v5596_v43 }
 0x1d9   : > { %5284 = vmatmul.mubr.msk.bf16.vlgmr.msra.gmra.mrb[24].mxu0 %vm2376_vm1, %v1286_v39 }
 0x1da   : > { %5295 = vmatprep.mubr.msk.bf16.mxu0 %vm5597_vm0, %v5596_v43 }
 0x28c   : > { %v2417_v55 = vpop.f32.mrb[8].mxu0 }
 0x28d   : > { %v6089_v56 = vadd.f32 %v2417_v55, %v6084_v53  ;;  %v5243_v51 = vpop.f32.mrb[9].mxu0 }
 0x28e   : > { %v2420_v38 = vpop.f32.mrb[10].mxu0  ;;  %v2511_v58 = vpop.f32.mrb[4].mxu1 }
 0x28f   : > { %v6092_v46 = vadd.f32 %v2420_v38, %v6086_v9  ;;  %v5244_v60 = vpop.f32.mrb[11].mxu0  ;;  %v5255_v24 = vpop.f32.mrb[5].mxu1  ;;  %v2754_v0 = vsel %vm2753_vm4, %v6089_v56, -inf  ;;  %v6097_v4 = vadd.f32 %v2511_v58, %v6084_v53 }
 0x290   : > { %v2514_v35 = vpop.f32.mrb[6].mxu1  ;;  %2755 = vmax.xlane.f32.xlu0 %v2754_v0 }
 0x291   : > { %v5256_v5 = vpop.f32.mrb[7].mxu1  ;;  %v2757_v6 = vsel %vm2753_vm4, %v6092_v46, -inf  ;;  %v2766_v1 = vsel %vm2753_vm4, %v6097_v4, -inf  ;;  %v6117_v34 = vadd.f32 %v2514_v35, %v6086_v9 }
 0x292   : > { %2758 = vmax.xlane.f32.xlu1 %v2757_v6 }
 0x293   : > { %v2769_v18 = vsel %vm2753_vm4, %v6117_v34, -inf }
 0x294   : > { %v2464_v44 = vpop.f32.mrb[12].mxu0 }
 0x295   : > { %v6102_v47 = vadd.f32 %v2464_v44, %v6084_v53  ;;  %v5249_v61 = vpop.f32.mrb[13].mxu0 }
 0x296   : > { %v2605_v25 = vpop.f32.mrb[8].mxu1  ;;  %2767 = vmax.xlane.f32.xlu1 %v2766_v1  ;;  %v2467_v10 = vpop.f32.mrb[14].mxu0 }
 0x297   : > { %v6107_v11 = vadd.f32 %v2605_v25, %v6084_v53  ;;  %v6110_v12 = vadd.f32 %v2467_v10, %v6086_v9  ;;  %v5250_v13 = vpop.f32.mrb[15].mxu0  ;;  %v5267_v14 = vpop.f32.mrb[9].mxu1  ;;  %v2760_v15 = vsel %vm2753_vm4, %v6102_v47, -inf }
 0x298   : > { %v2608_v16 = vpop.f32.mrb[10].mxu1  ;;  %2761 = vmax.xlane.f32.xlu0 %v2760_v15 }
 0x299   : > { %v5268_v17 = vpop.f32.mrb[11].mxu1  ;;  %v2778_v19 = vsel %vm2753_vm4, %v6107_v11, -inf  ;;  %v2763_v52 = vsel %vm2753_vm4, %v6110_v12, -inf  ;;  %v6135_v29 = vadd.f32 %v2608_v16, %v6086_v9 }
 0x29a   : > { %2779 = vmax.xlane.f32.xlu1 %v2778_v19 }
 0x29b   : > { %v2781_v45 = vsel %vm2753_vm4, %v6135_v29, -inf }
 0x29c   : > { %2764 = vmax.xlane.f32.xlu0 %v2763_v52  ;;  %v2558_v26 = vpop.f32.mrb[16].mxu0 }
 0x29d   : > { %v6122_v30 = vadd.f32 %v2558_v26, %v6084_v53  ;;  %v5261_v20 = vpop.f32.mrb[17].mxu0 }
 0x29e   : > { %v2561_v21 = vpop.f32.mrb[18].mxu0  ;;  %v2699_v63 = vpop.f32.mrb[12].mxu1 }
 0x29f   : > { %v6125_v3 = vadd.f32 %v2561_v21, %v6086_v9  ;;  %v6128_v23 = vadd.f32 %v2699_v63, %v6084_v53  ;;  %v5262_v27 = vpop.f32.mrb[19].mxu0  ;;  %v5279_v28 = vpop.f32.mrb[13].mxu1  ;;  %v2772_v22 = vsel %vm2753_vm4, %v6122_v30, -inf }
 0x2a0   : > { %v2702_v31 = vpop.f32.mrb[14].mxu1  ;;  %2770 = vmax.xlane.f32.xlu0 %v2769_v18  ;;  %2773 = vmax.xlane.f32.xlu1 %v2772_v22 }
 0x2a1   : > { %v5280_v32 = vpop.f32.mrb[15].mxu1  ;;  %v2790_v33 = vsel %vm2753_vm4, %v6128_v23, -inf  ;;  %v2775_v36 = vsel %vm2753_vm4, %v6125_v3, -inf  ;;  %v6152_v49 = vadd.f32 %v2702_v31, %v6086_v9 }
 0x2a3   : > { %v2793_v35 = vsel %vm2753_vm4, %v6152_v49, -inf }
 0x2a4   : > { %2791 = vmax.xlane.f32.xlu1 %v2790_v33  ;;  %2776 = vmax.xlane.f32.xlu0 %v2775_v36  ;;  %v2652_v37 = vpop.f32.mrb[20].mxu0 }
 0x2a5   : > { %v6142_v39 = vadd.f32 %v2652_v37, %v6084_v53  ;;  %v5273_v40 = vpop.f32.mrb[21].mxu0 }
 0x2a6   : > { %v2655_v57 = vpop.f32.mrb[22].mxu0 }
 0x2a7   : > { %v6145_v62 = vadd.f32 %v2655_v57, %v6086_v9  ;;  %v5274_v42 = vpop.f32.mrb[23].mxu0  ;;  %v2784_v48 = vsel %vm2753_vm4, %v6142_v39, -inf }
 0x2a8   : > { %2782 = vmax.xlane.f32.xlu0 %v2781_v45  ;;  %2785 = vmax.xlane.f32.xlu1 %v2784_v48 }
 0x2a9   : > { %v2787_v55 = vsel %vm2753_vm4, %v6145_v62, -inf }
 0x2ac   : > { %2788 = vmax.xlane.f32.xlu0 %v2787_v55  ;;  %v2746_v51 = vpop.f32.mrb[24].mxu0 }
 0x2ad   : > { %v6157_v38 = vadd.f32 %v2746_v51, %v6084_v53  ;;  %v5285_v58 = vpop.f32.mrb[25].mxu0 }
 0x2ae   : > { %v2749_v60 = vpop.f32.mrb[26].mxu0 }
 0x2af   : > { %v6160_v24 = vadd.f32 %v2749_v60, %v6086_v9  ;;  %v5286_v0 = vpop.f32.mrb[27].mxu0  ;;  %v2796_v53 = vsel %vm2753_vm4, %v6157_v38, -inf }
 0x2b0   : > { %2794 = vmax.xlane.f32.xlu0 %v2793_v35 }
 0x2b1   : > { %v2799_v5 = vsel %vm2753_vm4, %v6160_v24, -inf }
 0x2b4   : > { %2800 = vmax.xlane.f32.xlu0 %v2799_v5 }
 0x2b9   : > { %1827 = vrot.lane.b32.xlu1 %v6079_v7, %s5594_s21 }
 0x2ca   : > { %1831 = vrot.lane.b32.xlu0 %v6079_v7, %s5593_s20 }
 0x2ce   : > { %1833 = vrot.lane.b32.xlu0 %v6077_v41, %s5593_s20 }
 0x2dd   : > { %2797 = vmax.xlane.f32.xlu1 %v2796_v53 }
 0x2ee   : > { %1835 = vrot.lane.b32.xlu1 %v6079_v7, %s5595_s22 }
 0x2f2   : > { %1829 = vrot.lane.b32.xlu1 %v6077_v41, %s5594_s21 }
 0x31d   : > { %v2756_v9 = vpop.xlane.xlu0 %2755 }
 0x31e   : > { %v2802_v6 = vsub.f32 %v6089_v56, %v2756_v9 }
 0x31f   : > { %v2759_v44 = vpop.xlane.xlu1 %2758 }
 0x320   : > { %v2818_v61 = vmul.f32 1.442695, %v2802_v6  ;;  %v2803_v1 = vsub.f32 %v6092_v46, %v2759_v44 }
 0x322   : > { %5492 = vpow2.f32 %v2818_v61  ;;  %v2820_v25 = vmul.f32 1.442695, %v2803_v1 }
 0x323   : > { %v2768_v10 = vpop.xlane.xlu1 %2767 }
 0x324   : > { %5494 = vpow2.f32 %v2820_v25  ;;  %v2806_v13 = vsub.f32 %v6097_v4, %v2768_v10 }
 0x325   : > { %v2762_v14 = vpop.xlane.xlu0 %2761 }
 0x326   : > { %v2826_v15 = vmul.f32 1.442695, %v2806_v13  ;;  %v2804_v16 = vsub.f32 %v6102_v47, %v2762_v14 }
 0x327   : > { %v6182_v19 = vpop.xlane.xlu1 %2779 }
 0x328   : > { %5496 = vpow2.f32 %v2826_v15  ;;  %v2822_v17 = vmul.f32 1.442695, %v2804_v16  ;;  %v2810_v14 = vsub.f32 %v6107_v11, %v6182_v19 }
 0x329   : > { %v2765_v52 = vpop.xlane.xlu0 %2764 }
 0x32a   : > { %5498 = vpow2.f32 %v2822_v17  ;;  %v2805_v56 = vsub.f32 %v6110_v12, %v2765_v52  ;;  %v2834_v17 = vmul.f32 1.442695, %v2810_v14 }
 0x32c   : > { %v6185_v26 = vpop.eup %5492  ;;  %v2824_v46 = vmul.f32 1.442695, %v2805_v56 }
 0x32d   : > { %v2771_v20 = vpop.xlane.xlu0 %2770  ;;  %v2774_v21 = vpop.xlane.xlu1 %2773  ;;  %v2850_v4 = vsel %vm2753_vm4, %v6185_v26, 0.0 }
 0x32e   : > { %v6189_v63 = vpop.eup %5494  ;;  %5500 = vpow2.f32 %v2824_v46  ;;  %v2808_v47 = vsub.f32 %v6122_v30, %v2774_v21  ;;  %2851 = vadd.xlane.f32.xlu1 %v2850_v4  ;;  %v2807_v13 = vsub.f32 %v6117_v34, %v2771_v20  ;;  %v1843_v34 = vshrl.u32 %v6079_v7, 16 }
 0x32f   : > { %v2853_v27 = vsel %vm2753_vm4, %v6189_v63, 0.0 }
 0x330   : > { %v2830_v28 = vmul.f32 1.442695, %v2808_v47  ;;  %2854 = vadd.xlane.f32.xlu0 %v2853_v27  ;;  %v2828_v15 = vmul.f32 1.442695, %v2807_v13 }
 0x331   : > { %v2777_v12 = vpop.xlane.xlu0 %2776  ;;  %v2792_v10 = vpop.xlane.xlu1 %2791 }
 0x332   : > { %v6194_v18 = vpop.eup %5496  ;;  %v2809_v22 = vsub.f32 %v6125_v3, %v2777_v12  ;;  %5502 = vpow2.f32 %v2830_v28  ;;  %v2814_v56 = vsub.f32 %v6128_v23, %v2792_v10 }
 0x333   : > { %v2862_v31 = vsel %vm2753_vm4, %v6194_v18, 0.0 }
 0x334   : > { %v6199_v32 = vpop.eup %5498  ;;  %v2832_v33 = vmul.f32 1.442695, %v2809_v22  ;;  %2863 = vadd.xlane.f32.xlu0 %v2862_v31  ;;  %v2842_v21 = vmul.f32 1.442695, %v2814_v56 }
 0x335   : > { %v2783_v30 = vpop.xlane.xlu0 %2782  ;;  %v2856_v36 = vsel %vm2753_vm4, %v6199_v32, 0.0  ;;  %v2786_v16 = vpop.xlane.xlu1 %2785 }
 0x336   : > { %v2811_v37 = vsub.f32 %v6135_v29, %v2783_v30  ;;  %2857 = vadd.xlane.f32.xlu1 %v2856_v36  ;;  %5504 = vpow2.f32 %v2832_v33  ;;  %v2812_v52 = vsub.f32 %v6142_v39, %v2786_v16 }
 0x338   : > { %v6204_v40 = vpop.eup %5500  ;;  %v2836_v57 = vmul.f32 1.442695, %v2811_v37  ;;  %v2838_v46 = vmul.f32 1.442695, %v2812_v52 }
 0x339   : > { %v2789_v3 = vpop.xlane.xlu0 %2788  ;;  %v2859_v42 = vsel %vm2753_vm4, %v6204_v40, 0.0  ;;  %v1828_v4 = vpop.permute.xlu1 %1827 }
 0x33a   : > { %5506 = vpow2.f32 %v2836_v57  ;;  %v2813_v45 = vsub.f32 %v6145_v62, %v2789_v3  ;;  %2860 = vadd.xlane.f32.xlu0 %v2859_v42  ;;  %v1844_v27 = vshrl.u32 %v1828_v4, 16  ;;  %v1841_v11 = vpack.i.b16 %v1828_v4, %v6079_v7 }
 0x33c   : > { %v2840_v48 = vmul.f32 1.442695, %v2813_v45  ;;  %v6209_v55 = vpop.eup %5502  ;;  %v1845_v28 = vpack.i.b16 %v1844_v27, %v1843_v34  ;;  %v1871_v31 = vcombine.high %v1841_v11, %v5815_v54 }
 0x33d   : > { %v2795_v51 = vpop.xlane.xlu0 %2794  ;;  %v2868_v58 = vsel %vm2753_vm4, %v6209_v55, 0.0 }
 0x33e   : > { %5508 = vpow2.f32 %v2840_v48  ;;  %v2815_v29 = vsub.f32 %v6152_v49, %v2795_v51  ;;  %2869 = vadd.xlane.f32.xlu0 %v2868_v58  ;;  %v1937_v3 = vcombine.high %v1845_v28, %v5815_v54  ;;  %v1885_v51 = vrot.slane %v1871_v31, %v5820_v59 }
 0x340   : > { %v6214_v60 = vpop.eup %5504  ;;  %v2844_v0 = vmul.f32 1.442695, %v2815_v29 }
 0x341   : > { %v2801_v35 = vpop.xlane.xlu0 %2800  ;;  %v2871_v62 = vsel %vm2753_vm4, %v6214_v60, 0.0 }
 0x342   : > { %v2817_v5 = vsub.f32 %v6160_v24, %v2801_v35  ;;  %5510 = vpow2.f32 %v2844_v0  ;;  %2872 = vadd.xlane.f32.xlu0 %v2871_v62 }
 0x344   : > { %v6219_v53 = vpop.eup %5506  ;;  %v2848_v9 = vmul.f32 1.442695, %v2817_v5 }
 0x345   : > { %v2877_v49 = vsel %vm2753_vm4, %v6219_v53, 0.0  ;;  %v1832_v12 = vpop.permute.xlu0 %1831 }
 0x346   : > { %5512 = vpow2.f32 %v2848_v9  ;;  %2878 = vadd.xlane.f32.xlu0 %v2877_v49  ;;  %v1851_v7 = vshrl.u32 %v1832_v12, 16  ;;  %v1944_v9 = vrot.slane %v1845_v28, %v5820_v59  ;;  %v1951_v49 = vrot.slane %v1937_v3, %v5820_v59 }
 0x347   : > { %1837 = vrot.lane.b32.xlu1 %v6077_v41, %s5595_s22  ;;  %5514 = vpow2.f32 %v2828_v15 }
 0x348   : > { %v6225_v6 = vpop.eup %5508  ;;  %5516 = vpow2.f32 %v2834_v17 }
 0x349   : > { %v2883_v24 = vsel %vm2753_vm4, %v6225_v6, 0.0  ;;  %5518 = vpow2.f32 %v2838_v46 }
 0x34a   : > { %2884 = vadd.xlane.f32.xlu0 %v2883_v24  ;;  %5520 = vpow2.f32 %v2842_v21 }
 0x34c   : > { %v6229_v44 = vpop.eup %5510 }
 0x34d   : > { %v2889_v61 = vsel %vm2753_vm4, %v6229_v44, 0.0 }
 0x34e   : > { %2890 = vadd.xlane.f32.xlu0 %v2889_v61 }
 0x350   : > { %v6233_v1 = vpop.eup %5512 }
 0x351   : > { %v2895_v25 = vsel %vm2753_vm4, %v6233_v1, 0.0  ;;  %v6242_v47 = vpop.eup %5514 }
 0x352   : > { %2896 = vadd.xlane.f32.xlu0 %v2895_v25  ;;  %v2865_v20 = vsel %vm2753_vm4, %v6242_v47, 0.0  ;;  %v6248_v39 = vpop.eup %5516 }
 0x353   : > { %v2874_v30 = vsel %vm2753_vm4, %v6248_v39, 0.0  ;;  %v6254_v36 = vpop.eup %5518 }
 0x354   : > { %v2880_v29 = vsel %vm2753_vm4, %v6254_v36, 0.0  ;;  %v6263_v58 = vpop.eup %5520 }
 0x355   : > { %v2886_v17 = vsel %vm2753_vm4, %v6263_v58, 0.0 }
 0x36a   : > { %v2798_v19 = vpop.xlane.xlu1 %2797 }
 0x36b   : > { %v2816_v23 = vsub.f32 %v6157_v38, %v2798_v19  ;;  %2866 = vadd.xlane.f32.xlu1 %v2865_v20  ;;  %v1878_v38 = vrot.slane %v1841_v11, %v5820_v59 }
 0x36d   : > { %v2846_v22 = vmul.f32 1.442695, %v2816_v23 }
 0x36e   : > { %v1836_v33 = vpop.permute.xlu1 %1835 }
 0x36f   : > { %v1849_v37 = vpack.i.b16 %v1836_v33, %v1832_v12  ;;  %v1852_v57 = vshrl.u32 %v1836_v33, 16  ;;  %2875 = vadd.xlane.f32.xlu1 %v2874_v30  ;;  %5522 = vpow2.f32 %v2846_v22 }
 0x371   : > { %v1853_v42 = vpack.i.b16 %v1852_v57, %v1851_v7  ;;  %v1886_v45 = vcombine.high %v1849_v37, %v5815_v54  ;;  %v1893_v48 = vrot.slane %v1849_v37, %v5820_v59 }
 0x373   : > { %v1900_v0 = vrot.slane %v1886_v45, %v5820_v59  ;;  %v1901_v35 = vcombine.low %v1878_v38, %v1893_v48  ;;  %v1902_v5 = vcombine.high %v1878_v38, %v1893_v48  ;;  %v1952_v62 = vcombine.high %v1853_v42, %v5815_v54  ;;  %2881 = vadd.xlane.f32.xlu1 %v2880_v29 }
 0x374   : > { %v1959_v24 = vrot.slane %v1853_v42, %v5820_v59 }
 0x375   : > { %v1909_v61 = vrot.slane %v1901_v35, %v5827_v8  ;;  %v1916_v25 = vrot.slane %v1902_v5, %v5827_v8  ;;  %v1917_v10 = vcombine.low %v1885_v51, %v1900_v0  ;;  %v1918_v13 = vcombine.high %v1885_v51, %v1900_v0 }
 0x376   : > { %v1966_v14 = vrot.slane %v1952_v62, %v5820_v59  ;;  %v1967_v15 = vcombine.low %v1944_v9, %v1959_v24  ;;  %v1968_v16 = vcombine.high %v1944_v9, %v1959_v24 }
 0x377   : > { %v1925_v52 = vrot.slane %v1917_v10, %v5827_v8  ;;  %v1932_v56 = vrot.slane %v1918_v13, %v5827_v8  ;;  %v2135_v46 = vcombine.low %v1909_v61, %v1916_v25  ;;  %v4995_v21 = vcombine.high %v1909_v61, %v1916_v25  ;;  %2887 = vadd.xlane.f32.xlu1 %v2886_v17 }
 0x378   : > { %v1975_v4 = vrot.slane %v1967_v15, %v5827_v8  ;;  %v1982_v27 = vrot.slane %v1968_v16, %v5827_v8  ;;  %v1983_v34 = vcombine.low %v1951_v49, %v1966_v14  ;;  %v1984_v11 = vcombine.high %v1951_v49, %v1966_v14 }
 0x379   : > { %v2142_v19 = vrot.slane %v2135_v46, %v5820_v59  ;;  %v2150_v20 = vrot.slane %v4995_v21, %v5820_v59  ;;  %v2151_v23 = vcombine.low %v1925_v52, %v1932_v56  ;;  %v4996_v28 = vcombine.high %v1925_v52, %v1932_v56  ;;  %v6281_v12 = vpop.eup %5522 }
 0x37a   : > { %v1991_v22 = vrot.slane %v1983_v34, %v5827_v8  ;;  %v1998_v31 = vrot.slane %v1984_v11, %v5827_v8  ;;  %v2185_v33 = vcombine.low %v1975_v4, %v1982_v27  ;;  %v4997_v30 = vcombine.high %v1975_v4, %v1982_v27  ;;  %v1830_v4 = vpop.permute.xlu1 %1829  ;;  %v1834_v27 = vpop.permute.xlu0 %1833 }
 0x37b   : > { %v2158_v7 = vrot.slane %v2151_v23, %v5820_v59  ;;  %v2166_v37 = vrot.slane %v4996_v28, %v5820_v59  ;;  %v2892_v45 = vsel %vm2753_vm4, %v6281_v12, 0.0  ;;  %v2167_v48 = vcombine.low %v2142_v19, %v2150_v20 }
 0x37c   : > { %v2192_v57 = vrot.slane %v2185_v33, %v5820_v59  ;;  %v2200_v3 = vrot.slane %v4997_v30, %v5820_v59  ;;  %v2201_v38 = vcombine.low %v1991_v22, %v1998_v31  ;;  %v4998_v42 = vcombine.high %v1991_v22, %v1998_v31  ;;  %2893 = vadd.xlane.f32.xlu1 %v2892_v45 }
 0x37d   : > { %v2175_v51 = vcombine.low %v2158_v7, %v2166_v37  ;;  %v2174_v5 = vrot.slane %v2167_v48, %v5827_v8  ;;  %v1860_v19 = vshrl.u32 %v1830_v4, 16  ;;  %v1859_v20 = vshrl.u32 %v6077_v41, 16 }
 0x37e   : > { %v2208_v29 = vrot.slane %v2201_v38, %v5820_v59  ;;  %v2216_v0 = vrot.slane %v4998_v42, %v5820_v59  ;;  %v2217_v35 = vcombine.low %v2192_v57, %v2200_v3  ;;  %v1857_v23 = vpack.i.b16 %v1830_v4, %v6077_v41 }
 0x37f   : > { %v2182_v62 = vrot.slane %v2175_v51, %v5827_v8  ;;  %v1861_v22 = vpack.i.b16 %v1860_v19, %v1859_v20  ;;  %v1867_v57 = vshrl.u32 %v1834_v27, 16 }
 0x380   : > { %v2225_v9 = vcombine.low %v2208_v29, %v2216_v0  ;;  %v2224_v24 = vrot.slane %v2217_v35, %v5827_v8  ;;  %v2003_v30 = vcombine.high %v1857_v23, %v5815_v54  ;;  %v2010_v41 = vrot.slane %v1857_v23, %v5820_v59 }
 0x381   : > { %v2183_v49 = vcombine.low %v2174_v5, %v2182_v62  ;;  %v6297_v25 = vcombine.high %v2174_v5, %v2182_v62  ;;  %v2069_v42 = vcombine.high %v1861_v22, %v5815_v54 }
 0x382   : > { %v2232_v61 = vrot.slane %v2225_v9, %v5827_v8  ;;  %v2017_v5 = vrot.slane %v2003_v30, %v5820_v59 }
 0x383   : > { %v2339_v14 = vshrl.u32 %v2183_v49, 16  ;;  %v2347_v15 = vshrl.u32 %v6297_v25, 16 }
 0x384   : > { %v2233_v10 = vcombine.low %v2224_v24, %v2232_v61  ;;  %v6299_v13 = vcombine.high %v2224_v24, %v2232_v61 }
 0x386   : > { %v2337_v16 = vpack.i.b16 %v2233_v10, %v2183_v49  ;;  %v2340_v17 = vshrl.u32 %v2233_v10, 16  ;;  %v2345_v52 = vpack.i.b16 %v6299_v13, %v6297_v25  ;;  %v2348_v56 = vshrl.u32 %v6299_v13, 16 }
 0x388   : > { %5288 = vmatpush3.bf16.msra.mxu1 %v2337_v16  ;;  %v2341_v46 = vpack.i.b16 %v2340_v17, %v2339_v14  ;;  %v6305_v21 = vpack.i.b16 %v2348_v56, %v2347_v15 }
 0x389   : > { %5299 = vmatprep.subr.bf16.mxu1 %v5596_v43 }
 0x3bb   : > { %v2852_v34 = vpop.xlane.xlu1 %2851 }
 0x3bc   : > { %5524 = vrcp.f32 %v2852_v34 }
 0x3bd   : > { %v2855_v11 = vpop.xlane.xlu0 %2854 }
 0x3be   : > { %5526 = vrcp.f32 %v2855_v11 }
 0x3c1   : > { %v6310_v33 = vpop.xlane.xlu0 %2863 }
 0x3c3   : > { %v2858_v28 = vpop.xlane.xlu1 %2857 }
 0x3c4   : > { %5528 = vrcp.f32 %v2858_v28 }
 0x3c6   : > { %v5525_v31 = vpop.eup %5524 }
 0x3c7   : > { %v1838_v7 = vpop.permute.xlu1 %1837  ;;  %v2914_v45 = vmul.f32 %v5525_v31, %v6185_v26  ;;  %v2861_v35 = vpop.xlane.xlu0 %2860  ;;  %v2076_v26 = vrot.slane %v1861_v22, %v5820_v59 }
 0x3c8   : > { %v5527_v37 = vpop.eup %5526  ;;  %v1865_v3 = vpack.i.b16 %v1838_v7, %v1834_v27  ;;  %v1868_v38 = vshrl.u32 %v1838_v7, 16  ;;  %5530 = vrcp.f32 %v2861_v35 }
 0x3c9   : > { %v2915_v48 = vmul.f32 %v5527_v37, %v6189_v63  ;;  %v2083_v63 = vrot.slane %v2069_v42, %v5820_v59 }
 0x3ca   : > { %v1869_v51 = vpack.i.b16 %v1868_v38, %v1867_v57  ;;  %v2018_v29 = vcombine.high %v1865_v3, %v5815_v54  ;;  %v2025_v0 = vrot.slane %v1865_v3, %v5820_v59 }
 0x3cb   : > { %v2930_v62 = vpack.c.bf16 %v2915_v48, %v2914_v45  ;;  %v2870_v23 = vpop.xlane.xlu0 %2869 }
 0x3cc   : > { %v2032_v9 = vrot.slane %v2018_v29, %v5820_v59  ;;  %v2033_v49 = vcombine.low %v2010_v41, %v2025_v0  ;;  %v2034_v24 = vcombine.high %v2010_v41, %v2025_v0  ;;  %v2084_v61 = vcombine.high %v1869_v51, %v5815_v54 }
 0x3cd   : > { %v2091_v10 = vrot.slane %v1869_v51, %v5820_v59  ;;  %5290 = vmatmul.mubr.msk.bf16.vlgmr.msra.gmra.mrb[16].mxu1 %vm2753_vm4, %v2930_v62 }
 0x3ce   : > { %v2041_v14 = vrot.slane %v2033_v49, %v5827_v8  ;;  %v2048_v15 = vrot.slane %v2034_v24, %v5827_v8  ;;  %v2049_v16 = vcombine.low %v2017_v5, %v2032_v9  ;;  %v2050_v17 = vcombine.high %v2017_v5, %v2032_v9  ;;  %5300 = vmatpush3.bf16.msra.mxu1 %v2341_v46  ;;  %v5529_v9 = vpop.eup %5528 }
 0x3cf   : > { %v2098_v56 = vrot.slane %v2084_v61, %v5820_v59  ;;  %v2099_v4 = vcombine.low %v2076_v26, %v2091_v10  ;;  %v2100_v27 = vcombine.high %v2076_v26, %v2091_v10  ;;  %5301 = vmatprep.mubr.msk.bf16.mxu1 %vm5597_vm0, %v5596_v43  ;;  %5311 = vmatprep.subr.bf16.mxu1 %v5596_v43  ;;  %v2873_v5 = vpop.xlane.xlu0 %2872 }
 0x3d0   : > { %v2057_v34 = vrot.slane %v2049_v16, %v5827_v8  ;;  %v2064_v11 = vrot.slane %v2050_v17, %v5827_v8  ;;  %v2235_v19 = vcombine.low %v2041_v14, %v2048_v15  ;;  %v4999_v20 = vcombine.high %v2041_v14, %v2048_v15 }
 0x3d1   : > { %v2107_v28 = vrot.slane %v2099_v4, %v5827_v8  ;;  %v2114_v46 = vrot.slane %v2100_v27, %v5827_v8  ;;  %v2115_v22 = vcombine.low %v2083_v63, %v2098_v56  ;;  %v2116_v31 = vcombine.high %v2083_v63, %v2098_v56 }
 0x3d2   : > { %v2242_v30 = vrot.slane %v2235_v19, %v5820_v59  ;;  %v2250_v7 = vrot.slane %v4999_v20, %v5820_v59  ;;  %v2251_v37 = vcombine.low %v2057_v34, %v2064_v11  ;;  %v5000_v57 = vcombine.high %v2057_v34, %v2064_v11  ;;  %v5531_v63 = vpop.eup %5530 }
 0x3d3   : > { %v2123_v3 = vrot.slane %v2115_v22, %v5827_v8  ;;  %v2130_v38 = vrot.slane %v2116_v31, %v5827_v8  ;;  %v2285_v42 = vcombine.low %v2107_v28, %v2114_v46  ;;  %v5001_v45 = vcombine.high %v2107_v28, %v2114_v46 }
 0x3d4   : > { %v2258_v48 = vrot.slane %v2251_v37, %v5820_v59  ;;  %v2266_v41 = vrot.slane %v5000_v57, %v5820_v59  ;;  %v2267_v49 = vcombine.low %v2242_v30, %v2250_v7  ;;  %5532 = vrcp.f32 %v2873_v5  ;;  %v2879_v57 = vpop.xlane.xlu0 %2878 }
 0x3d5   : > { %v2292_v51 = vrot.slane %v2285_v42, %v5820_v59  ;;  %v2300_v29 = vrot.slane %v5001_v45, %v5820_v59  ;;  %v2301_v0 = vcombine.low %v2123_v3, %v2130_v38  ;;  %v5002_v35 = vcombine.high %v2123_v3, %v2130_v38 }
 0x3d6   : > { %v2275_v62 = vcombine.low %v2258_v48, %v2266_v41  ;;  %5534 = vrcp.f32 %v2870_v23  ;;  %v2274_v15 = vrot.slane %v2267_v49, %v5827_v8  ;;  %v2917_v27 = vmul.f32 %v5531_v63, %v6204_v40 }
 0x3d7   : > { %v2308_v24 = vrot.slane %v2301_v0, %v5820_v59  ;;  %v2316_v61 = vrot.slane %v5002_v35, %v5820_v59  ;;  %v2317_v26 = vcombine.low %v2292_v51, %v2300_v29  ;;  %v2916_v19 = vmul.f32 %v5529_v9, %v6199_v32 }
 0x3d8   : > { %v2282_v10 = vrot.slane %v2275_v62, %v5827_v8  ;;  %5536 = vrcp.f32 %v6310_v33  ;;  %v2885_v3 = vpop.xlane.xlu0 %2884 }
 0x3d9   : > { %v2325_v14 = vcombine.low %v2308_v24, %v2316_v61  ;;  %v2324_v16 = vrot.slane %v2317_v26, %v5827_v8  ;;  %v2931_v28 = vpack.c.bf16 %v2917_v27, %v2916_v19 }
 0x3da   : > { %v2283_v56 = vcombine.low %v2274_v15, %v2282_v10  ;;  %v2284_v30 = vcombine.high %v2274_v15, %v2282_v10 }
 0x3db   : > { %v2332_v17 = vrot.slane %v2325_v14, %v5827_v8 }
 0x3dc   : > { %v2355_v20 = vshrl.u32 %v2283_v56, 16  ;;  %v2891_v45 = vpop.xlane.xlu0 %2890  ;;  %v2363_v25 = vshrl.u32 %v2284_v30, 16 }
 0x3dd   : > { %v2333_v4 = vcombine.low %v2324_v16, %v2332_v17  ;;  %v2334_v31 = vcombine.high %v2324_v16, %v2332_v17 }
 0x3de   : > { %v5533_v23 = vpop.eup %5532 }
 0x3df   : > { %v2353_v34 = vpack.i.b16 %v2333_v4, %v2283_v56  ;;  %v2356_v11 = vshrl.u32 %v2333_v4, 16  ;;  %v2921_v40 = vmul.f32 %v5533_v23, %v6214_v60  ;;  %v2361_v37 = vpack.i.b16 %v2334_v31, %v2284_v30 }
 0x3e0   : > { %v5535_v22 = vpop.eup %5534  ;;  %v2897_v35 = vpop.xlane.xlu0 %2896  ;;  %v2364_v49 = vshrl.u32 %v2334_v31, 16 }
 0x3e1   : > { %5294 = vmatpush3.bf16.msra.mxu0 %v2353_v34  ;;  %v2357_v46 = vpack.i.b16 %v2356_v11, %v2355_v20  ;;  %v2920_v32 = vmul.f32 %v5535_v22, %v6209_v55  ;;  %v5407_v34 = vld [vmem:[%s6775_s2 + $0x18] sm:$0xff]   ;;  %v5408_v11 = vld [vmem:[%s6775_s2 + $0x20] sm:$0xff]  }
 0x3e2   : > { %5305 = vmatprep.subr.bf16.mxu0 %v5596_v43  ;;  %v5537_v42 = vpop.eup %5536  ;;  %v2365_v10 = vpack.i.b16 %v2364_v49, %v2363_v25 }
 0x3e3   : > { %v2933_v7 = vpack.c.bf16 %v2921_v40, %v2920_v32  ;;  %v2918_v41 = vmul.f32 %v5537_v42, %v6194_v18 }
 0x3e4   : > { %5296 = vmatmul.mubr.msk.bf16.vlgmr.msra.gmra.mrb[28].mxu0 %vm2753_vm4, %v2931_v28 }
 0x3e5   : > { %5306 = vmatpush3.bf16.msra.mxu0 %v2357_v46  ;;  %5307 = vmatprep.mubr.msk.bf16.mxu0 %vm5597_vm0, %v5596_v43 }
 0x3e6   : > { %5317 = vmatprep.subr.bf16.mxu0 %v5596_v43 }
 0x3ec   : > { %5308 = vmatmul.mubr.msk.bf16.vlgmr.msra.gmra.mrb[32].mxu0 %vm2753_vm4, %v2933_v7 }
 0x3ed   : > { %5318 = vmatpush3.bf16.msra.mxu0 %v2361_v37  ;;  %5319 = vmatprep.mubr.msk.bf16.mxu0 %vm5597_vm0, %v5596_v43 }
 0x3ee   : > { %5329 = vmatprep.subr.bf16.mxu0 %v5596_v43 }
 0x3f8   : > { %v2867_v60 = vpop.xlane.xlu1 %2866 }
 0x3f9   : > { %5538 = vrcp.f32 %v2867_v60 }
 0x3fc   : > { %v2876_v38 = vpop.xlane.xlu1 %2875 }
 0x3fd   : > { %5540 = vrcp.f32 %v2876_v38 }
 0x3fe   : > { %5542 = vrcp.f32 %v2879_v57 }
 0x3ff   : > { %5544 = vrcp.f32 %v2885_v3 }
 0x400   : > { %v2882_v55 = vpop.xlane.xlu1 %2881 }
 0x401   : > { %5546 = vrcp.f32 %v2882_v55 }
 0x403   : > { %v5539_v48 = vpop.eup %5538 }
 0x404   : > { %v2919_v51 = vmul.f32 %v5539_v48, %v6242_v47  ;;  %v2888_v29 = vpop.xlane.xlu1 %2887 }
 0x405   : > { %5548 = vrcp.f32 %v2888_v29 }
 0x406   : > { %v2932_v0 = vpack.c.bf16 %v2919_v51, %v2918_v41  ;;  %5550 = vrcp.f32 %v2891_v45 }
 0x407   : > { %v5541_v33 = vpop.eup %5540  ;;  %5552 = vrcp.f32 %v2897_v35 }
 0x408   : > { %v5543_v5 = vpop.eup %5542  ;;  %5302 = vmatmul.mubr.msk.bf16.vlgmr.msra.gmra.mrb[20].mxu1 %vm2753_vm4, %v2932_v0  ;;  %v2922_v18 = vmul.f32 %v5541_v33, %v6248_v39 }
 0x409   : > { %v5545_v62 = vpop.eup %5544  ;;  %5312 = vmatpush3.bf16.msra.mxu1 %v2345_v52  ;;  %5313 = vmatprep.mubr.msk.bf16.mxu1 %vm5597_vm0, %v5596_v43  ;;  %v2894_v9 = vpop.xlane.xlu1 %2893  ;;  %v2923_v24 = vmul.f32 %v5543_v5, %v6219_v53 }
 0x40a   : > { %5323 = vmatprep.subr.bf16.mxu1 %v5596_v43  ;;  %v2925_v61 = vmul.f32 %v5545_v62, %v6225_v6  ;;  %5554 = vrcp.f32 %v2894_v9 }
 0x40b   : > { %v5547_v47 = vpop.eup %5546  ;;  %v2934_v13 = vpack.c.bf16 %v2923_v24, %v2922_v18 }
 0x40c   : > { %v2924_v26 = vmul.f32 %v5547_v47, %v6254_v36 }
 0x40e   : > { %v2935_v52 = vpack.c.bf16 %v2925_v61, %v2924_v26 }
 0x40f   : > { %v5549_v63 = vpop.eup %5548 }
 0x410   : > { %5314 = vmatmul.mubr.msk.bf16.vlgmr.msra.gmra.mrb[24].mxu1 %vm2753_vm4, %v2934_v13  ;;  %5320 = vmatmul.mubr.msk.bf16.vlgmr.msra.gmra.mrb[36].mxu0 %vm2753_vm4, %v2935_v52  ;;  %v5551_v39 = vpop.eup %5550  ;;  %v2926_v53 = vmul.f32 %v5549_v63, %v6263_v58  ;;  %v5406_v58 = vld [vmem:[%s6775_s2 + $0x10] sm:$0xff]  }
 0x411   : > { %5324 = vmatpush3.bf16.msra.mxu1 %v6305_v21  ;;  %5330 = vmatpush3.bf16.msra.mxu0 %v2365_v10  ;;  %v5553_v6 = vpop.eup %5552  ;;  %v2927_v36 = vmul.f32 %v5551_v39, %v6229_v44  ;;  %v5405_v44 = vld [vmem:[%s6775_s2 + $0x8] sm:$0xff]  }
 0x412   : > { %5325 = vmatprep.mubr.msk.bf16.mxu1 %vm5597_vm0, %v5596_v43  ;;  %5331 = vmatprep.mubr.msk.bf16.mxu0 %vm5597_vm0, %v5596_v43  ;;  %v2929_v16 = vmul.f32 %v5553_v6, %v6233_v1  ;;  %v5404_v43 = vld [vmem:[%s6775_s2] sm:$0xff]  }
 0x413   : > { %v2936_v15 = vpack.c.bf16 %v2927_v36, %v2926_v53  ;;  %5335 = vmatprep.subr.bf16.mxu1 %v5404_v43 }
 0x414   : > { %v5555_v14 = vpop.eup %5554 }
 0x415   : > { %v2928_v17 = vmul.f32 %v5555_v14, %v6281_v12 }
 0x417   : > { %v2937_v21 = vpack.c.bf16 %v2929_v16, %v2928_v17 }
 0x418   : > { %5326 = vmatmul.mubr.msk.bf16.vlgmr.msra.gmra.mrb[28].mxu1 %vm2753_vm4, %v2936_v15 }
 0x419   : > { %5332 = vmatmul.mubr.msk.bf16.vlgmr.msra.gmra.mrb[40].mxu0 %vm2753_vm4, %v2937_v21  ;;  %5336 = vmatpush3.bf16.msra.mxu1 %v5404_v43 }
 0x41a   : > { %4287 = vmatprep.mubr.bf16.mxu0 %v5592_v2  ;;  %5337 = vmatprep.subr.bf16.mxu1 %v5405_v44 }
 0x41d   : > { %5338 = vmatpush3.bf16.msra.mxu1 %v5405_v44 }
 0x41e   : > { %5339 = vmatprep.subr.bf16.mxu1 %v5406_v58 }
 0x421   : > { %5340 = vmatpush3.bf16.msra.mxu1 %v5406_v58 }
 0x422   : > { %5341 = vmatprep.subr.bf16.mxu1 %v5407_v34 }
 0x425   : > { %5342 = vmatpush3.bf16.msra.mxu1 %v5407_v34 }
 0x426   : > { %5343 = vmatprep.subr.bf16.mxu1 %v5408_v11 }
 0x429   : > { %5344 = vmatpush3.bf16.msra.mxu1 %v5408_v11 }
 0x4a0   : > { %v2975_v1 = vpop.f32.mrb[16].mxu1 }
 0x4a1   : > { %v5291_v12 = vpop.f32.mrb[17].mxu1 }
 0x4a2   : > { %v2978_v56 = vpop.f32.mrb[18].mxu1 }
 0x4a3   : > { %v3290_v4 = vpack.c.bf16 %v2978_v56, %v2975_v1  ;;  %v5292_v27 = vpop.f32.mrb[19].mxu1 }
 0x4a5   : > { %v3302_v48 = vshrl.u32 %v3290_v4, 16 }
 0x4b7   : > { %v3019_v19 = vpop.f32.mrb[28].mxu0 }
 0x4b8   : > { %v5297_v20 = vpop.f32.mrb[29].mxu0 }
 0x4b9   : > { %v3022_v28 = vpop.f32.mrb[30].mxu0 }
 0x4ba   : > { %v3291_v23 = vpack.c.bf16 %v3022_v28, %v3019_v19  ;;  %v5298_v46 = vpop.f32.mrb[31].mxu0 }
 0x4bc   : > { %v3318_v7 = vshrl.u32 %v3291_v23, 16 }
 0x4bf   : > { %v3107_v22 = vpop.f32.mrb[32].mxu0 }
 0x4c0   : > { %v5309_v40 = vpop.f32.mrb[33].mxu0 }
 0x4c1   : > { %v3110_v31 = vpop.f32.mrb[34].mxu0 }
 0x4c2   : > { %v3293_v32 = vpack.c.bf16 %v3110_v31, %v3107_v22  ;;  %v5310_v30 = vpop.f32.mrb[35].mxu0 }
 0x4c4   : > { %v3316_v37 = vpack.i.b16 %v3293_v32, %v3291_v23  ;;  %v3319_v57 = vshrl.u32 %v3293_v32, 16 }
 0x4c6   : > { %v3320_v60 = vpack.i.b16 %v3319_v57, %v3318_v7  ;;  %v3462_v61 = vcombine.high %v3316_v37, %v5815_v54  ;;  %v3469_v6 = vrot.slane %v3316_v37, %v5820_v59 }
 0x4c8   : > { %v3528_v13 = vcombine.high %v3320_v60, %v5815_v54  ;;  %v6411_v36 = vrot.slane %v3462_v61, %v5820_v59  ;;  %v6415_v16 = vrot.slane %v3320_v60, %v5820_v59 }
 0x4ca   : > { %v6418_v1 = vrot.slane %v3528_v13, %v5820_v59 }
 0x4db   : > { %v3063_v3 = vpop.f32.mrb[20].mxu1 }
 0x4dc   : > { %v5303_v38 = vpop.f32.mrb[21].mxu1 }
 0x4dd   : > { %v3066_v55 = vpop.f32.mrb[22].mxu1 }
 0x4de   : > { %v3292_v42 = vpack.c.bf16 %v3066_v55, %v3063_v3  ;;  %v5304_v45 = vpop.f32.mrb[23].mxu1 }
 0x4e0   : > { %v3300_v41 = vpack.i.b16 %v3292_v42, %v3290_v4  ;;  %v3303_v51 = vshrl.u32 %v3292_v42, 16 }
 0x4e2   : > { %v3304_v29 = vpack.i.b16 %v3303_v51, %v3302_v48  ;;  %v3330_v52 = vcombine.high %v3300_v41, %v5815_v54  ;;  %v3337_v58 = vrot.slane %v3300_v41, %v5820_v59 }
 0x4e3   : > { %v3151_v0 = vpop.f32.mrb[24].mxu1  ;;  %v3195_v33 = vpop.f32.mrb[36].mxu0 }
 0x4e4   : > { %v5315_v35 = vpop.f32.mrb[25].mxu1  ;;  %v5321_v5 = vpop.f32.mrb[37].mxu0  ;;  %v3396_v14 = vcombine.high %v3304_v29, %v5815_v54  ;;  %v3344_v12 = vrot.slane %v3330_v52, %v5820_v59  ;;  %v3403_v27 = vrot.slane %v3304_v29, %v5820_v59 }
 0x4e5   : > { %v3154_v62 = vpop.f32.mrb[26].mxu1  ;;  %v3198_v18 = vpop.f32.mrb[38].mxu0 }
 0x4e6   : > { %v3294_v47 = vpack.c.bf16 %v3154_v62, %v3151_v0  ;;  %v3295_v9 = vpack.c.bf16 %v3198_v18, %v3195_v33  ;;  %v5316_v49 = vpop.f32.mrb[27].mxu1  ;;  %v5322_v24 = vpop.f32.mrb[39].mxu0  ;;  %v3410_v20 = vrot.slane %v3396_v14, %v5820_v59 }
 0x4e8   : > { %v3310_v17 = vshrl.u32 %v3294_v47, 16  ;;  %v3326_v28 = vshrl.u32 %v3295_v9, 16 }
 0x4eb   : > { %v3239_v26 = vpop.f32.mrb[28].mxu1 }
 0x4ec   : > { %v5327_v25 = vpop.f32.mrb[29].mxu1  ;;  %v3283_v10 = vpop.f32.mrb[40].mxu0 }
 0x4ed   : > { %v3242_v63 = vpop.f32.mrb[30].mxu1  ;;  %v5333_v15 = vpop.f32.mrb[41].mxu0 }
 0x4ee   : > { %v3296_v39 = vpack.c.bf16 %v3242_v63, %v3239_v26  ;;  %v5328_v53 = vpop.f32.mrb[31].mxu1  ;;  %v3286_v44 = vpop.f32.mrb[42].mxu0 }
 0x4ef   : > { %v3297_v56 = vpack.c.bf16 %v3286_v44, %v3283_v10  ;;  %v5334_v4 = vpop.f32.mrb[43].mxu0 }
 0x4f0   : > { %v3308_v21 = vpack.i.b16 %v3296_v39, %v3294_v47  ;;  %v3311_v43 = vshrl.u32 %v3296_v39, 16 }
 0x4f1   : > { %v3324_v23 = vpack.i.b16 %v3297_v56, %v3295_v9  ;;  %v3327_v46 = vshrl.u32 %v3297_v56, 16 }
 0x4f2   : > { %v3312_v34 = vpack.i.b16 %v3311_v43, %v3310_v17  ;;  %v3345_v11 = vcombine.high %v3308_v21, %v5815_v54  ;;  %v3352_v19 = vrot.slane %v3308_v21, %v5820_v59 }
 0x4f3   : > { %v3328_v7 = vpack.i.b16 %v3327_v46, %v3326_v28  ;;  %v3477_v37 = vcombine.high %v3324_v23, %v5815_v54  ;;  %v3484_v57 = vrot.slane %v3324_v23, %v5820_v59 }
 0x4f4   : > { %v3359_v22 = vrot.slane %v3345_v11, %v5820_v59  ;;  %v3360_v40 = vcombine.low %v3337_v58, %v3352_v19  ;;  %v3361_v31 = vcombine.high %v3337_v58, %v3352_v19  ;;  %v3411_v32 = vcombine.high %v3312_v34, %v5815_v54 }
 0x4f5   : > { %v3418_v30 = vrot.slane %v3312_v34, %v5820_v59  ;;  %v3491_v41 = vrot.slane %v3477_v37, %v5820_v59  ;;  %v3492_v49 = vcombine.low %v3469_v6, %v3484_v57  ;;  %v3493_v24 = vcombine.high %v3469_v6, %v3484_v57 }
 0x4f6   : > { %v3368_v60 = vrot.slane %v3360_v40, %v5827_v8  ;;  %v3375_v3 = vrot.slane %v3361_v31, %v5827_v8  ;;  %v3376_v38 = vcombine.low %v3344_v12, %v3359_v22  ;;  %v3377_v55 = vcombine.high %v3344_v12, %v3359_v22  ;;  %v5409_v40 = vld [vmem:[%s6775_s2 + $0x28] sm:$0xff]  }
 0x4f7   : > { %v3425_v42 = vrot.slane %v3411_v32, %v5820_v59  ;;  %v3426_v45 = vcombine.low %v3403_v27, %v3418_v30  ;;  %v3427_v48 = vcombine.high %v3403_v27, %v3418_v30  ;;  %v3500_v52 = vrot.slane %v3492_v49, %v5827_v8  ;;  %5345 = vmatprep.subr.bf16.mxu1 %v5409_v40 }
 0x4f8   : > { %v3384_v51 = vrot.slane %v3376_v38, %v5827_v8  ;;  %v3391_v29 = vrot.slane %v3377_v55, %v5827_v8  ;;  %v3594_v0 = vcombine.low %v3368_v60, %v3375_v3  ;;  %v5019_v33 = vcombine.high %v3368_v60, %v3375_v3  ;;  %5346 = vmatpush3.bf16.msra.mxu1 %v5409_v40 }
 0x4f9   : > { %v3434_v35 = vrot.slane %v3426_v45, %v5827_v8  ;;  %v3441_v5 = vrot.slane %v3427_v48, %v5827_v8  ;;  %v3442_v62 = vcombine.low %v3410_v20, %v3425_v42  ;;  %v3443_v18 = vcombine.high %v3410_v20, %v3425_v42 }
 0x4fa   : > { %v3610_v47 = vcombine.low %v3384_v51, %v3391_v29  ;;  %v5020_v9 = vcombine.high %v3384_v51, %v3391_v29  ;;  %v3507_v63 = vrot.slane %v3493_v24, %v5827_v8  ;;  %v3508_v10 = vcombine.low %v6411_v36, %v3491_v41 }
 0x4fb   : > { %v3450_v61 = vrot.slane %v3442_v62, %v5827_v8  ;;  %v3457_v26 = vrot.slane %v3443_v18, %v5827_v8  ;;  %v3644_v25 = vcombine.low %v3434_v35, %v3441_v5  ;;  %v5021_v13 = vcombine.high %v3434_v35, %v3441_v5 }
 0x4fc   : > { %v3509_v39 = vcombine.high %v6411_v36, %v3491_v41  ;;  %v3543_v53 = vcombine.high %v3328_v7, %v5815_v54  ;;  %v3550_v14 = vrot.slane %v3328_v7, %v5820_v59  ;;  %v3601_v6 = vrot.slane %v3594_v0, %v5820_v59 }
 0x4fd   : > { %v3609_v15 = vrot.slane %v5019_v33, %v5820_v59  ;;  %v3516_v17 = vrot.slane %v3508_v10, %v5827_v8  ;;  %v3694_v43 = vcombine.low %v3500_v52, %v3507_v63  ;;  %v5023_v44 = vcombine.high %v3500_v52, %v3507_v63 }
 0x4fe   : > { %v3523_v21 = vrot.slane %v3509_v39, %v5827_v8  ;;  %v3557_v58 = vrot.slane %v3543_v53, %v5820_v59  ;;  %v3558_v12 = vcombine.low %v6415_v16, %v3550_v14  ;;  %v3559_v36 = vcombine.high %v6415_v16, %v3550_v14 }
 0x4ff   : > { %v3617_v54 = vrot.slane %v3610_v47, %v5820_v59  ;;  %v3701_v56 = vrot.slane %v3694_v43, %v5820_v59  ;;  %v3709_v4 = vrot.slane %v5023_v44, %v5820_v59  ;;  %v3625_v23 = vrot.slane %v5020_v9, %v5820_v59  ;;  %v5410_v47 = vld [vmem:[%s6775_s2 + $0x30] sm:$0xff]  }
 0x500   : > { %v3710_v27 = vcombine.low %v3516_v17, %v3523_v21  ;;  %v5024_v34 = vcombine.high %v3516_v17, %v3523_v21  ;;  %v3566_v11 = vrot.slane %v3558_v12, %v5827_v8  ;;  %v3573_v19 = vrot.slane %v3559_v36, %v5827_v8  ;;  %5347 = vmatprep.subr.bf16.mxu1 %v5410_v47 }
 0x501   : > { %v3574_v20 = vcombine.low %v6418_v1, %v3557_v58  ;;  %v3575_v28 = vcombine.high %v6418_v1, %v3557_v58  ;;  %v3626_v46 = vcombine.low %v3601_v6, %v3609_v15  ;;  %v3651_v16 = vrot.slane %v3644_v25, %v5820_v59  ;;  %5348 = vmatpush3.bf16.msra.mxu1 %v5410_v47  ;;  %v5411_v15 = vld [vmem:[%s6775_s2 + $0x38] sm:$0xff]  }
 0x502   : > { %v3659_v22 = vrot.slane %v5021_v13, %v5820_v59  ;;  %v3744_v30 = vcombine.low %v3566_v11, %v3573_v19  ;;  %v5025_v7 = vcombine.high %v3566_v11, %v3573_v19  ;;  %v3634_v1 = vcombine.low %v3617_v54, %v3625_v23  ;;  %5349 = vmatprep.subr.bf16.mxu1 %v5411_v15 }
 0x503   : > { %v3582_v31 = vrot.slane %v3574_v20, %v5827_v8  ;;  %v3589_v32 = vrot.slane %v3575_v28, %v5827_v8  ;;  %v3633_v37 = vrot.slane %v3626_v46, %v5827_v8  ;;  %v3660_v57 = vcombine.low %v3450_v61, %v3457_v26 }
 0x504   : > { %v5022_v60 = vcombine.high %v3450_v61, %v3457_v26  ;;  %v3676_v55 = vcombine.low %v3651_v16, %v3659_v22  ;;  %v3717_v42 = vrot.slane %v3710_v27, %v5820_v59  ;;  %v3641_v45 = vrot.slane %v3634_v1, %v5827_v8 }
 0x505   : > { %v3760_v3 = vcombine.low %v3582_v31, %v3589_v32  ;;  %v5026_v38 = vcombine.high %v3582_v31, %v3589_v32  ;;  %v3667_v48 = vrot.slane %v3660_v57, %v5820_v59  ;;  %v3725_v51 = vrot.slane %v5024_v34, %v5820_v59  ;;  %5350 = vmatpush3.bf16.msra.mxu1 %v5411_v15 }
 0x506   : > { %v3675_v41 = vrot.slane %v5022_v60, %v5820_v59  ;;  %v3726_v29 = vcombine.low %v3701_v56, %v3709_v4  ;;  %v3751_v0 = vrot.slane %v3744_v30, %v5820_v59  ;;  %v3759_v33 = vrot.slane %v5025_v7, %v5820_v59  ;;  %v5027_v60 = vld [vmem:[%s6776_s3] ss:$0 sm:$0xff] }
 0x507   : > { %v3643_v35 = vcombine.high %v3633_v37, %v3641_v45  ;;  %v3734_v62 = vcombine.low %v3717_v42, %v3725_v51  ;;  %v3767_v18 = vrot.slane %v3760_v3, %v5820_v59  ;;  %v3775_v9 = vrot.slane %v5026_v38, %v5820_v59  ;;  %v5580_v51 = vld [vmem:[%s5711_s16] sm:$0xff] }
 0x508   : > { %v3684_v5 = vcombine.low %v3667_v48, %v3675_v41  ;;  %v3776_v49 = vcombine.low %v3751_v0, %v3759_v33  ;;  %v3642_v24 = vcombine.low %v3633_v37, %v3641_v45  ;;  %v3683_v61 = vrot.slane %v3676_v55, %v5827_v8  ;;  %v5581_v0 = vld [vmem:[%s5711_s16 + $0x8] sm:$0xff] }
 0x509   : > { %v3733_v25 = vrot.slane %v3726_v29, %v5827_v8  ;;  %v3741_v13 = vrot.slane %v3734_v62, %v5827_v8  ;;  %v3784_v52 = vcombine.low %v3767_v18, %v3775_v9  ;;  %v3803_v6 = vshrl.u32 %v3643_v35, 16  ;;  %v5583_v18 = vld [vmem:[%s5711_s16 + $0x18] sm:$0xff]  ;;  %v5412_v9 = vld [vmem:[%s6777_s4] ss:$16 sps:$4 sm:$0xff]  }
 0x50a   : > { %v3691_v26 = vrot.slane %v3684_v5, %v5827_v8  ;;  %v3783_v14 = vrot.slane %v3776_v49, %v5827_v8  ;;  %v3797_v21 = vshrl.u32 %v3642_v24, 16  ;;  %v5582_v5 = vld [vmem:[%s5711_s16 + $0x10] sm:$0xff] }
 0x50b   : > { %v3742_v10 = vcombine.low %v3733_v25, %v3741_v13  ;;  %v3743_v53 = vcombine.high %v3733_v25, %v3741_v13  ;;  %v3791_v59 = vrot.slane %v3784_v52, %v5827_v8  ;;  %v5414_v49 = vld [vmem:[%s6777_s4 + $0x4] ss:$16 sps:$4 sm:$0xff]   ;;  %v5423_v25 = vld [vmem:[%s6777_s4 + $0x2c] ss:$16 sps:$4 sm:$0xff]   ;;  %v5418_v13 = vld [vmem:[%s6777_s4 + $0x20] ss:$16 sps:$4 sm:$0xff]  }
 0x50c   : > { %v3693_v63 = vcombine.high %v3683_v61, %v3691_v26  ;;  %v3692_v39 = vcombine.low %v3683_v61, %v3691_v26  ;;  %v5417_v61 = vld [vmem:[%s6777_s4 + $0xc] ss:$16 sps:$4 sm:$0xff]   ;;  %v5420_v26 = vld [vmem:[%s6777_s4 + $0x24] ss:$16 sps:$4 sm:$0xff]   ;;  %4255 = vmatprep.subr.bf16.mxu0 %v5414_v49  ;;  %v5421_v52 = vld [vmem:[%s6777_s4 + $0x28] ss:$16 sps:$4 sm:$0xff]  }
 0x50d   : > { %v3792_v58 = vcombine.low %v3783_v14, %v3791_v59  ;;  %v3793_v12 = vcombine.high %v3783_v14, %v3791_v59  ;;  %v3809_v54 = vshrl.u32 %v3742_v10, 16  ;;  %v3815_v27 = vshrl.u32 %v3743_v53, 16  ;;  %4308 = vmatprep.subr.bf16.mxu1 %v5417_v61  ;;  %4256 = vmatpush1.bf16.msra.mxu0 %v5412_v9  ;;  %v5036_v49 = vld [vmem:[%s6781_s8] ss:$0 sm:$0xff] }
 0x50e   : > { %v3802_v17 = vpack.i.b16 %v3693_v63, %v3643_v35  ;;  %v3798_v43 = vshrl.u32 %v3692_v39, 16  ;;  %v3804_v44 = vshrl.u32 %v3693_v63, 16  ;;  %v3796_v36 = vpack.i.b16 %v3692_v39, %v3642_v24  ;;  %v5415_v24 = vld [vmem:[%s6777_s4 + $0x8] ss:$16 sps:$4 sm:$0xff]   ;;  %4257 = vmatprep.subr.bf16.mxu0 %v5420_v26 }
 0x50f   : > { %v3810_v8 = vshrl.u32 %v3792_v58, 16  ;;  %v3814_v34 = vpack.i.b16 %v3793_v12, %v3743_v53  ;;  %v3816_v11 = vshrl.u32 %v3793_v12, 16  ;;  %v3808_v19 = vpack.i.b16 %v3792_v58, %v3742_v10 }
 0x510   : > { %3822 = vrot.lane.b32.xlu1 %v3802_v17, %s5593_s20  ;;  %v3799_v56 = vpack.i.b16 %v3798_v43, %v3797_v21  ;;  %v3805_v4 = vpack.i.b16 %v3804_v44, %v3803_v6 }
 0x511   : > { %v3811_v20 = vpack.i.b16 %v3810_v8, %v3809_v54  ;;  %v3817_v28 = vpack.i.b16 %v3816_v11, %v3815_v27  ;;  %4258 = vmatpush1.bf16.msra.mxu0 %v5418_v13  ;;  %v5424_v27 = vld [vmem:[%s6777_s4 + $0x40] ss:$16 sps:$4 sm:$0xff]   ;;  %v5427_v8 = vld [vmem:[%s6777_s4 + $0x48] ss:$16 sps:$4 sm:$0xff]   ;;  %v5435_v11 = vld [vmem:[%s6777_s4 + $0x6c] ss:$16 sps:$4 sm:$0xff]  }
 0x513   : > { %3820 = vrot.lane.b32.xlu0 %v3811_v20, %s5595_s22  ;;  %v5433_v20 = vld [vmem:[%s6777_s4 + $0x68] ss:$16 sps:$4 sm:$0xff]  }
 0x514   : > { %3818 = vrot.lane.b32.xlu1 %v3799_v56, %s5595_s22  ;;  %v5426_v56 = vld [vmem:[%s6777_s4 + $0x44] ss:$16 sps:$4 sm:$0xff]  }
 0x515   : > { %4259 = vmatprep.subr.bf16.mxu0 %v5426_v56  ;;  %v5468_v56 = vld [vmem:[%s6779_s6 + $0x50] sm:$0xff]  }
 0x516   : > { %4260 = vmatpush1.bf16.msra.mxu0 %v5424_v27 }
 0x517   : > { %3826 = vrot.lane.b32.xlu0 %v3805_v4, %s5594_s21  ;;  %v5429_v4 = vld [vmem:[%s6777_s4 + $0x4c] ss:$16 sps:$4 sm:$0xff]  }
 0x518   : > { %3824 = vrot.lane.b32.xlu1 %v3814_v34, %s5593_s20  ;;  %v5432_v34 = vld [vmem:[%s6777_s4 + $0x64] ss:$16 sps:$4 sm:$0xff]  }
 0x519   : > { %4261 = vmatprep.subr.bf16.mxu0 %v5432_v34  ;;  %v5471_v34 = vld [vmem:[%s6779_s6 + $0x90] sm:$0xff]  }
 0x51c   : > { %3828 = vrot.lane.b32.xlu1 %v3817_v28, %s5594_s21  ;;  %v5438_v28 = vld [vmem:[%s6777_s4 + $0x84] ss:$16 sps:$4 sm:$0xff]  }
 0x582   : > { %v3823_v23 = vpop.permute.xlu1 %3822 }
 0x585   : > { %v3821_v16 = vpop.permute.xlu0 %3820 }
 0x586   : > { %v3819_v46 = vpop.permute.xlu1 %3818  ;;  %v3835_v7 = vsel %vm2376_vm1, %v3808_v19, %v3821_v16  ;;  %v5430_v19 = vld [vmem:[%s6777_s4 + $0x60] ss:$16 sps:$4 sm:$0xff]   ;;  %v5439_v16 = vld [vmem:[%s6777_s4 + $0x88] ss:$16 sps:$4 sm:$0xff]  }
 0x587   : > { %v3832_v22 = vsel %vm2376_vm1, %v3796_v36, %v3819_v46  ;;  %4262 = vmatpush1.bf16.msra.mxu0 %v5430_v19  ;;  %v5436_v46 = vld [vmem:[%s6777_s4 + $0x80] ss:$16 sps:$4 sm:$0xff]   ;;  %v5473_v19 = vld [vmem:[%s6779_s6 + $0xd8] sm:$0xff]  }
 0x588   : > { %v3838_v40 = vsel %vm3836_vm5, %v3832_v22, %v3823_v23  ;;  %v5441_v23 = vld [vmem:[%s6777_s4 + $0x8c] ss:$16 sps:$4 sm:$0xff]   ;;  %4263 = vmatprep.subr.bf16.mxu0 %v5438_v28  ;;  %v5444_v22 = vld [vmem:[%s6777_s4 + $0xa4] ss:$16 sps:$4 sm:$0xff]  }
 0x589   : > { %v3827_v32 = vpop.permute.xlu0 %3826  ;;  %v5475_v28 = vld [vmem:[%s6779_s6 + $0x98] sm:$0xff]  }
 0x58a   : > { %v3825_v31 = vpop.permute.xlu1 %3824  ;;  %v3843_v30 = vsel %vm3841_vm6, %v3838_v40, %v3827_v32  ;;  %v5447_v40 = vld [vmem:[%s6777_s4 + $0xac] ss:$16 sps:$4 sm:$0xff]   ;;  %v5445_v32 = vld [vmem:[%s6777_s4 + $0xa8] ss:$16 sps:$4 sm:$0xff]  }
 0x58b   : > { %5351 = vmatprep.mubr.bf16.mxu1 %v3843_v30  ;;  %v3840_v37 = vsel %vm3836_vm5, %v3835_v7, %v3825_v31  ;;  %4264 = vmatpush1.bf16.msra.mxu0 %v5436_v46  ;;  %v5442_v31 = vld [vmem:[%s6777_s4 + $0xa0] ss:$16 sps:$4 sm:$0xff]   ;;  %v5450_v7 = vld [vmem:[%s6777_s4 + $0xc4] ss:$16 sps:$4 sm:$0xff]  }
 0x58c   : > { %4265 = vmatprep.subr.bf16.mxu0 %v5444_v22  ;;  %v5448_v30 = vld [vmem:[%s6777_s4 + $0xc0] ss:$16 sps:$4 sm:$0xff]  }
 0x58d   : > { %v5477_v46 = vld [vmem:[%s6779_s6 + $0xe0] sm:$0xff]  }
 0x58e   : > { %v3829_v1 = vpop.permute.xlu1 %3828  ;;  %v5479_v22 = vld [vmem:[%s6779_s6 + $0xa0] sm:$0xff]  }
 0x58f   : > { %v3846_v57 = vsel %vm3841_vm6, %v3840_v37, %v3829_v1  ;;  %4266 = vmatpush1.bf16.msra.mxu0 %v5442_v31  ;;  %v5451_v37 = vld [vmem:[%s6777_s4 + $0xc8] ss:$16 sps:$4 sm:$0xff]   ;;  %v5453_v1 = vld [vmem:[%s6777_s4 + $0xcc] ss:$16 sps:$4 sm:$0xff]  }
 0x590   : > { %5352 = vmatmul.mubr.bf16.vlgmr.msra.gmra.mrb[32].mxu1 %v3846_v57  ;;  %v5456_v57 = vld [vmem:[%s6777_s4 + $0xe4] ss:$16 sps:$4 sm:$0xff]   ;;  %4267 = vmatprep.subr.bf16.mxu0 %v5450_v7  ;;  %v5481_v31 = vld [vmem:[%s6779_s6 + $0xe8] sm:$0xff]  }
 0x591   : > { %4340 = vmatprep.mubr.bf16.mxu1 %v5592_v2  ;;  %4309 = vmatpush1.bf16.msra.mxu1 %v5415_v24  ;;  %v5484_v7 = vld [vmem:[%s6779_s6 + $0x70] sm:$0xff]  }
 0x592   : > { %4310 = vmatprep.subr.bf16.mxu1 %v5423_v25 }
 0x593   : > { %4268 = vmatpush1.bf16.msra.mxu0 %v5448_v30  ;;  %v5483_v30 = vld [vmem:[%s6779_s6 + $0xa8] sm:$0xff]  }
 0x594   : > { %4269 = vmatprep.subr.bf16.mxu0 %v5456_v57  ;;  %v5487_v57 = vld [vmem:[%s6779_s6 + $0xb0] sm:$0xff]  }
 0x595   : > { %4311 = vmatpush1.bf16.msra.mxu1 %v5421_v52  ;;  %v5037_v52 = vld [vmem:[%s6782_s9] ss:$0 sm:$0xff] }
 0x596   : > { %4312 = vmatprep.subr.bf16.mxu1 %v5429_v4 }
 0x599   : > { %4313 = vmatpush1.bf16.msra.mxu1 %v5427_v8  ;;  %v5470_v8 = vld [vmem:[%s6779_s6 + $0x10] sm:$0xff]  }
 0x59a   : > { %4314 = vmatprep.subr.bf16.mxu1 %v5435_v11  ;;  %v5472_v11 = vld [vmem:[%s6779_s6 + $0x58] sm:$0xff]  }
 0x59d   : > { %4315 = vmatpush1.bf16.msra.mxu1 %v5433_v20  ;;  %v5474_v20 = vld [vmem:[%s6779_s6 + $0x18] sm:$0xff]  }
 0x59e   : > { %4316 = vmatprep.subr.bf16.mxu1 %v5441_v23  ;;  %v5476_v23 = vld [vmem:[%s6779_s6 + $0x60] sm:$0xff]  }
 0x5a1   : > { %4317 = vmatpush1.bf16.msra.mxu1 %v5439_v16  ;;  %v5478_v16 = vld [vmem:[%s6779_s6 + $0x20] sm:$0xff]  }
 0x5a2   : > { %4318 = vmatprep.subr.bf16.mxu1 %v5447_v40  ;;  %v5480_v40 = vld [vmem:[%s6779_s6 + $0x68] sm:$0xff]  }
 0x5a5   : > { %4319 = vmatpush1.bf16.msra.mxu1 %v5445_v32  ;;  %v5482_v32 = vld [vmem:[%s6779_s6 + $0x28] sm:$0xff]  }
 0x5a6   : > { %4320 = vmatprep.subr.bf16.mxu1 %v5453_v1  ;;  %v5486_v1 = vld [vmem:[%s6779_s6 + $0x30] sm:$0xff]  }
 0x5a9   : > { %4321 = vmatpush1.bf16.msra.mxu1 %v5451_v37  ;;  %v5485_v37 = vld [vmem:[%s6779_s6 + $0xf0] sm:$0xff]  }
 0x663   : > { %v5353_v3 = vpop.f32.mrb[32].mxu1 }
 0x664   : > { %v3953_v38 = vpop.f32.mrb[33].mxu1  ;;  %v3962_v48 = vadd.f32 %v5353_v3, %v5027_v60  ;;  %v5454_v3 = vld [vmem:[%s6777_s4 + $0xe0] ss:$16 sps:$4 sm:$0xff]  }
 0x665   : > { %v3954_v55 = vadd.f32 %v5027_v60, %v3953_v38  ;;  %v5354_v42 = vpop.f32.mrb[34].mxu1  ;;  %v5457_v38 = vld [vmem:[%s6777_s4 + $0xe8] ss:$16 sps:$4 sm:$0xff]   ;;  %4270 = vmatpush1.bf16.msra.mxu0 %v5454_v3 }
 0x666   : > { %v3956_v45 = vpop.f32.mrb[35].mxu1  ;;  %v3965_v35 = vadd.f32 %v5354_v42, %v5027_v60  ;;  %v3970_v62 = vadd.f32 %v5582_v5, %v3962_v48  ;;  %v5461_v42 = vld [vmem:[%s6779_s6 + $0xc0] sm:$0xff]   ;;  %v5489_v3 = vld [vmem:[%s6779_s6 + $0xf8] sm:$0xff]  }
 0x667   : > { %v3957_v41 = vadd.f32 %v5027_v60, %v3956_v45  ;;  %v3968_v29 = vadd.f32 %v5580_v51, %v3954_v55  ;;  %v5459_v60 = vld [vmem:[%s6777_s4 + $0xec] ss:$16 sps:$4 sm:$0xff]   ;;  %v5460_v55 = vld [vmem:[%s6779_s6 + $0x40] sm:$0xff]  }
 0x668   : > { %v3971_v47 = vadd.f32 %v5583_v18, %v3965_v35  ;;  %4322 = vmatprep.subr.bf16.mxu1 %v5459_v60  ;;  %5163 = vmatprep.subr.bf16.mxu0 %v5460_v55  ;;  %v5488_v60 = vld [vmem:[%s6779_s6 + $0x78] sm:$0xff]  }
 0x669   : > { %3974 = vadd.xlane.f32.xlu0 %v3968_v29  ;;  %v3969_v33 = vadd.f32 %v5581_v0, %v3957_v41  ;;  %4323 = vmatpush1.bf16.msra.mxu1 %v5457_v38  ;;  %v5490_v38 = vld [vmem:[%s6779_s6 + $0x38] sm:$0xff]  }
 0x66a   : > { %5191 = vmatprep.subr.bf16.mxu1 %v5461_v42  ;;  %v5491_v55 = vld [vmem:[%s6779_s6 + $0xb8] sm:$0xff]   ;;  %v4077_v42 = vsub.s32 0, %v5811_v50 }
 0x66b   : > { %3976 = vadd.xlane.f32.xlu1 %v3969_v33 }
 0x66d   : > { %3978 = vadd.xlane.f32.xlu0 %v3970_v62 }
 0x671   : > { %3980 = vadd.xlane.f32.xlu0 %v3971_v47 }
 0x6f6   : > { %v3975_v63 = vpop.xlane.xlu0 %3974 }
 0x6f7   : > { %v3983_v10 = vmul.f32 0.0078125, %v3975_v63 }
 0x6f8   : > { %v3977_v39 = vpop.xlane.xlu1 %3976 }
 0x6f9   : > { %v6531_v53 = vsub.f32 %v3968_v29, %v3983_v10  ;;  %v3984_v14 = vmul.f32 0.0078125, %v3977_v39 }
 0x6fa   : > { %v3979_v59 = vpop.xlane.xlu0 %3978 }
 0x6fb   : > { %v6533_v6 = vsub.f32 %v3969_v33, %v3984_v14  ;;  %v3985_v15 = vmul.f32 0.0078125, %v3979_v59  ;;  %v3991_v17 = vmul.f32 %v6531_v53, %v6531_v53 }
 0x6fd   : > { %v6537_v21 = vsub.f32 %v3970_v62, %v3985_v15  ;;  %3995 = vadd.xlane.f32.xlu1 %v3991_v17  ;;  %v3992_v43 = vmul.f32 %v6533_v6, %v6533_v6  ;;  %v5463_v17 = vld [vmem:[%s6779_s6 + $0x80] sm:$0xff]  }
 0x6fe   : > { %v3981_v44 = vpop.xlane.xlu0 %3980 }
 0x6ff   : > { %v3986_v58 = vmul.f32 0.0078125, %v3981_v44  ;;  %3997 = vadd.xlane.f32.xlu0 %v3992_v43  ;;  %v3993_v12 = vmul.f32 %v6537_v21, %v6537_v21  ;;  %v5464_v43 = vld [vmem:[%s6779_s6 + $0x48] sm:$0xff]  }
 0x701   : > { %v6543_v36 = vsub.f32 %v3971_v47, %v3986_v58  ;;  %3999 = vadd.xlane.f32.xlu1 %v3993_v12 }
 0x703   : > { %v3994_v54 = vmul.f32 %v6543_v36, %v6543_v36 }
 0x705   : > { %4001 = vadd.xlane.f32.xlu0 %v3994_v54  ;;  %v5467_v54 = vld [vmem:[%s6779_s6 + $0x88] sm:$0xff]  }
 0x78a   : > { %v3996_v45 = vpop.xlane.xlu1 %3995 }
 0x78b   : > { %v4003_v48 = vmul.f32 0.0078125, %v3996_v45  ;;  %v4085_v45 = vsub.s32 2, %v5811_v50 }
 0x78c   : > { %v3998_v41 = vpop.xlane.xlu0 %3997 }
 0x78d   : > { %v4007_v51 = vadd.f32 1e-05, %v4003_v48  ;;  %v4004_v29 = vmul.f32 0.0078125, %v3998_v41  ;;  %v4073_v48 = vld [vmem:[%s6778_s5] sm:$0xf]  ;;  %v4081_v41 = vsub.s32 1, %v5811_v50 }
 0x78e   : > { %v4000_v0 = vpop.xlane.xlu1 %3999 }
 0x78f   : > { %5556 = vrsqrt.f32 %v4007_v51  ;;  %v4008_v33 = vadd.f32 1e-05, %v4004_v29  ;;  %v4005_v35 = vmul.f32 0.0078125, %v4000_v0  ;;  %v4089_v51 = vsub.s32 3, %v5811_v50 }
 0x790   : > { %v4078_v29 = vrot.slane %v4073_v48, %v4077_v42  ;;  %v4086_v0 = vrot.slane %v4073_v48, %v4085_v45 }
 0x791   : > { %5558 = vrsqrt.f32 %v4008_v33  ;;  %v4009_v5 = vadd.f32 1e-05, %v4005_v35  ;;  %v4082_v33 = vrot.slane %v4073_v48, %v4081_v41  ;;  %v4090_v35 = vrot.slane %v4073_v48, %v4089_v51 }
 0x792   : > { %v4002_v62 = vpop.xlane.xlu0 %4001 }
 0x793   : > { %5560 = vrsqrt.f32 %v4009_v5  ;;  %v4006_v18 = vmul.f32 0.0078125, %v4002_v62 }
 0x795   : > { %v4010_v47 = vadd.f32 1e-05, %v4006_v18 }
 0x797   : > { %5562 = vrsqrt.f32 %v4010_v47 }
 0x799   : > { %v5557_v9 = vpop.eup %5556 }
 0x79a   : > { %v4015_v24 = vmul.f32 %v5557_v9, %v6531_v53 }
 0x79b   : > { %v5559_v61 = vpop.eup %5558 }
 0x79c   : > { %v4016_v26 = vmul.f32 %v5559_v61, %v6533_v6  ;;  %v4025_v25 = vmul.f32 %v5036_v49, %v4015_v24  ;;  %v5462_v6 = vld [vmem:[%s6779_s6] sm:$0xff]  }
 0x79d   : > { %v5561_v13 = vpop.eup %5560 }
 0x79e   : > { %v4026_v63 = vmul.f32 %v5036_v49, %v4016_v26  ;;  %v6633_v10 = vadd.f32 %v5037_v52, %v4025_v25  ;;  %v4017_v14 = vmul.f32 %v5561_v13, %v6537_v21  ;;  %v5465_v21 = vld [vmem:[%s6779_s6 + $0xc8] sm:$0xff]  }
 0x7a0   : > { %v6635_v39 = vadd.f32 %v5037_v52, %v4026_v63  ;;  %v4027_v44 = vmul.f32 %v5036_v49, %v4017_v14 }
 0x7a1   : > { %v5563_v59 = vpop.eup %5562 }
 0x7a2   : > { %v4039_v53 = vpack.c.bf16 %v6635_v39, %v6633_v10  ;;  %v4018_v15 = vmul.f32 %v5563_v59, %v6543_v36  ;;  %v5466_v36 = vld [vmem:[%s6779_s6 + $0x8] sm:$0xff]   ;;  %v6669_v4 = vadd.f32 %v5037_v52, %v4027_v44 }
 0x7a4   : > { %4288 = vmatmul.mubr.bf16.vlgmr.msra.gmra.mrb[44].mxu0 %v4039_v53  ;;  %4341 = vmatmul.mubr.bf16.vlgmr.msra.gmra.mrb[36].mxu1 %v4039_v53  ;;  %v4028_v58 = vmul.f32 %v5036_v49, %v4018_v15 }
 0x7a5   : > { %4297 = vmatprep.mubr.bf16.mxu0 %v5592_v2  ;;  %4350 = vmatprep.mubr.bf16.mxu1 %v5592_v2  ;;  %v5469_v2 = vld [vmem:[%s6779_s6 + $0xd0] sm:$0xff]  }
 0x7a6   : > { %v6655_v12 = vadd.f32 %v5037_v52, %v4028_v58  ;;  %5164 = vmatpush3.bf16.msra.mxu0 %v5462_v6  ;;  %5192 = vmatpush3.bf16.msra.mxu1 %v5463_v17 }
 0x7a7   : > { %5165 = vmatprep.subr.bf16.mxu0 %v5464_v43  ;;  %5193 = vmatprep.subr.bf16.mxu1 %v5465_v21 }
 0x7a8   : > { %v4040_v27 = vpack.c.bf16 %v6655_v12, %v6669_v4 }
 0x7aa   : > { %5166 = vmatpush3.bf16.msra.mxu0 %v5466_v36  ;;  %5194 = vmatpush3.bf16.msra.mxu1 %v5467_v54 }
 0x7ab   : > { %5167 = vmatprep.subr.bf16.mxu0 %v5468_v56  ;;  %5195 = vmatprep.subr.bf16.mxu1 %v5469_v2 }
 0x7ac   : > { %4298 = vmatmul.mubr.bf16.gmra.mrb[48].mxu0 %v4040_v27  ;;  %4351 = vmatmul.mubr.bf16.gmra.mrb[40].mxu1 %v4040_v27 }
 0x7ae   : > { %5168 = vmatpush3.bf16.msra.mxu0 %v5470_v8  ;;  %5196 = vmatpush3.bf16.msra.mxu1 %v5471_v34 }
 0x7af   : > { %5169 = vmatprep.subr.bf16.mxu0 %v5472_v11  ;;  %5197 = vmatprep.subr.bf16.mxu1 %v5473_v19 }
 0x7b2   : > { %5170 = vmatpush3.bf16.msra.mxu0 %v5474_v20  ;;  %5198 = vmatpush3.bf16.msra.mxu1 %v5475_v28 }
 0x7b3   : > { %5171 = vmatprep.subr.bf16.mxu0 %v5476_v23  ;;  %5199 = vmatprep.subr.bf16.mxu1 %v5477_v46 }
 0x7b6   : > { %5172 = vmatpush3.bf16.msra.mxu0 %v5478_v16  ;;  %5200 = vmatpush3.bf16.msra.mxu1 %v5479_v22 }
 0x7b7   : > { %5173 = vmatprep.subr.bf16.mxu0 %v5480_v40  ;;  %5201 = vmatprep.subr.bf16.mxu1 %v5481_v31 }
 0x7ba   : > { %5174 = vmatpush3.bf16.msra.mxu0 %v5482_v32  ;;  %5202 = vmatpush3.bf16.msra.mxu1 %v5483_v30 }
 0x7bb   : > { %5175 = vmatprep.subr.bf16.mxu0 %v5484_v7  ;;  %5203 = vmatprep.subr.bf16.mxu1 %v5485_v37 }
 0x7be   : > { %5176 = vmatpush3.bf16.msra.mxu0 %v5486_v1  ;;  %5204 = vmatpush3.bf16.msra.mxu1 %v5487_v57 }
 0x7bf   : > { %5177 = vmatprep.subr.bf16.mxu0 %v5488_v60  ;;  %5205 = vmatprep.subr.bf16.mxu1 %v5489_v3 }
 0x7c2   : > { %5178 = vmatpush3.bf16.msra.mxu0 %v5490_v38  ;;  %5206 = vmatpush3.bf16.msra.mxu1 %v5491_v55 }
 0x877   : > { %v4289_v5 = vpop.f32.mrb[44].mxu0  ;;  %v4342_v62 = vpop.f32.mrb[36].mxu1 }
 0x878   : > { %v4290_v18 = vadd.f32 %v4289_v5, %v4078_v29  ;;  %v4343_v47 = vadd.f32 %v4342_v62, %v4086_v0  ;;  %v4291_v9 = vpop.f32.mrb[45].mxu0  ;;  %v4344_v49 = vpop.f32.mrb[37].mxu1 }
 0x879   : > { %v4292_v24 = vadd.f32 %v4291_v9, %v4082_v33  ;;  %v4345_v61 = vadd.f32 %v4344_v49, %v4090_v35  ;;  %v4293_v26 = vpop.f32.mrb[46].mxu0  ;;  %v4346_v25 = vpop.f32.mrb[38].mxu1 }
 0x87a   : > { %v4294_v13 = vadd.f32 %v4293_v26, %v4078_v29  ;;  %v4347_v52 = vadd.f32 %v4346_v25, %v4086_v0  ;;  %v4295_v63 = vpop.f32.mrb[47].mxu0  ;;  %v4348_v14 = vpop.f32.mrb[39].mxu1  ;;  %v4361_v53 = vmax.f32 %v4290_v18, 0.0  ;;  %v4363_v15 = vmax.f32 %v4343_v47, 0.0 }
 0x87b   : > { %v4296_v59 = vadd.f32 %v4295_v63, %v4082_v33  ;;  %v4349_v50 = vadd.f32 %v4348_v14, %v4090_v35  ;;  %v4362_v43 = vmax.f32 %v4292_v24, 0.0  ;;  %v4364_v21 = vmax.f32 %v4345_v61, 0.0 }
 0x87c   : > { %v4365_v6 = vmax.f32 %v4294_v13, 0.0  ;;  %v4367_v17 = vmax.f32 %v4347_v52, 0.0 }
 0x87d   : > { %v4366_v44 = vmax.f32 %v4296_v59, 0.0  ;;  %v4368_v58 = vmax.f32 %v4349_v50, 0.0 }
 0x87e   : > { %v4377_v36 = vpack.c.bf16 %v4365_v6, %v4361_v53  ;;  %v4379_v54 = vpack.c.bf16 %v4367_v17, %v4363_v15 }
 0x87f   : > { %v4378_v56 = vpack.c.bf16 %v4366_v44, %v4362_v43  ;;  %v4380_v2 = vpack.c.bf16 %v4368_v58, %v4364_v21  ;;  %v4299_v27 = vpop.f32.mrb[48].mxu0  ;;  %v4352_v8 = vpop.f32.mrb[40].mxu1 }
 0x880   : > { %v4300_v34 = vadd.f32 %v4299_v27, %v4078_v29  ;;  %v4353_v11 = vadd.f32 %v4352_v8, %v4086_v0  ;;  %v4301_v19 = vpop.f32.mrb[49].mxu0  ;;  %v4354_v20 = vpop.f32.mrb[41].mxu1 }
 0x881   : > { %v4302_v28 = vadd.f32 %v4301_v19, %v4082_v33  ;;  %v4355_v23 = vadd.f32 %v4354_v20, %v4090_v35  ;;  %v4303_v46 = vpop.f32.mrb[50].mxu0  ;;  %v4356_v16 = vpop.f32.mrb[42].mxu1  ;;  %4680 = vmatprep.mubr.bf16.mxu0 %v4378_v56  ;;  %4729 = vmatprep.mubr.bf16.mxu1 %v4380_v2 }
 0x882   : > { %v4304_v22 = vadd.f32 %v4303_v46, %v4078_v29  ;;  %v4357_v40 = vadd.f32 %v4356_v16, %v4086_v0  ;;  %v4305_v31 = vpop.f32.mrb[51].mxu0  ;;  %v4358_v32 = vpop.f32.mrb[43].mxu1  ;;  %4681 = vmatmul.mubr.bf16.vlgmr.msra.gmra.mrb[52].mxu0 %v4377_v36  ;;  %4730 = vmatmul.mubr.bf16.vlgmr.msra.gmra.mrb[44].mxu1 %v4379_v54  ;;  %v4369_v37 = vmax.f32 %v4300_v34, 0.0  ;;  %v4371_v1 = vmax.f32 %v4353_v11, 0.0 }
 0x883   : > { %v4306_v30 = vadd.f32 %v4305_v31, %v4082_v33  ;;  %v4359_v7 = vadd.f32 %v4358_v32, %v4090_v35  ;;  %v4370_v3 = vmax.f32 %v4302_v28, 0.0  ;;  %v4372_v38 = vmax.f32 %v4355_v23, 0.0  ;;  %v5070_v33 = vld [vmem:[%s6780_s7] ss:$0 sm:$0xff] }
 0x884   : > { %v4373_v57 = vmax.f32 %v4304_v22, 0.0  ;;  %v4375_v60 = vmax.f32 %v4357_v40, 0.0 }
 0x885   : > { %v4374_v55 = vmax.f32 %v4306_v30, 0.0  ;;  %v4376_v42 = vmax.f32 %v4359_v7, 0.0 }
 0x886   : > { %v4381_v45 = vpack.c.bf16 %v4373_v57, %v4369_v37  ;;  %v4383_v48 = vpack.c.bf16 %v4375_v60, %v4371_v1 }
 0x887   : > { %v4382_v41 = vpack.c.bf16 %v4374_v55, %v4370_v3  ;;  %v4384_v51 = vpack.c.bf16 %v4376_v42, %v4372_v38 }
 0x889   : > { %4688 = vmatprep.mubr.bf16.mxu0 %v4382_v41  ;;  %4737 = vmatprep.mubr.bf16.mxu1 %v4384_v51 }
 0x88a   : > { %4689 = vmatmul.mubr.bf16.gmra.mrb[56].mxu0 %v4381_v45  ;;  %4738 = vmatmul.mubr.bf16.gmra.mrb[48].mxu1 %v4383_v48 }
 0x955   : > { %v5179_v29 = vpop.f32.mrb[52].mxu0  ;;  %v5207_v0 = vpop.f32.mrb[44].mxu1 }
 0x956   : > { %v5180_v35 = vpop.f32.mrb[53].mxu0  ;;  %v5208_v5 = vpop.f32.mrb[45].mxu1 }
 0x957   : > { %v5181_v62 = vadd.f32 %v5180_v35, %v5179_v29  ;;  %v5209_v18 = vadd.f32 %v5208_v5, %v5207_v0  ;;  %v5182_v47 = vpop.f32.mrb[54].mxu0  ;;  %v5210_v9 = vpop.f32.mrb[46].mxu1 }
 0x958   : > { %v5183_v49 = vpop.f32.mrb[55].mxu0  ;;  %v5211_v24 = vpop.f32.mrb[47].mxu1 }
 0x959   : > { %v4683_v61 = vadd.f32 %v5181_v62, %v5070_v33  ;;  %v5184_v26 = vadd.f32 %v5183_v49, %v5182_v47  ;;  %v5212_v25 = vadd.f32 %v5211_v24, %v5210_v9  ;;  %v5104_v62 = vld [vmem:[%s6784_s11] ss:$0 sm:$0xff] }
 0x95b   : > { %v4732_v13 = vadd.f32 %v5209_v18, %v4683_v61  ;;  %v4686_v52 = vadd.f32 %v5184_v26, %v5070_v33 }
 0x95d   : > { %v4735_v63 = vadd.f32 %v5212_v25, %v4686_v52  ;;  %v5185_v14 = vpop.f32.mrb[56].mxu0  ;;  %v5213_v59 = vpop.f32.mrb[48].mxu1  ;;  %v4746_v50 = vadd.f32 %v4732_v13, %v6633_v10 }
 0x95e   : > { %v5186_v53 = vpop.f32.mrb[57].mxu0  ;;  %v5214_v15 = vpop.f32.mrb[49].mxu1 }
 0x95f   : > { %v5187_v6 = vadd.f32 %v5186_v53, %v5185_v14  ;;  %v5215_v17 = vadd.f32 %v5214_v15, %v5213_v59  ;;  %v5188_v43 = vpop.f32.mrb[58].mxu0  ;;  %v5216_v21 = vpop.f32.mrb[50].mxu1  ;;  %4752 = vadd.xlane.f32.xlu1 %v4746_v50  ;;  %v4747_v44 = vadd.f32 %v4735_v63, %v6635_v39 }
 0x960   : > { %v5189_v58 = vpop.f32.mrb[59].mxu0  ;;  %v5217_v36 = vpop.f32.mrb[51].mxu1 }
 0x961   : > { %v4691_v54 = vadd.f32 %v5187_v6, %v5070_v33  ;;  %v5190_v56 = vadd.f32 %v5189_v58, %v5188_v43  ;;  %v5218_v2 = vadd.f32 %v5217_v36, %v5216_v21  ;;  %4754 = vadd.xlane.f32.xlu0 %v4747_v44 }
 0x963   : > { %v4740_v27 = vadd.f32 %v5215_v17, %v4691_v54  ;;  %v4694_v8 = vadd.f32 %v5190_v56, %v5070_v33  ;;  %v5103_v33 = vld [vmem:[%s6783_s10] ss:$0 sm:$0xff] }
 0x965   : > { %v4743_v34 = vadd.f32 %v5218_v2, %v4694_v8  ;;  %v4748_v10 = vadd.f32 %v4740_v27, %v6669_v4 }
 0x967   : > { %4756 = vadd.xlane.f32.xlu1 %v4748_v10  ;;  %v4749_v11 = vadd.f32 %v4743_v34, %v6655_v12 }
 0x969   : > { %4758 = vadd.xlane.f32.xlu0 %v4749_v11 }
 0x9ec   : > { %v4753_v19 = vpop.xlane.xlu1 %4752 }
 0x9ed   : > { %v4760_v20 = vmul.f32 0.0078125, %v4753_v19 }
 0x9ee   : > { %v4755_v28 = vpop.xlane.xlu0 %4754 }
 0x9ef   : > { %v4764_v23 = vsub.f32 %v4746_v50, %v4760_v20  ;;  %v4761_v39 = vmul.f32 0.0078125, %v4755_v28 }
 0x9f1   : > { %v4765_v46 = vsub.f32 %v4747_v44, %v4761_v39  ;;  %v4768_v16 = vmul.f32 %v4764_v23, %v4764_v23 }
 0x9f3   : > { %4772 = vadd.xlane.f32.xlu1 %v4768_v16  ;;  %v4769_v22 = vmul.f32 %v4765_v46, %v4765_v46 }
 0x9f4   : > { %v4757_v40 = vpop.xlane.xlu1 %4756 }
 0x9f5   : > { %v4762_v31 = vmul.f32 0.0078125, %v4757_v40  ;;  %4774 = vadd.xlane.f32.xlu0 %v4769_v22 }
 0x9f6   : > { %v4759_v32 = vpop.xlane.xlu0 %4758 }
 0x9f7   : > { %v4766_v30 = vsub.f32 %v4748_v10, %v4762_v31  ;;  %v4763_v7 = vmul.f32 0.0078125, %v4759_v32 }
 0x9f9   : > { %v4767_v4 = vsub.f32 %v4749_v11, %v4763_v7  ;;  %v4770_v37 = vmul.f32 %v4766_v30, %v4766_v30 }
 0x9fb   : > { %4776 = vadd.xlane.f32.xlu1 %v4770_v37  ;;  %v4771_v12 = vmul.f32 %v4767_v4, %v4767_v4  ;;  %v5106_v37 = vld [vmem:[%s6786_s13] ss:$0 sm:$0xff] }
 0x9fd   : > { %4778 = vadd.xlane.f32.xlu0 %v4771_v12 }
 0xa80   : > { %v4773_v1 = vpop.xlane.xlu1 %4772 }
 0xa81   : > { %v4780_v57 = vmul.f32 0.0078125, %v4773_v1 }
 0xa82   : > { %v4775_v60 = vpop.xlane.xlu0 %4774 }
 0xa83   : > { %v4784_v3 = vadd.f32 1e-05, %v4780_v57  ;;  %v4781_v38 = vmul.f32 0.0078125, %v4775_v60 }
 0xa85   : > { %5564 = vrsqrt.f32 %v4784_v3  ;;  %v4785_v55 = vadd.f32 1e-05, %v4781_v38 }
 0xa87   : > { %5566 = vrsqrt.f32 %v4785_v55 }
 0xa88   : > { %v4777_v42 = vpop.xlane.xlu1 %4776 }
 0xa89   : > { %v4782_v45 = vmul.f32 0.0078125, %v4777_v42 }
 0xa8a   : > { %v4779_v48 = vpop.xlane.xlu0 %4778 }
 0xa8b   : > { %v4786_v41 = vadd.f32 1e-05, %v4782_v45  ;;  %v4783_v51 = vmul.f32 0.0078125, %v4779_v48 }
 0xa8d   : > { %5568 = vrsqrt.f32 %v4786_v41  ;;  %v4787_v29 = vadd.f32 1e-05, %v4783_v51 }
 0xa8f   : > { %v5565_v0 = vpop.eup %5564  ;;  %5570 = vrsqrt.f32 %v4787_v29 }
 0xa90   : > { %v4792_v35 = vmul.f32 %v5565_v0, %v4764_v23 }
 0xa91   : > { %v5567_v5 = vpop.eup %5566 }
 0xa92   : > { %v4802_v18 = vmul.f32 %v5103_v33, %v4792_v35  ;;  %v4793_v47 = vmul.f32 %v5567_v5, %v4765_v46 }
 0xa94   : > { %v4812_v9 = vadd.f32 %v5104_v62, %v4802_v18  ;;  %v4803_v49 = vmul.f32 %v5103_v33, %v4793_v47 }
 0xa96   : > { %4818 = vadd.xlane.f32.xlu1 %v4812_v9  ;;  %v4813_v24 = vadd.f32 %v5104_v62, %v4803_v49 }
 0xa97   : > { %v5569_v61 = vpop.eup %5568 }
 0xa98   : > { %4820 = vadd.xlane.f32.xlu0 %v4813_v24  ;;  %v4794_v26 = vmul.f32 %v5569_v61, %v4766_v30  ;;  %v5105_v30 = vld [vmem:[%s6785_s12] ss:$0 sm:$0xff] }
 0xa99   : > { %v5571_v25 = vpop.eup %5570 }
 0xa9a   : > { %v4804_v13 = vmul.f32 %v5103_v33, %v4794_v26  ;;  %v4795_v52 = vmul.f32 %v5571_v25, %v4767_v4 }
 0xa9c   : > { %v4814_v63 = vadd.f32 %v5104_v62, %v4804_v13  ;;  %v4805_v14 = vmul.f32 %v5103_v33, %v4795_v52 }
 0xa9e   : > { %4822 = vadd.xlane.f32.xlu1 %v4814_v63  ;;  %v4815_v59 = vadd.f32 %v5104_v62, %v4805_v14 }
 0xaa0   : > { %4824 = vadd.xlane.f32.xlu0 %v4815_v59 }
 0xb23   : > { %v4819_v50 = vpop.xlane.xlu1 %4818 }
 0xb24   : > { %v4826_v53 = vmul.f32 0.0078125, %v4819_v50 }
 0xb25   : > { %v4821_v15 = vpop.xlane.xlu0 %4820 }
 0xb26   : > { %v4830_v6 = vsub.f32 %v4812_v9, %v4826_v53  ;;  %v4827_v17 = vmul.f32 0.0078125, %v4821_v15 }
 0xb28   : > { %v4831_v43 = vsub.f32 %v4813_v24, %v4827_v17  ;;  %v4834_v21 = vmul.f32 %v4830_v6, %v4830_v6 }
 0xb2a   : > { %4838 = vadd.xlane.f32.xlu1 %v4834_v21  ;;  %v4835_v44 = vmul.f32 %v4831_v43, %v4831_v43 }
 0xb2b   : > { %v4823_v58 = vpop.xlane.xlu1 %4822 }
 0xb2c   : > { %v4828_v36 = vmul.f32 0.0078125, %v4823_v58  ;;  %4840 = vadd.xlane.f32.xlu0 %v4835_v44 }
 0xb2d   : > { %v4825_v54 = vpop.xlane.xlu0 %4824 }
 0xb2e   : > { %v4832_v56 = vsub.f32 %v4814_v63, %v4828_v36  ;;  %v4829_v2 = vmul.f32 0.0078125, %v4825_v54 }
 0xb30   : > { %v4833_v27 = vsub.f32 %v4815_v59, %v4829_v2  ;;  %v4836_v8 = vmul.f32 %v4832_v56, %v4832_v56 }
 0xb32   : > { %4842 = vadd.xlane.f32.xlu1 %v4836_v8  ;;  %v4837_v34 = vmul.f32 %v4833_v27, %v4833_v27 }
 0xb34   : > { %4844 = vadd.xlane.f32.xlu0 %v4837_v34 }
 0xbb7   : > { %v4839_v10 = vpop.xlane.xlu1 %4838 }
 0xbb8   : > { %v4846_v11 = vmul.f32 0.0078125, %v4839_v10 }
 0xbb9   : > { %v4841_v19 = vpop.xlane.xlu0 %4840 }
 0xbba   : > { %v4850_v20 = vadd.f32 1e-05, %v4846_v11  ;;  %v4847_v28 = vmul.f32 0.0078125, %v4841_v19 }
 0xbbc   : > { %5572 = vrsqrt.f32 %v4850_v20  ;;  %v4851_v23 = vadd.f32 1e-05, %v4847_v28 }
 0xbbe   : > { %5574 = vrsqrt.f32 %v4851_v23 }
 0xbbf   : > { %v4843_v39 = vpop.xlane.xlu1 %4842 }
 0xbc0   : > { %v4848_v46 = vmul.f32 0.0078125, %v4843_v39 }
 0xbc1   : > { %v4845_v16 = vpop.xlane.xlu0 %4844 }
 0xbc2   : > { %v4852_v22 = vadd.f32 1e-05, %v4848_v46  ;;  %v4849_v40 = vmul.f32 0.0078125, %v4845_v16 }
 0xbc4   : > { %5576 = vrsqrt.f32 %v4852_v22  ;;  %v4853_v31 = vadd.f32 1e-05, %v4849_v40 }
 0xbc6   : > { %v5573_v32 = vpop.eup %5572  ;;  %5578 = vrsqrt.f32 %v4853_v31 }
 0xbc7   : > { %v4858_v7 = vmul.f32 %v5573_v32, %v4830_v6 }
 0xbc8   : > { %v5575_v4 = vpop.eup %5574 }
 0xbc9   : > { %v4868_v12 = vmul.f32 %v5105_v30, %v4858_v7  ;;  %v4859_v1 = vmul.f32 %v5575_v4, %v4831_v43 }
 0xbcb   : > { %v4878_v57 = vadd.f32 %v5106_v37, %v4868_v12  ;;  %v4869_v60 = vmul.f32 %v5105_v30, %v4859_v1 }
 0xbcd   : > { %4882 = vst [vmem:[%s474_s24] sm:$0xff] %v4878_v57  ;;  %v4879_v3 = vadd.f32 %v5106_v37, %v4869_v60 }
 0xbce   : > { %v5577_v38 = vpop.eup %5576 }
 0xbcf   : > { %4883 = vst [vmem:[%s474_s24 + $0x8] sm:$0xff] %v4879_v3  ;;  %v4860_v55 = vmul.f32 %v5577_v38, %v4832_v56 }
 0xbd0   : > { %v5579_v42 = vpop.eup %5578 }
 0xbd1   : > { %v4870_v45 = vmul.f32 %v5105_v30, %v4860_v55  ;;  %v4861_v48 = vmul.f32 %v5579_v42, %v4833_v27 }
 0xbd3   : > { %v4880_v41 = vadd.f32 %v5106_v37, %v4870_v45  ;;  %v4871_v51 = vmul.f32 %v5105_v30, %v4861_v48 }
 0xbd5   : > { %4884 = vst [vmem:[%s474_s24 + $0x10] sm:$0xff] %v4880_v41  ;;  %v4881_v29 = vadd.f32 %v5106_v37, %v4871_v51 }
 0xbd7   : > { %4885 = vst [vmem:[%s474_s24 + $0x18] sm:$0xff] %v4881_v29 }
 0xbd8 PF: > { %s24_s29 = sadd.s32 1, %s5590_s29  }
 0xbd9   : > { %p21_p4 = scmp.ge.s32.totalorder %s24_s29, 4  }
 0xbdb   :  { %23 = sbr.rel (!%p21_p4) target bundleno = 1 (0x1), region = 106 }

</bundles_post_ra>
